<compile_context>
chip_gen: v5e
topology: v5e:2x2
jax: 0.10.0
libtpu: 0.0.40
codegen_flags: <defaults>
</compile_context>

<pallas_src>
import functools

import jax
import jax.numpy as jnp
from jax import lax
from jax.experimental import pallas as pl
from jax.experimental.pallas import tpu as pltpu

EPS = 1e-5
LANE = 128


# ----------------------------------------------------------------------------
# Kernels
# ----------------------------------------------------------------------------
def _conv_bn_stats_kernel(xm_ref, xt_ref, xb_ref, w_ref, scale_ref, shift_ref,
                          y_ref, sum_ref, sq_ref, *,
                          tile_h, out_w, cin_pad, cout_pad, apply_prenorm):
    """[optional fused BN+ReLU of previous stage] + 3x3 reflect conv + BN partials.

    xm_ref:    (1, tile_h, W, cin_pad)   bf16  rows [t*tile_h, (t+1)*tile_h)
    xt_ref:    (1, 1, W, cin_pad)        bf16  row above (reflect-clamped index_map)
    xb_ref:    (1, 1, W, cin_pad)        bf16  row below (reflect-clamped index_map)
    w_ref:     (3, 3*cin_pad, cout_pad)  bf16  ky-major; (kx, cin) packed along K
    scale_ref: (1, 1, cin_pad)           bf16  prenorm scale (used iff apply_prenorm)
    shift_ref: (1, 1, cin_pad)           bf16
    y_ref:     (1, tile_h, W, cout_pad)  bf16  raw conv output (pre-BN)
    sum_ref:   (1, 1, 1, cout_pad)       f32   per-tile per-channel sum
    sq_ref:    (1, 1, 1, cout_pad)       f32   per-tile per-channel sum of squares
    """
    if apply_prenorm:
        sc = scale_ref[...]
        sh = shift_ref[...]

    def prenorm(rows):
        if not apply_prenorm:
            return rows
        # BN(prev stage) + ReLU fused, in bf16 (operands feed a bf16 MXU anyway).
        return jnp.maximum(rows * sc + sh, 0).astype(jnp.bfloat16)

    def kpack(rows):
        # In-kernel column reflect pad + kx im2col: (R, W, C) -> (R, W, 3C) with the
        # three kx taps stacked along the channel (lane) axis.  The kx=1 tap is the
        # unshifted data, so only two sublane-shifted thirds are materialized.
        left = jnp.concatenate([rows[:, 1:2, :], rows[:, :out_w - 1, :]], axis=1)
        right = jnp.concatenate([rows[:, 1:, :], rows[:, out_w - 2:out_w - 1, :]],
                                axis=1)
        return jnp.concatenate([left, rows, right], axis=-1)

    xm_cat = kpack(prenorm(xm_ref[0]))                  # (tile_h, W, 3C)
    xt_cat = kpack(prenorm(xt_ref[0]))                  # (1, W, 3C)
    xb_cat = kpack(prenorm(xb_ref[0]))                  # (1, W, 3C)

    k3 = 3 * cin_pad
    mi = tile_h - 2

    # First / last output row of the tile need the 1-row halos (row reflect handled
    # by the halo index_maps); pack both edge rows into one M=2W matmul per ky.
    win_top = jnp.concatenate([xt_cat, xm_cat[0:2]], axis=0)                 # (3, W, 3C)
    win_bot = jnp.concatenate([xm_cat[tile_h - 2:tile_h], xb_cat], axis=0)   # (3, W, 3C)
    win_edge = jnp.concatenate([win_top, win_bot], axis=1)                   # (3, 2W, 3C)

    acc_in = None    # interior output rows [1, tile_h-1): all taps from the main block
    acc_edge = None  # output rows {0, tile_h-1}
    for ky in range(3):
        wk = w_ref[ky]                                                       # (3C, cout)
        d_in = jnp.dot(xm_cat[ky:ky + mi].reshape(mi * out_w, k3), wk,
                       preferred_element_type=jnp.float32)
        d_edge = jnp.dot(win_edge[ky], wk, preferred_element_type=jnp.float32)
        acc_in = d_in if acc_in is None else acc_in + d_in
        acc_edge = d_edge if acc_edge is None else acc_edge + d_edge

    y_ref[0, 1:tile_h - 1] = acc_in.reshape(mi, out_w, cout_pad).astype(y_ref.dtype)
    y_ref[0, 0] = acc_edge[:out_w].astype(y_ref.dtype)
    y_ref[0, tile_h - 1] = acc_edge[out_w:].astype(y_ref.dtype)

    s = jnp.sum(acc_in, axis=0) + jnp.sum(acc_edge, axis=0)                  # (cout,)
    ss = jnp.sum(acc_in * acc_in, axis=0) + jnp.sum(acc_edge * acc_edge, axis=0)
    sum_ref[...] = s.reshape(1, 1, 1, cout_pad)
    sq_ref[...] = ss.reshape(1, 1, 1, cout_pad)


def _bn_relu_kernel(x_ref, scale_ref, shift_ref, o_ref, *, cout):
    """Final BatchNorm (precomputed scale/shift) + ReLU; writes only real channels."""
    x = x_ref[0].astype(jnp.float32)                      # (tile_h, W, cout_pad)
    y = jnp.maximum(x * scale_ref[...] + shift_ref[...], 0.0)
    o_ref[0] = y[:, :, :cout]


# ----------------------------------------------------------------------------
# Host-side glue
# ----------------------------------------------------------------------------
def _round_up(x, m):
    return (x + m - 1) // m * m


def _pad_last(x, target):
    pad = target - x.shape[-1]
    if pad == 0:
        return x
    return jnp.pad(x, [(0, 0)] * (x.ndim - 1) + [(0, pad)])


def _pack_weights(w_hwio, cin_pad, cout_pad):
    """(3,3,cin,cout) HWIO -> (3, 3*cin_pad, cout_pad) bf16, kx-major / cin-minor K."""
    kh, kw, cin, cout = w_hwio.shape
    wp = jnp.pad(w_hwio.astype(jnp.float32),
                 ((0, 0), (0, 0), (0, cin_pad - cin), (0, cout_pad - cout)))
    return wp.reshape(kh, kw * cin_pad, cout_pad).astype(jnp.bfloat16)


def _vmem_budget():
    """Generation-aware scoped-VMEM limit and honest per-step footprint budget."""
    cap = 128 * 1024 * 1024
    try:
        cap = int(pltpu.get_tpu_info().vmem_capacity_bytes)
    except Exception:  # conservative fallback if the query is unavailable
        pass
    limit = min(cap * 3 // 4, 96 * 1024 * 1024)   # ~96 MiB on v5e/v6e, ~48 MiB on v7x
    budget = min(limit // 2, 32 * 1024 * 1024)
    return limit, budget


def _pick_conv_tile(n, h, w, cin_pad, cout_pad, budget):
    """Largest row tile whose *actual* per-step footprint (double buffers, halos,
    packed weights, f32 accumulator, K-packed intermediates) fits the budget."""
    def footprint(t):
        blocks = (t * w * cin_pad * 2              # main input rows (bf16)
                  + 2 * w * cin_pad * 2            # two 1-row halos
                  + 9 * cin_pad * cout_pad * 2     # packed weights
                  + t * w * cout_pad * 2)          # raw conv output
        interm = t * w * (4 * cin_pad * 2          # prenormed + K-packed rows (bf16)
                          + 2 * cout_pad * 4)      # f32 accumulator + matmul result
        return 2 * blocks + interm                 # BlockSpec blocks double-buffered
    cands = [t for t in range(8, h + 1, 8) if h % t == 0 and footprint(t) <= budget]
    if not cands:
        return 8   # TODO(synk): add a W / cout grid axis when even 8 rows overflow
    deep = [t for t in cands if n * (h // t) >= 8]  # keep the pipeline / megacore fed
    return max(deep) if deep else max(cands)


def _pick_eplg_tile(h, w, c_pad, cout, budget):
    def footprint(t):
        return 2 * t * w * (c_pad * 2 + cout * 4) + t * w * c_pad * 4
    cands = [t for t in range(8, h + 1, 8) if h % t == 0 and footprint(t) <= budget]
    return max(cands) if cands else 8


def _conv_stage(x, w_packed, scale, shift, *, apply_prenorm, tile_h, cout_pad,
                vmem_limit):
    n, h, w, cin_pad = x.shape
    num_t = h // tile_h
    kernel = functools.partial(
        _conv_bn_stats_kernel, tile_h=tile_h, out_w=w,
        cin_pad=cin_pad, cout_pad=cout_pad, apply_prenorm=apply_prenorm)

    # Row-reflect of the 1-row halos folded into the index_maps:
    #   row above tile 0    -> row 1      (|0*tile_h - 1| = 1)
    #   row below last tile -> row h - 2  ((h-1) - |h - (h-1)| = h - 2)
    top_map = lambda b, t: (b, jnp.abs(t * tile_h - 1), 0, 0)
    bot_map = lambda b, t: (b, (h - 1) - jnp.abs((t + 1) * tile_h - (h - 1)), 0, 0)

    return pl.pallas_call(
        kernel,
        grid=(n, num_t),
        in_specs=[
            pl.BlockSpec((1, tile_h, w, cin_pad), lambda b, t: (b, t, 0, 0)),
            pl.BlockSpec((1, 1, w, cin_pad), top_map),
            pl.BlockSpec((1, 1, w, cin_pad), bot_map),
            # constant-index blocks: fetched once, stay VMEM-resident
            pl.BlockSpec((3, 3 * cin_pad, cout_pad), lambda b, t: (0, 0, 0)),
            pl.BlockSpec((1, 1, cin_pad), lambda b, t: (0, 0, 0)),
            pl.BlockSpec((1, 1, cin_pad), lambda b, t: (0, 0, 0)),
        ],
        out_specs=(
            pl.BlockSpec((1, tile_h, w, cout_pad), lambda b, t: (b, t, 0, 0)),
            pl.BlockSpec((1, 1, 1, cout_pad), lambda b, t: (b, t, 0, 0)),
            pl.BlockSpec((1, 1, 1, cout_pad), lambda b, t: (b, t, 0, 0)),
        ),
        out_shape=(
            jax.ShapeDtypeStruct((n, h, w, cout_pad), jnp.bfloat16),
            jax.ShapeDtypeStruct((n, num_t, 1, cout_pad), jnp.float32),
            jax.ShapeDtypeStruct((n, num_t, 1, cout_pad), jnp.float32),
        ),
        compiler_params=pltpu.CompilerParams(
            dimension_semantics=("parallel", "parallel"),
            vmem_limit_bytes=vmem_limit),
    )(x, x, x, w_packed, scale, shift)


def _bn_scale_shift(sums, sqs, count, gamma, beta):
    """Finalize BatchNorm batch statistics (biased variance) into scale/shift (f32)."""
    c_pad = sums.shape[-1]
    total = jnp.sum(sums, axis=(0, 1, 2))
    total_sq = jnp.sum(sqs, axis=(0, 1, 2))
    mean = total / count
    var = jnp.maximum(total_sq / count - mean * mean, 0.0)
    inv = lax.rsqrt(var + EPS)
    g = _pad_last(gamma.astype(jnp.float32), c_pad)   # padded channels: gamma 0 -> scale 0
    b = _pad_last(beta.astype(jnp.float32), c_pad)
    scale = g * inv
    shift = b - mean * scale
    return scale, shift


def _bn_relu_stage(y_raw, scale, shift, cout, tile_h, vmem_limit):
    n, h, w, c_pad = y_raw.shape
    num_t = h // tile_h
    kernel = functools.partial(_bn_relu_kernel, cout=cout)
    return pl.pallas_call(
        kernel,
        grid=(n, num_t),
        in_specs=[
            pl.BlockSpec((1, tile_h, w, c_pad), lambda b, t: (b, t, 0, 0)),
            pl.BlockSpec((1, 1, c_pad), lambda b, t: (0, 0, 0)),
            pl.BlockSpec((1, 1, c_pad), lambda b, t: (0, 0, 0)),
        ],
        out_specs=pl.BlockSpec((1, tile_h, w, cout), lambda b, t: (b, t, 0, 0)),
        out_shape=jax.ShapeDtypeStruct((n, h, w, cout), jnp.float32),
        compiler_params=pltpu.CompilerParams(
            dimension_semantics=("parallel", "parallel"),
            vmem_limit_bytes=vmem_limit),
    )(y_raw, scale.reshape(1, 1, c_pad), shift.reshape(1, 1, c_pad))


def double_conv(x_nchw, params):
    """Forward pass of DoubleConv.  Input/output are NCHW float32, like PyTorch."""
    n, cin, h, w = x_nchw.shape
    cmid = params["w1"].shape[-1]
    cout = params["w2"].shape[-1]
    # TODO(synk): ragged H/W tiling; currently spatial dims must be multiples of 8.
    assert h % 8 == 0 and w % 8 == 0, "H and W must be multiples of 8"

    cin_pad = _round_up(cin, LANE)
    cmid_pad = _round_up(cmid, LANE)
    cout_pad = _round_up(cout, LANE)
    count = n * h * w                     # BatchNorm2d reduces over batch + spatial
    vmem_limit, budget = _vmem_budget()
    tile1 = _pick_conv_tile(n, h, w, cin_pad, cmid_pad, budget)
    tile2 = _pick_conv_tile(n, h, w, cmid_pad, cout_pad, budget)
    tile3 = _pick_eplg_tile(h, w, cout_pad, cout, budget)

    # NCHW -> NHWC, zero-pad channels to the lane width, bf16 for the MXU.  No
    # spatial-pad HBM pass: all reflect handling lives in the kernels / index_maps.
    x = jnp.transpose(x_nchw, (0, 2, 3, 1))
    x = _pad_last(x, cin_pad).astype(jnp.bfloat16)

    w1 = _pack_weights(params["w1"], cin_pad, cmid_pad)
    w2 = _pack_weights(params["w2"], cmid_pad, cout_pad)

    # Stage 1: raw conv1 + BN1 batch-stat partials.
    one = jnp.ones((1, 1, cin_pad), jnp.bfloat16)
    zero = jnp.zeros((1, 1, cin_pad), jnp.bfloat16)
    y1_raw, s1, ss1 = _conv_stage(x, w1, one, zero, apply_prenorm=False,
                                  tile_h=tile1, cout_pad=cmid_pad,
                                  vmem_limit=vmem_limit)
    scale1, shift1 = _bn_scale_shift(s1, ss1, count, params["g1"], params["b1"])

    # Stage 2: BN1+ReLU (bf16) fused into the conv2 kernel + BN2 batch-stat partials.
    # y1_raw is consumed straight from HBM - no reflect-padded copy of the mid tensor.
    y2_raw, s2, ss2 = _conv_stage(
        y1_raw, w2,
        scale1.astype(jnp.bfloat16).reshape(1, 1, cmid_pad),
        shift1.astype(jnp.bfloat16).reshape(1, 1, cmid_pad),
        apply_prenorm=True, tile_h=tile2, cout_pad=cout_pad, vmem_limit=vmem_limit)
    scale2, shift2 = _bn_scale_shift(s2, ss2, count, params["g2"], params["b2"])

    # Final BN2 + ReLU epilogue, writing only the real cout channels (NHWC f32).
    y = _bn_relu_stage(y2_raw, scale2, shift2, cout, tile3, vmem_limit)
    # TODO(synk): fuse the NHWC->NCHW transpose into the epilogue kernel.
    return jnp.transpose(y, (0, 3, 1, 2))


def init_params(key, in_channels, out_channels):
    k1, k2 = jax.random.split(key)
    # Conv weights in HWIO layout (PyTorch stores OIHW), Kaiming-like scale, no bias.
    w1 = jax.random.normal(k1, (3, 3, in_channels, out_channels), jnp.float32)
    w1 = w1 * (2.0 / (9 * in_channels)) ** 0.5
    w2 = jax.random.normal(k2, (3, 3, out_channels, out_channels), jnp.float32)
    w2 = w2 * (2.0 / (9 * out_channels)) ** 0.5
    # BatchNorm affine params at PyTorch defaults: gamma=1, beta=0 (training mode,
    # batch statistics; running-stat buffer updates are side effects not modeled).
    g1 = jnp.ones((out_channels,), jnp.float32)
    b1 = jnp.zeros((out_channels,), jnp.float32)
    g2 = jnp.ones((out_channels,), jnp.float32)
    b2 = jnp.zeros((out_channels,), jnp.float32)
    return {"w1": w1, "g1": g1, "b1": b1, "w2": w2, "g2": g2, "b2": b2}


if __name__ == "__main__":
    N, C_IN, C_OUT, H, W = 2, 4, 8, 16, 16

    key = jax.random.PRNGKey(0)
    kx, kp = jax.random.split(key)
    x = jax.random.normal(kx, (N, C_IN, H, W), jnp.float32)   # NCHW, like PyTorch
    params = init_params(kp, C_IN, C_OUT)

    out = jax.jit(double_conv)(x, params)
    out = jax.block_until_ready(out)

    assert out.shape == (N, C_OUT, H, W), out.shape
    assert bool(jnp.all(jnp.isfinite(out)))
    assert bool(jnp.all(out >= 0.0))  # ends with ReLU
    print("KERNEL_OK")
</pallas_src>

<mosaic_0001>
module attributes {stable_mosaic.version = 11 : i64} {
  func.func @_conv_bn_stats_kernel(%arg0: i32, %arg1: i32, %arg2: memref<1x16x16x128xbf16, #tpu.memory_space<vmem>>, %arg3: memref<1x1x16x128xbf16, #tpu.memory_space<vmem>>, %arg4: memref<1x1x16x128xbf16, #tpu.memory_space<vmem>>, %arg5: memref<3x384x128xbf16, #tpu.memory_space<vmem>>, %arg6: memref<1x1x128xbf16, #tpu.memory_space<vmem>>, %arg7: memref<1x1x128xbf16, #tpu.memory_space<vmem>>, %arg8: memref<1x16x16x128xbf16, #tpu.memory_space<vmem>>, %arg9: memref<1x1x1x128xf32, #tpu.memory_space<vmem>>, %arg10: memref<1x1x1x128xf32, #tpu.memory_space<vmem>>) attributes {dimension_semantics = [#tpu.dimension_semantics<parallel>, #tpu.dimension_semantics<parallel>], iteration_bounds = array<i64: 2, 1>, scalar_prefetch = 0 : i64, scratch_operands = 0 : i64, tpu.core_type = #tpu.core_type<tc>, window_params = [{transform_indices = @transform_0, window_bounds = array<i64: 1, 16, 16, 128>}, {transform_indices = @transform_1, window_bounds = array<i64: 1, 1, 16, 128>}, {transform_indices = @transform_2, window_bounds = array<i64: 1, 1, 16, 128>}, {pipeline_mode = #tpu.pipeline_mode<synchronous>, transform_indices = @transform_3, window_bounds = array<i64: 3, 384, 128>}, {pipeline_mode = #tpu.pipeline_mode<synchronous>, transform_indices = @transform_4, window_bounds = array<i64: 1, 1, 128>}, {pipeline_mode = #tpu.pipeline_mode<synchronous>, transform_indices = @transform_5, window_bounds = array<i64: 1, 1, 128>}, {transform_indices = @transform_6, window_bounds = array<i64: 1, 16, 16, 128>}, {transform_indices = @transform_7, window_bounds = array<i64: 1, 1, 1, 128>}, {transform_indices = @transform_8, window_bounds = array<i64: 1, 1, 1, 128>}]} {
    %c0 = arith.constant 0 : index
    %c0_0 = arith.constant 0 : index
    %c0_1 = arith.constant 0 : index
    %c0_2 = arith.constant 0 : index
    %0 = vector.load %arg2[%c0, %c0_0, %c0_1, %c0_2] : memref<1x16x16x128xbf16, #tpu.memory_space<vmem>>, vector<1x16x16x128xbf16>
    %1 = vector.shape_cast %0 : vector<1x16x16x128xbf16> to vector<16x16x128xbf16>
    %2 = vector.extract_strided_slice %1 {offsets = [0, 1, 0], sizes = [16, 1, 128], strides = [1, 1, 1]} : vector<16x16x128xbf16> to vector<16x1x128xbf16>
    %3 = vector.extract_strided_slice %1 {offsets = [0, 0, 0], sizes = [16, 15, 128], strides = [1, 1, 1]} : vector<16x16x128xbf16> to vector<16x15x128xbf16>
    %4 = tpu.concatenate %2, %3 in 1 : vector<16x1x128xbf16>, vector<16x15x128xbf16> -> vector<16x16x128xbf16>
    %5 = vector.extract_strided_slice %1 {offsets = [0, 1, 0], sizes = [16, 15, 128], strides = [1, 1, 1]} : vector<16x16x128xbf16> to vector<16x15x128xbf16>
    %6 = vector.extract_strided_slice %1 {offsets = [0, 14, 0], sizes = [16, 1, 128], strides = [1, 1, 1]} : vector<16x16x128xbf16> to vector<16x1x128xbf16>
    %7 = tpu.concatenate %5, %6 in 1 : vector<16x15x128xbf16>, vector<16x1x128xbf16> -> vector<16x16x128xbf16>
    %8 = tpu.concatenate %4, %1, %7 in 2 : vector<16x16x128xbf16>, vector<16x16x128xbf16>, vector<16x16x128xbf16> -> vector<16x16x384xbf16>
    %c0_3 = arith.constant 0 : index
    %c0_4 = arith.constant 0 : index
    %c0_5 = arith.constant 0 : index
    %c0_6 = arith.constant 0 : index
    %9 = vector.load %arg3[%c0_3, %c0_4, %c0_5, %c0_6] : memref<1x1x16x128xbf16, #tpu.memory_space<vmem>>, vector<1x1x16x128xbf16>
    %10 = vector.shape_cast %9 : vector<1x1x16x128xbf16> to vector<1x16x128xbf16>
    %11 = vector.extract_strided_slice %10 {offsets = [0, 1, 0], sizes = [1, 1, 128], strides = [1, 1, 1]} : vector<1x16x128xbf16> to vector<1x1x128xbf16>
    %12 = vector.extract_strided_slice %10 {offsets = [0, 0, 0], sizes = [1, 15, 128], strides = [1, 1, 1]} : vector<1x16x128xbf16> to vector<1x15x128xbf16>
    %13 = tpu.concatenate %11, %12 in 1 : vector<1x1x128xbf16>, vector<1x15x128xbf16> -> vector<1x16x128xbf16>
    %14 = vector.extract_strided_slice %10 {offsets = [0, 1, 0], sizes = [1, 15, 128], strides = [1, 1, 1]} : vector<1x16x128xbf16> to vector<1x15x128xbf16>
    %15 = vector.extract_strided_slice %10 {offsets = [0, 14, 0], sizes = [1, 1, 128], strides = [1, 1, 1]} : vector<1x16x128xbf16> to vector<1x1x128xbf16>
    %16 = tpu.concatenate %14, %15 in 1 : vector<1x15x128xbf16>, vector<1x1x128xbf16> -> vector<1x16x128xbf16>
    %17 = tpu.concatenate %13, %10, %16 in 2 : vector<1x16x128xbf16>, vector<1x16x128xbf16>, vector<1x16x128xbf16> -> vector<1x16x384xbf16>
    %c0_7 = arith.constant 0 : index
    %c0_8 = arith.constant 0 : index
    %c0_9 = arith.constant 0 : index
    %c0_10 = arith.constant 0 : index
    %18 = vector.load %arg4[%c0_7, %c0_8, %c0_9, %c0_10] : memref<1x1x16x128xbf16, #tpu.memory_space<vmem>>, vector<1x1x16x128xbf16>
    %19 = vector.shape_cast %18 : vector<1x1x16x128xbf16> to vector<1x16x128xbf16>
    %20 = vector.extract_strided_slice %19 {offsets = [0, 1, 0], sizes = [1, 1, 128], strides = [1, 1, 1]} : vector<1x16x128xbf16> to vector<1x1x128xbf16>
    %21 = vector.extract_strided_slice %19 {offsets = [0, 0, 0], sizes = [1, 15, 128], strides = [1, 1, 1]} : vector<1x16x128xbf16> to vector<1x15x128xbf16>
    %22 = tpu.concatenate %20, %21 in 1 : vector<1x1x128xbf16>, vector<1x15x128xbf16> -> vector<1x16x128xbf16>
    %23 = vector.extract_strided_slice %19 {offsets = [0, 1, 0], sizes = [1, 15, 128], strides = [1, 1, 1]} : vector<1x16x128xbf16> to vector<1x15x128xbf16>
    %24 = vector.extract_strided_slice %19 {offsets = [0, 14, 0], sizes = [1, 1, 128], strides = [1, 1, 1]} : vector<1x16x128xbf16> to vector<1x1x128xbf16>
    %25 = tpu.concatenate %23, %24 in 1 : vector<1x15x128xbf16>, vector<1x1x128xbf16> -> vector<1x16x128xbf16>
    %26 = tpu.concatenate %22, %19, %25 in 2 : vector<1x16x128xbf16>, vector<1x16x128xbf16>, vector<1x16x128xbf16> -> vector<1x16x384xbf16>
    %27 = vector.extract_strided_slice %8 {offsets = [0, 0, 0], sizes = [2, 16, 384], strides = [1, 1, 1]} : vector<16x16x384xbf16> to vector<2x16x384xbf16>
    %28 = tpu.concatenate %17, %27 in 0 : vector<1x16x384xbf16>, vector<2x16x384xbf16> -> vector<3x16x384xbf16>
    %29 = vector.extract_strided_slice %8 {offsets = [14, 0, 0], sizes = [2, 16, 384], strides = [1, 1, 1]} : vector<16x16x384xbf16> to vector<2x16x384xbf16>
    %30 = tpu.concatenate %29, %26 in 0 : vector<2x16x384xbf16>, vector<1x16x384xbf16> -> vector<3x16x384xbf16>
    %31 = tpu.concatenate %28, %30 in 1 : vector<3x16x384xbf16>, vector<3x16x384xbf16> -> vector<3x32x384xbf16>
    %c0_11 = arith.constant 0 : index
    %c0_12 = arith.constant 0 : index
    %c0_13 = arith.constant 0 : index
    %32 = vector.load %arg5[%c0_11, %c0_12, %c0_13] : memref<3x384x128xbf16, #tpu.memory_space<vmem>>, vector<1x384x128xbf16>
    %33 = vector.shape_cast %32 : vector<1x384x128xbf16> to vector<384x128xbf16>
    %34 = vector.extract_strided_slice %8 {offsets = [0, 0, 0], sizes = [14, 16, 384], strides = [1, 1, 1]} : vector<16x16x384xbf16> to vector<14x16x384xbf16>
    %35 = vector.shape_cast %34 : vector<14x16x384xbf16> to vector<224x384xbf16>
    %cst = arith.constant dense<0.000000e+00> : vector<224x128xf32>
    %36 = tpu.matmul %35, %33, %cst {dimension_numbers = #tpu.dot_dimension_numbers<[1], [0], [0], [1], [0, 0, 1, 1], [], []>} : vector<224x384xbf16>, vector<384x128xbf16>, vector<224x128xf32> -> vector<224x128xf32>
    %37 = vector.extract_strided_slice %31 {offsets = [0, 0, 0], sizes = [1, 32, 384], strides = [1, 1, 1]} : vector<3x32x384xbf16> to vector<1x32x384xbf16>
    %38 = vector.shape_cast %37 : vector<1x32x384xbf16> to vector<32x384xbf16>
    %cst_14 = arith.constant dense<0.000000e+00> : vector<32x128xf32>
    %39 = tpu.matmul %38, %33, %cst_14 {dimension_numbers = #tpu.dot_dimension_numbers<[1], [0], [0], [1], [0, 0, 1, 1], [], []>} : vector<32x384xbf16>, vector<384x128xbf16>, vector<32x128xf32> -> vector<32x128xf32>
    %c1 = arith.constant 1 : index
    %c0_15 = arith.constant 0 : index
    %c0_16 = arith.constant 0 : index
    %40 = vector.load %arg5[%c1, %c0_15, %c0_16] : memref<3x384x128xbf16, #tpu.memory_space<vmem>>, vector<1x384x128xbf16>
    %41 = vector.shape_cast %40 : vector<1x384x128xbf16> to vector<384x128xbf16>
    %42 = vector.extract_strided_slice %8 {offsets = [1, 0, 0], sizes = [14, 16, 384], strides = [1, 1, 1]} : vector<16x16x384xbf16> to vector<14x16x384xbf16>
    %43 = vector.shape_cast %42 : vector<14x16x384xbf16> to vector<224x384xbf16>
    %cst_17 = arith.constant dense<0.000000e+00> : vector<224x128xf32>
    %44 = tpu.matmul %43, %41, %cst_17 {dimension_numbers = #tpu.dot_dimension_numbers<[1], [0], [0], [1], [0, 0, 1, 1], [], []>} : vector<224x384xbf16>, vector<384x128xbf16>, vector<224x128xf32> -> vector<224x128xf32>
    %45 = vector.extract_strided_slice %31 {offsets = [1, 0, 0], sizes = [1, 32, 384], strides = [1, 1, 1]} : vector<3x32x384xbf16> to vector<1x32x384xbf16>
    %46 = vector.shape_cast %45 : vector<1x32x384xbf16> to vector<32x384xbf16>
    %cst_18 = arith.constant dense<0.000000e+00> : vector<32x128xf32>
    %47 = tpu.matmul %46, %41, %cst_18 {dimension_numbers = #tpu.dot_dimension_numbers<[1], [0], [0], [1], [0, 0, 1, 1], [], []>} : vector<32x384xbf16>, vector<384x128xbf16>, vector<32x128xf32> -> vector<32x128xf32>
    %48 = arith.addf %36, %44 : vector<224x128xf32>
    %49 = arith.addf %39, %47 : vector<32x128xf32>
    %c2 = arith.constant 2 : index
    %c0_19 = arith.constant 0 : index
    %c0_20 = arith.constant 0 : index
    %50 = vector.load %arg5[%c2, %c0_19, %c0_20] : memref<3x384x128xbf16, #tpu.memory_space<vmem>>, vector<1x384x128xbf16>
    %51 = vector.shape_cast %50 : vector<1x384x128xbf16> to vector<384x128xbf16>
    %52 = vector.extract_strided_slice %8 {offsets = [2, 0, 0], sizes = [14, 16, 384], strides = [1, 1, 1]} : vector<16x16x384xbf16> to vector<14x16x384xbf16>
    %53 = vector.shape_cast %52 : vector<14x16x384xbf16> to vector<224x384xbf16>
    %cst_21 = arith.constant dense<0.000000e+00> : vector<224x128xf32>
    %54 = tpu.matmul %53, %51, %cst_21 {dimension_numbers = #tpu.dot_dimension_numbers<[1], [0], [0], [1], [0, 0, 1, 1], [], []>} : vector<224x384xbf16>, vector<384x128xbf16>, vector<224x128xf32> -> vector<224x128xf32>
    %55 = vector.extract_strided_slice %31 {offsets = [2, 0, 0], sizes = [1, 32, 384], strides = [1, 1, 1]} : vector<3x32x384xbf16> to vector<1x32x384xbf16>
    %56 = vector.shape_cast %55 : vector<1x32x384xbf16> to vector<32x384xbf16>
    %cst_22 = arith.constant dense<0.000000e+00> : vector<32x128xf32>
    %57 = tpu.matmul %56, %51, %cst_22 {dimension_numbers = #tpu.dot_dimension_numbers<[1], [0], [0], [1], [0, 0, 1, 1], [], []>} : vector<32x384xbf16>, vector<384x128xbf16>, vector<32x128xf32> -> vector<32x128xf32>
    %58 = arith.addf %48, %54 : vector<224x128xf32>
    %59 = arith.addf %49, %57 : vector<32x128xf32>
    %60 = vector.shape_cast %58 : vector<224x128xf32> to vector<14x16x128xf32>
    %61 = arith.truncf %60 : vector<14x16x128xf32> to vector<14x16x128xbf16>
    %c0_23 = arith.constant 0 : index
    %c1_24 = arith.constant 1 : index
    %c0_25 = arith.constant 0 : index
    %c0_26 = arith.constant 0 : index
    %62 = vector.load %arg8[%c0_23, %c1_24, %c0_25, %c0_26] : memref<1x16x16x128xbf16, #tpu.memory_space<vmem>>, vector<1x14x16x128xbf16>
    %63 = vector.shape_cast %62 : vector<1x14x16x128xbf16> to vector<14x16x128xbf16>
    %64 = vector.shape_cast %61 : vector<14x16x128xbf16> to vector<1x14x16x128xbf16>
    tpu.vector_store %arg8[%c0_23, %c1_24, %c0_25, %c0_26], %64 {strides = array<i32>} : memref<1x16x16x128xbf16, #tpu.memory_space<vmem>>, vector<1x14x16x128xbf16>,
    %65 = vector.extract_strided_slice %59 {offsets = [0, 0], sizes = [16, 128], strides = [1, 1]} : vector<32x128xf32> to vector<16x128xf32>
    %66 = arith.truncf %65 : vector<16x128xf32> to vector<16x128xbf16>
    %c0_27 = arith.constant 0 : index
    %c0_28 = arith.constant 0 : index
    %c0_29 = arith.constant 0 : index
    %c0_30 = arith.constant 0 : index
    %67 = vector.load %arg8[%c0_27, %c0_28, %c0_29, %c0_30] : memref<1x16x16x128xbf16, #tpu.memory_space<vmem>>, vector<1x1x16x128xbf16>
    %68 = vector.shape_cast %67 : vector<1x1x16x128xbf16> to vector<16x128xbf16>
    %69 = vector.shape_cast %66 : vector<16x128xbf16> to vector<1x1x16x128xbf16>
    tpu.vector_store %arg8[%c0_27, %c0_28, %c0_29, %c0_30], %69 {strides = array<i32>} : memref<1x16x16x128xbf16, #tpu.memory_space<vmem>>, vector<1x1x16x128xbf16>,
    %70 = vector.extract_strided_slice %59 {offsets = [16, 0], sizes = [16, 128], strides = [1, 1]} : vector<32x128xf32> to vector<16x128xf32>
    %71 = arith.truncf %70 : vector<16x128xf32> to vector<16x128xbf16>
    %c0_31 = arith.constant 0 : index
    %c15 = arith.constant 15 : index
    %c0_32 = arith.constant 0 : index
    %c0_33 = arith.constant 0 : index
    %72 = vector.load %arg8[%c0_31, %c15, %c0_32, %c0_33] : memref<1x16x16x128xbf16, #tpu.memory_space<vmem>>, vector<1x1x16x128xbf16>
    %73 = vector.shape_cast %72 : vector<1x1x16x128xbf16> to vector<16x128xbf16>
    %74 = vector.shape_cast %71 : vector<16x128xbf16> to vector<1x1x16x128xbf16>
    tpu.vector_store %arg8[%c0_31, %c15, %c0_32, %c0_33], %74 {strides = array<i32>} : memref<1x16x16x128xbf16, #tpu.memory_space<vmem>>, vector<1x1x16x128xbf16>,
    %cst_34 = arith.constant dense<0.000000e+00> : vector<128xf32>
    %75 = vector.multi_reduction <add>, %58, %cst_34 [0] : vector<224x128xf32> to vector<128xf32>
    %cst_35 = arith.constant dense<0.000000e+00> : vector<128xf32>
    %76 = vector.multi_reduction <add>, %59, %cst_35 [0] : vector<32x128xf32> to vector<128xf32>
    %77 = arith.addf %75, %76 : vector<128xf32>
    %78 = arith.mulf %58, %58 : vector<224x128xf32>
    %cst_36 = arith.constant dense<0.000000e+00> : vector<128xf32>
    %79 = vector.multi_reduction <add>, %78, %cst_36 [0] : vector<224x128xf32> to vector<128xf32>
    %80 = arith.mulf %59, %59 : vector<32x128xf32>
    %cst_37 = arith.constant dense<0.000000e+00> : vector<128xf32>
    %81 = vector.multi_reduction <add>, %80, %cst_37 [0] : vector<32x128xf32> to vector<128xf32>
    %82 = arith.addf %79, %81 : vector<128xf32>
    %83 = vector.shape_cast %77 : vector<128xf32> to vector<1x1x1x128xf32>
    %c0_38 = arith.constant 0 : index
    %c0_39 = arith.constant 0 : index
    %c0_40 = arith.constant 0 : index
    %c0_41 = arith.constant 0 : index
    %84 = vector.load %arg9[%c0_38, %c0_39, %c0_40, %c0_41] : memref<1x1x1x128xf32, #tpu.memory_space<vmem>>, vector<1x1x1x128xf32>
    tpu.vector_store %arg9[%c0_38, %c0_39, %c0_40, %c0_41], %83 {strides = array<i32>} : memref<1x1x1x128xf32, #tpu.memory_space<vmem>>, vector<1x1x1x128xf32>,
    %85 = vector.shape_cast %82 : vector<128xf32> to vector<1x1x1x128xf32>
    %c0_42 = arith.constant 0 : index
    %c0_43 = arith.constant 0 : index
    %c0_44 = arith.constant 0 : index
    %c0_45 = arith.constant 0 : index
    %86 = vector.load %arg10[%c0_42, %c0_43, %c0_44, %c0_45] : memref<1x1x1x128xf32, #tpu.memory_space<vmem>>, vector<1x1x1x128xf32>
    tpu.vector_store %arg10[%c0_42, %c0_43, %c0_44, %c0_45], %85 {strides = array<i32>} : memref<1x1x1x128xf32, #tpu.memory_space<vmem>>, vector<1x1x1x128xf32>,
    return
  }
  func.func @transform_0(%arg0: i32, %arg1: i32) -> (i32, i32, i32, i32) {
    %c0_i32 = arith.constant 0 : i32
    %c0_i32_0 = arith.constant 0 : i32
    %c0_i32_1 = arith.constant 0 : i32
    return %arg0, %arg1, %c0_i32, %c0_i32_0 : i32, i32, i32, i32
  }
  func.func @transform_1(%arg0: i32, %arg1: i32) -> (i32, i32, i32, i32) {
    %c16_i32 = arith.constant 16 : i32
    %0 = arith.muli %arg1, %c16_i32 : i32
    %c1_i32 = arith.constant 1 : i32
    %1 = arith.subi %0, %c1_i32 : i32
    %2 = math.absi %1 : i32
    %c0_i32 = arith.constant 0 : i32
    %c0_i32_0 = arith.constant 0 : i32
    %c0_i32_1 = arith.constant 0 : i32
    return %arg0, %2, %c0_i32, %c0_i32_0 : i32, i32, i32, i32
  }
  func.func @transform_2(%arg0: i32, %arg1: i32) -> (i32, i32, i32, i32) {
    %c1_i32 = arith.constant 1 : i32
    %0 = arith.addi %arg1, %c1_i32 : i32
    %c16_i32 = arith.constant 16 : i32
    %1 = arith.muli %0, %c16_i32 : i32
    %c15_i32 = arith.constant 15 : i32
    %2 = arith.subi %1, %c15_i32 : i32
    %3 = math.absi %2 : i32
    %c15_i32_0 = arith.constant 15 : i32
    %4 = arith.subi %c15_i32_0, %3 : i32
    %c0_i32 = arith.constant 0 : i32
    %c0_i32_1 = arith.constant 0 : i32
    %c0_i32_2 = arith.constant 0 : i32
    return %arg0, %4, %c0_i32, %c0_i32_1 : i32, i32, i32, i32
  }
  func.func @transform_3(%arg0: i32, %arg1: i32) -> (i32, i32, i32) {
    %c0_i32 = arith.constant 0 : i32
    %c0_i32_0 = arith.constant 0 : i32
    %c0_i32_1 = arith.constant 0 : i32
    %c0_i32_2 = arith.constant 0 : i32
    return %c0_i32, %c0_i32_0, %c0_i32_1 : i32, i32, i32
  }
  func.func @transform_4(%arg0: i32, %arg1: i32) -> (i32, i32, i32) {
    %c0_i32 = arith.constant 0 : i32
    %c0_i32_0 = arith.constant 0 : i32
    %c0_i32_1 = arith.constant 0 : i32
    %c0_i32_2 = arith.constant 0 : i32
    return %c0_i32, %c0_i32_0, %c0_i32_1 : i32, i32, i32
  }
  func.func @transform_5(%arg0: i32, %arg1: i32) -> (i32, i32, i32) {
    %c0_i32 = arith.constant 0 : i32
    %c0_i32_0 = arith.constant 0 : i32
    %c0_i32_1 = arith.constant 0 : i32
    %c0_i32_2 = arith.constant 0 : i32
    return %c0_i32, %c0_i32_0, %c0_i32_1 : i32, i32, i32
  }
  func.func @transform_6(%arg0: i32, %arg1: i32) -> (i32, i32, i32, i32) {
    %c0_i32 = arith.constant 0 : i32
    %c0_i32_0 = arith.constant 0 : i32
    %c0_i32_1 = arith.constant 0 : i32
    return %arg0, %arg1, %c0_i32, %c0_i32_0 : i32, i32, i32, i32
  }
  func.func @transform_7(%arg0: i32, %arg1: i32) -> (i32, i32, i32, i32) {
    %c0_i32 = arith.constant 0 : i32
    %c0_i32_0 = arith.constant 0 : i32
    %c0_i32_1 = arith.constant 0 : i32
    return %arg0, %arg1, %c0_i32, %c0_i32_0 : i32, i32, i32, i32
  }
  func.func @transform_8(%arg0: i32, %arg1: i32) -> (i32, i32, i32, i32) {
    %c0_i32 = arith.constant 0 : i32
    %c0_i32_0 = arith.constant 0 : i32
    %c0_i32_1 = arith.constant 0 : i32
    return %arg0, %arg1, %c0_i32, %c0_i32_0 : i32, i32, i32, i32
  }
}

module attributes {stable_mosaic.version = 11 : i64} {
  func.func @_conv_bn_stats_kernel(%arg0: i32, %arg1: i32, %arg2: memref<1x16x16x128xbf16, #tpu.memory_space<vmem>>, %arg3: memref<1x1x16x128xbf16, #tpu.memory_space<vmem>>, %arg4: memref<1x1x16x128xbf16, #tpu.memory_space<vmem>>, %arg5: memref<3x384x128xbf16, #tpu.memory_space<vmem>>, %arg6: memref<1x1x128xbf16, #tpu.memory_space<vmem>>, %arg7: memref<1x1x128xbf16, #tpu.memory_space<vmem>>, %arg8: memref<1x16x16x128xbf16, #tpu.memory_space<vmem>>, %arg9: memref<1x1x1x128xf32, #tpu.memory_space<vmem>>, %arg10: memref<1x1x1x128xf32, #tpu.memory_space<vmem>>) attributes {dimension_semantics = [#tpu.dimension_semantics<parallel>, #tpu.dimension_semantics<parallel>], iteration_bounds = array<i64: 2, 1>, scalar_prefetch = 0 : i64, scratch_operands = 0 : i64, tpu.core_type = #tpu.core_type<tc>, window_params = [{transform_indices = @transform_0, window_bounds = array<i64: 1, 16, 16, 128>}, {transform_indices = @transform_1, window_bounds = array<i64: 1, 1, 16, 128>}, {transform_indices = @transform_2, window_bounds = array<i64: 1, 1, 16, 128>}, {pipeline_mode = #tpu.pipeline_mode<synchronous>, transform_indices = @transform_3, window_bounds = array<i64: 3, 384, 128>}, {pipeline_mode = #tpu.pipeline_mode<synchronous>, transform_indices = @transform_4, window_bounds = array<i64: 1, 1, 128>}, {pipeline_mode = #tpu.pipeline_mode<synchronous>, transform_indices = @transform_5, window_bounds = array<i64: 1, 1, 128>}, {transform_indices = @transform_6, window_bounds = array<i64: 1, 16, 16, 128>}, {transform_indices = @transform_7, window_bounds = array<i64: 1, 1, 1, 128>}, {transform_indices = @transform_8, window_bounds = array<i64: 1, 1, 1, 128>}]} {
    %c0 = arith.constant 0 : index
    %c0_0 = arith.constant 0 : index
    %c0_1 = arith.constant 0 : index
    %0 = vector.load %arg6[%c0, %c0_0, %c0_1] : memref<1x1x128xbf16, #tpu.memory_space<vmem>>, vector<1x1x128xbf16>
    %c0_2 = arith.constant 0 : index
    %c0_3 = arith.constant 0 : index
    %c0_4 = arith.constant 0 : index
    %1 = vector.load %arg7[%c0_2, %c0_3, %c0_4] : memref<1x1x128xbf16, #tpu.memory_space<vmem>>, vector<1x1x128xbf16>
    %c0_5 = arith.constant 0 : index
    %c0_6 = arith.constant 0 : index
    %c0_7 = arith.constant 0 : index
    %c0_8 = arith.constant 0 : index
    %2 = vector.load %arg2[%c0_5, %c0_6, %c0_7, %c0_8] : memref<1x16x16x128xbf16, #tpu.memory_space<vmem>>, vector<1x16x16x128xbf16>
    %3 = vector.shape_cast %2 : vector<1x16x16x128xbf16> to vector<16x16x128xbf16>
    %4 = vector.broadcast %0 : vector<1x1x128xbf16> to vector<16x16x128xbf16>
    %5 = arith.mulf %3, %4 : vector<16x16x128xbf16>
    %6 = vector.broadcast %1 : vector<1x1x128xbf16> to vector<16x16x128xbf16>
    %7 = arith.addf %5, %6 : vector<16x16x128xbf16>
    %cst = arith.constant 0.000000e+00 : bf16
    %8 = vector.broadcast %cst : bf16 to vector<16x16x128xbf16>
    %9 = arith.maximumf %7, %8 : vector<16x16x128xbf16>
    %10 = vector.extract_strided_slice %9 {offsets = [0, 1, 0], sizes = [16, 1, 128], strides = [1, 1, 1]} : vector<16x16x128xbf16> to vector<16x1x128xbf16>
    %11 = vector.extract_strided_slice %9 {offsets = [0, 0, 0], sizes = [16, 15, 128], strides = [1, 1, 1]} : vector<16x16x128xbf16> to vector<16x15x128xbf16>
    %12 = tpu.concatenate %10, %11 in 1 : vector<16x1x128xbf16>, vector<16x15x128xbf16> -> vector<16x16x128xbf16>
    %13 = vector.extract_strided_slice %9 {offsets = [0, 1, 0], sizes = [16, 15, 128], strides = [1, 1, 1]} : vector<16x16x128xbf16> to vector<16x15x128xbf16>
    %14 = vector.extract_strided_slice %9 {offsets = [0, 14, 0], sizes = [16, 1, 128], strides = [1, 1, 1]} : vector<16x16x128xbf16> to vector<16x1x128xbf16>
    %15 = tpu.concatenate %13, %14 in 1 : vector<16x15x128xbf16>, vector<16x1x128xbf16> -> vector<16x16x128xbf16>
    %16 = tpu.concatenate %12, %9, %15 in 2 : vector<16x16x128xbf16>, vector<16x16x128xbf16>, vector<16x16x128xbf16> -> vector<16x16x384xbf16>
    %c0_9 = arith.constant 0 : index
    %c0_10 = arith.constant 0 : index
    %c0_11 = arith.constant 0 : index
    %c0_12 = arith.constant 0 : index
    %17 = vector.load %arg3[%c0_9, %c0_10, %c0_11, %c0_12] : memref<1x1x16x128xbf16, #tpu.memory_space<vmem>>, vector<1x1x16x128xbf16>
    %18 = vector.shape_cast %17 : vector<1x1x16x128xbf16> to vector<1x16x128xbf16>
    %19 = vector.broadcast %0 : vector<1x1x128xbf16> to vector<1x16x128xbf16>
    %20 = arith.mulf %18, %19 : vector<1x16x128xbf16>
    %21 = vector.broadcast %1 : vector<1x1x128xbf16> to vector<1x16x128xbf16>
    %22 = arith.addf %20, %21 : vector<1x16x128xbf16>
    %cst_13 = arith.constant 0.000000e+00 : bf16
    %23 = vector.broadcast %cst_13 : bf16 to vector<1x16x128xbf16>
    %24 = arith.maximumf %22, %23 : vector<1x16x128xbf16>
    %25 = vector.extract_strided_slice %24 {offsets = [0, 1, 0], sizes = [1, 1, 128], strides = [1, 1, 1]} : vector<1x16x128xbf16> to vector<1x1x128xbf16>
    %26 = vector.extract_strided_slice %24 {offsets = [0, 0, 0], sizes = [1, 15, 128], strides = [1, 1, 1]} : vector<1x16x128xbf16> to vector<1x15x128xbf16>
    %27 = tpu.concatenate %25, %26 in 1 : vector<1x1x128xbf16>, vector<1x15x128xbf16> -> vector<1x16x128xbf16>
    %28 = vector.extract_strided_slice %24 {offsets = [0, 1, 0], sizes = [1, 15, 128], strides = [1, 1, 1]} : vector<1x16x128xbf16> to vector<1x15x128xbf16>
    %29 = vector.extract_strided_slice %24 {offsets = [0, 14, 0], sizes = [1, 1, 128], strides = [1, 1, 1]} : vector<1x16x128xbf16> to vector<1x1x128xbf16>
    %30 = tpu.concatenate %28, %29 in 1 : vector<1x15x128xbf16>, vector<1x1x128xbf16> -> vector<1x16x128xbf16>
    %31 = tpu.concatenate %27, %24, %30 in 2 : vector<1x16x128xbf16>, vector<1x16x128xbf16>, vector<1x16x128xbf16> -> vector<1x16x384xbf16>
    %c0_14 = arith.constant 0 : index
    %c0_15 = arith.constant 0 : index
    %c0_16 = arith.constant 0 : index
    %c0_17 = arith.constant 0 : index
    %32 = vector.load %arg4[%c0_14, %c0_15, %c0_16, %c0_17] : memref<1x1x16x128xbf16, #tpu.memory_space<vmem>>, vector<1x1x16x128xbf16>
    %33 = vector.shape_cast %32 : vector<1x1x16x128xbf16> to vector<1x16x128xbf16>
    %34 = vector.broadcast %0 : vector<1x1x128xbf16> to vector<1x16x128xbf16>
    %35 = arith.mulf %33, %34 : vector<1x16x128xbf16>
    %36 = vector.broadcast %1 : vector<1x1x128xbf16> to vector<1x16x128xbf16>
    %37 = arith.addf %35, %36 : vector<1x16x128xbf16>
    %cst_18 = arith.constant 0.000000e+00 : bf16
    %38 = vector.broadcast %cst_18 : bf16 to vector<1x16x128xbf16>
    %39 = arith.maximumf %37, %38 : vector<1x16x128xbf16>
    %40 = vector.extract_strided_slice %39 {offsets = [0, 1, 0], sizes = [1, 1, 128], strides = [1, 1, 1]} : vector<1x16x128xbf16> to vector<1x1x128xbf16>
    %41 = vector.extract_strided_slice %39 {offsets = [0, 0, 0], sizes = [1, 15, 128], strides = [1, 1, 1]} : vector<1x16x128xbf16> to vector<1x15x128xbf16>
    %42 = tpu.concatenate %40, %41 in 1 : vector<1x1x128xbf16>, vector<1x15x128xbf16> -> vector<1x16x128xbf16>
    %43 = vector.extract_strided_slice %39 {offsets = [0, 1, 0], sizes = [1, 15, 128], strides = [1, 1, 1]} : vector<1x16x128xbf16> to vector<1x15x128xbf16>
    %44 = vector.extract_strided_slice %39 {offsets = [0, 14, 0], sizes = [1, 1, 128], strides = [1, 1, 1]} : vector<1x16x128xbf16> to vector<1x1x128xbf16>
    %45 = tpu.concatenate %43, %44 in 1 : vector<1x15x128xbf16>, vector<1x1x128xbf16> -> vector<1x16x128xbf16>
    %46 = tpu.concatenate %42, %39, %45 in 2 : vector<1x16x128xbf16>, vector<1x16x128xbf16>, vector<1x16x128xbf16> -> vector<1x16x384xbf16>
    %47 = vector.extract_strided_slice %16 {offsets = [0, 0, 0], sizes = [2, 16, 384], strides = [1, 1, 1]} : vector<16x16x384xbf16> to vector<2x16x384xbf16>
    %48 = tpu.concatenate %31, %47 in 0 : vector<1x16x384xbf16>, vector<2x16x384xbf16> -> vector<3x16x384xbf16>
    %49 = vector.extract_strided_slice %16 {offsets = [14, 0, 0], sizes = [2, 16, 384], strides = [1, 1, 1]} : vector<16x16x384xbf16> to vector<2x16x384xbf16>
    %50 = tpu.concatenate %49, %46 in 0 : vector<2x16x384xbf16>, vector<1x16x384xbf16> -> vector<3x16x384xbf16>
    %51 = tpu.concatenate %48, %50 in 1 : vector<3x16x384xbf16>, vector<3x16x384xbf16> -> vector<3x32x384xbf16>
    %c0_19 = arith.constant 0 : index
    %c0_20 = arith.constant 0 : index
    %c0_21 = arith.constant 0 : index
    %52 = vector.load %arg5[%c0_19, %c0_20, %c0_21] : memref<3x384x128xbf16, #tpu.memory_space<vmem>>, vector<1x384x128xbf16>
    %53 = vector.shape_cast %52 : vector<1x384x128xbf16> to vector<384x128xbf16>
    %54 = vector.extract_strided_slice %16 {offsets = [0, 0, 0], sizes = [14, 16, 384], strides = [1, 1, 1]} : vector<16x16x384xbf16> to vector<14x16x384xbf16>
    %55 = vector.shape_cast %54 : vector<14x16x384xbf16> to vector<224x384xbf16>
    %cst_22 = arith.constant dense<0.000000e+00> : vector<224x128xf32>
    %56 = tpu.matmul %55, %53, %cst_22 {dimension_numbers = #tpu.dot_dimension_numbers<[1], [0], [0], [1], [0, 0, 1, 1], [], []>} : vector<224x384xbf16>, vector<384x128xbf16>, vector<224x128xf32> -> vector<224x128xf32>
    %57 = vector.extract_strided_slice %51 {offsets = [0, 0, 0], sizes = [1, 32, 384], strides = [1, 1, 1]} : vector<3x32x384xbf16> to vector<1x32x384xbf16>
    %58 = vector.shape_cast %57 : vector<1x32x384xbf16> to vector<32x384xbf16>
    %cst_23 = arith.constant dense<0.000000e+00> : vector<32x128xf32>
    %59 = tpu.matmul %58, %53, %cst_23 {dimension_numbers = #tpu.dot_dimension_numbers<[1], [0], [0], [1], [0, 0, 1, 1], [], []>} : vector<32x384xbf16>, vector<384x128xbf16>, vector<32x128xf32> -> vector<32x128xf32>
    %c1 = arith.constant 1 : index
    %c0_24 = arith.constant 0 : index
    %c0_25 = arith.constant 0 : index
    %60 = vector.load %arg5[%c1, %c0_24, %c0_25] : memref<3x384x128xbf16, #tpu.memory_space<vmem>>, vector<1x384x128xbf16>
    %61 = vector.shape_cast %60 : vector<1x384x128xbf16> to vector<384x128xbf16>
    %62 = vector.extract_strided_slice %16 {offsets = [1, 0, 0], sizes = [14, 16, 384], strides = [1, 1, 1]} : vector<16x16x384xbf16> to vector<14x16x384xbf16>
    %63 = vector.shape_cast %62 : vector<14x16x384xbf16> to vector<224x384xbf16>
    %cst_26 = arith.constant dense<0.000000e+00> : vector<224x128xf32>
    %64 = tpu.matmul %63, %61, %cst_26 {dimension_numbers = #tpu.dot_dimension_numbers<[1], [0], [0], [1], [0, 0, 1, 1], [], []>} : vector<224x384xbf16>, vector<384x128xbf16>, vector<224x128xf32> -> vector<224x128xf32>
    %65 = vector.extract_strided_slice %51 {offsets = [1, 0, 0], sizes = [1, 32, 384], strides = [1, 1, 1]} : vector<3x32x384xbf16> to vector<1x32x384xbf16>
    %66 = vector.shape_cast %65 : vector<1x32x384xbf16> to vector<32x384xbf16>
    %cst_27 = arith.constant dense<0.000000e+00> : vector<32x128xf32>
    %67 = tpu.matmul %66, %61, %cst_27 {dimension_numbers = #tpu.dot_dimension_numbers<[1], [0], [0], [1], [0, 0, 1, 1], [], []>} : vector<32x384xbf16>, vector<384x128xbf16>, vector<32x128xf32> -> vector<32x128xf32>
    %68 = arith.addf %56, %64 : vector<224x128xf32>
    %69 = arith.addf %59, %67 : vector<32x128xf32>
    %c2 = arith.constant 2 : index
    %c0_28 = arith.constant 0 : index
    %c0_29 = arith.constant 0 : index
    %70 = vector.load %arg5[%c2, %c0_28, %c0_29] : memref<3x384x128xbf16, #tpu.memory_space<vmem>>, vector<1x384x128xbf16>
    %71 = vector.shape_cast %70 : vector<1x384x128xbf16> to vector<384x128xbf16>
    %72 = vector.extract_strided_slice %16 {offsets = [2, 0, 0], sizes = [14, 16, 384], strides = [1, 1, 1]} : vector<16x16x384xbf16> to vector<14x16x384xbf16>
    %73 = vector.shape_cast %72 : vector<14x16x384xbf16> to vector<224x384xbf16>
    %cst_30 = arith.constant dense<0.000000e+00> : vector<224x128xf32>
    %74 = tpu.matmul %73, %71, %cst_30 {dimension_numbers = #tpu.dot_dimension_numbers<[1], [0], [0], [1], [0, 0, 1, 1], [], []>} : vector<224x384xbf16>, vector<384x128xbf16>, vector<224x128xf32> -> vector<224x128xf32>
    %75 = vector.extract_strided_slice %51 {offsets = [2, 0, 0], sizes = [1, 32, 384], strides = [1, 1, 1]} : vector<3x32x384xbf16> to vector<1x32x384xbf16>
    %76 = vector.shape_cast %75 : vector<1x32x384xbf16> to vector<32x384xbf16>
    %cst_31 = arith.constant dense<0.000000e+00> : vector<32x128xf32>
    %77 = tpu.matmul %76, %71, %cst_31 {dimension_numbers = #tpu.dot_dimension_numbers<[1], [0], [0], [1], [0, 0, 1, 1], [], []>} : vector<32x384xbf16>, vector<384x128xbf16>, vector<32x128xf32> -> vector<32x128xf32>
    %78 = arith.addf %68, %74 : vector<224x128xf32>
    %79 = arith.addf %69, %77 : vector<32x128xf32>
    %80 = vector.shape_cast %78 : vector<224x128xf32> to vector<14x16x128xf32>
    %81 = arith.truncf %80 : vector<14x16x128xf32> to vector<14x16x128xbf16>
    %c0_32 = arith.constant 0 : index
    %c1_33 = arith.constant 1 : index
    %c0_34 = arith.constant 0 : index
    %c0_35 = arith.constant 0 : index
    %82 = vector.load %arg8[%c0_32, %c1_33, %c0_34, %c0_35] : memref<1x16x16x128xbf16, #tpu.memory_space<vmem>>, vector<1x14x16x128xbf16>
    %83 = vector.shape_cast %82 : vector<1x14x16x128xbf16> to vector<14x16x128xbf16>
    %84 = vector.shape_cast %81 : vector<14x16x128xbf16> to vector<1x14x16x128xbf16>
    tpu.vector_store %arg8[%c0_32, %c1_33, %c0_34, %c0_35], %84 {strides = array<i32>} : memref<1x16x16x128xbf16, #tpu.memory_space<vmem>>, vector<1x14x16x128xbf16>,
    %85 = vector.extract_strided_slice %79 {offsets = [0, 0], sizes = [16, 128], strides = [1, 1]} : vector<32x128xf32> to vector<16x128xf32>
    %86 = arith.truncf %85 : vector<16x128xf32> to vector<16x128xbf16>
    %c0_36 = arith.constant 0 : index
    %c0_37 = arith.constant 0 : index
    %c0_38 = arith.constant 0 : index
    %c0_39 = arith.constant 0 : index
    %87 = vector.load %arg8[%c0_36, %c0_37, %c0_38, %c0_39] : memref<1x16x16x128xbf16, #tpu.memory_space<vmem>>, vector<1x1x16x128xbf16>
    %88 = vector.shape_cast %87 : vector<1x1x16x128xbf16> to vector<16x128xbf16>
    %89 = vector.shape_cast %86 : vector<16x128xbf16> to vector<1x1x16x128xbf16>
    tpu.vector_store %arg8[%c0_36, %c0_37, %c0_38, %c0_39], %89 {strides = array<i32>} : memref<1x16x16x128xbf16, #tpu.memory_space<vmem>>, vector<1x1x16x128xbf16>,
    %90 = vector.extract_strided_slice %79 {offsets = [16, 0], sizes = [16, 128], strides = [1, 1]} : vector<32x128xf32> to vector<16x128xf32>
    %91 = arith.truncf %90 : vector<16x128xf32> to vector<16x128xbf16>
    %c0_40 = arith.constant 0 : index
    %c15 = arith.constant 15 : index
    %c0_41 = arith.constant 0 : index
    %c0_42 = arith.constant 0 : index
    %92 = vector.load %arg8[%c0_40, %c15, %c0_41, %c0_42] : memref<1x16x16x128xbf16, #tpu.memory_space<vmem>>, vector<1x1x16x128xbf16>
    %93 = vector.shape_cast %92 : vector<1x1x16x128xbf16> to vector<16x128xbf16>
    %94 = vector.shape_cast %91 : vector<16x128xbf16> to vector<1x1x16x128xbf16>
    tpu.vector_store %arg8[%c0_40, %c15, %c0_41, %c0_42], %94 {strides = array<i32>} : memref<1x16x16x128xbf16, #tpu.memory_space<vmem>>, vector<1x1x16x128xbf16>,
    %cst_43 = arith.constant dense<0.000000e+00> : vector<128xf32>
    %95 = vector.multi_reduction <add>, %78, %cst_43 [0] : vector<224x128xf32> to vector<128xf32>
    %cst_44 = arith.constant dense<0.000000e+00> : vector<128xf32>
    %96 = vector.multi_reduction <add>, %79, %cst_44 [0] : vector<32x128xf32> to vector<128xf32>
    %97 = arith.addf %95, %96 : vector<128xf32>
    %98 = arith.mulf %78, %78 : vector<224x128xf32>
    %cst_45 = arith.constant dense<0.000000e+00> : vector<128xf32>
    %99 = vector.multi_reduction <add>, %98, %cst_45 [0] : vector<224x128xf32> to vector<128xf32>
    %100 = arith.mulf %79, %79 : vector<32x128xf32>
    %cst_46 = arith.constant dense<0.000000e+00> : vector<128xf32>
    %101 = vector.multi_reduction <add>, %100, %cst_46 [0] : vector<32x128xf32> to vector<128xf32>
    %102 = arith.addf %99, %101 : vector<128xf32>
    %103 = vector.shape_cast %97 : vector<128xf32> to vector<1x1x1x128xf32>
    %c0_47 = arith.constant 0 : index
    %c0_48 = arith.constant 0 : index
    %c0_49 = arith.constant 0 : index
    %c0_50 = arith.constant 0 : index
    %104 = vector.load %arg9[%c0_47, %c0_48, %c0_49, %c0_50] : memref<1x1x1x128xf32, #tpu.memory_space<vmem>>, vector<1x1x1x128xf32>
    tpu.vector_store %arg9[%c0_47, %c0_48, %c0_49, %c0_50], %103 {strides = array<i32>} : memref<1x1x1x128xf32, #tpu.memory_space<vmem>>, vector<1x1x1x128xf32>,
    %105 = vector.shape_cast %102 : vector<128xf32> to vector<1x1x1x128xf32>
    %c0_51 = arith.constant 0 : index
    %c0_52 = arith.constant 0 : index
    %c0_53 = arith.constant 0 : index
    %c0_54 = arith.constant 0 : index
    %106 = vector.load %arg10[%c0_51, %c0_52, %c0_53, %c0_54] : memref<1x1x1x128xf32, #tpu.memory_space<vmem>>, vector<1x1x1x128xf32>
    tpu.vector_store %arg10[%c0_51, %c0_52, %c0_53, %c0_54], %105 {strides = array<i32>} : memref<1x1x1x128xf32, #tpu.memory_space<vmem>>, vector<1x1x1x128xf32>,
    return
  }
  func.func @transform_0(%arg0: i32, %arg1: i32) -> (i32, i32, i32, i32) {
    %c0_i32 = arith.constant 0 : i32
    %c0_i32_0 = arith.constant 0 : i32
    %c0_i32_1 = arith.constant 0 : i32
    return %arg0, %arg1, %c0_i32, %c0_i32_0 : i32, i32, i32, i32
  }
  func.func @transform_1(%arg0: i32, %arg1: i32) -> (i32, i32, i32, i32) {
    %c16_i32 = arith.constant 16 : i32
    %0 = arith.muli %arg1, %c16_i32 : i32
    %c1_i32 = arith.constant 1 : i32
    %1 = arith.subi %0, %c1_i32 : i32
    %2 = math.absi %1 : i32
    %c0_i32 = arith.constant 0 : i32
    %c0_i32_0 = arith.constant 0 : i32
    %c0_i32_1 = arith.constant 0 : i32
    return %arg0, %2, %c0_i32, %c0_i32_0 : i32, i32, i32, i32
  }
  func.func @transform_2(%arg0: i32, %arg1: i32) -> (i32, i32, i32, i32) {
    %c1_i32 = arith.constant 1 : i32
    %0 = arith.addi %arg1, %c1_i32 : i32
    %c16_i32 = arith.constant 16 : i32
    %1 = arith.muli %0, %c16_i32 : i32
    %c15_i32 = arith.constant 15 : i32
    %2 = arith.subi %1, %c15_i32 : i32
    %3 = math.absi %2 : i32
    %c15_i32_0 = arith.constant 15 : i32
    %4 = arith.subi %c15_i32_0, %3 : i32
    %c0_i32 = arith.constant 0 : i32
    %c0_i32_1 = arith.constant 0 : i32
    %c0_i32_2 = arith.constant 0 : i32
    return %arg0, %4, %c0_i32, %c0_i32_1 : i32, i32, i32, i32
  }
  func.func @transform_3(%arg0: i32, %arg1: i32) -> (i32, i32, i32) {
    %c0_i32 = arith.constant 0 : i32
    %c0_i32_0 = arith.constant 0 : i32
    %c0_i32_1 = arith.constant 0 : i32
    %c0_i32_2 = arith.constant 0 : i32
    return %c0_i32, %c0_i32_0, %c0_i32_1 : i32, i32, i32
  }
  func.func @transform_4(%arg0: i32, %arg1: i32) -> (i32, i32, i32) {
    %c0_i32 = arith.constant 0 : i32
    %c0_i32_0 = arith.constant 0 : i32
    %c0_i32_1 = arith.constant 0 : i32
    %c0_i32_2 = arith.constant 0 : i32
    return %c0_i32, %c0_i32_0, %c0_i32_1 : i32, i32, i32
  }
  func.func @transform_5(%arg0: i32, %arg1: i32) -> (i32, i32, i32) {
    %c0_i32 = arith.constant 0 : i32
    %c0_i32_0 = arith.constant 0 : i32
    %c0_i32_1 = arith.constant 0 : i32
    %c0_i32_2 = arith.constant 0 : i32
    return %c0_i32, %c0_i32_0, %c0_i32_1 : i32, i32, i32
  }
  func.func @transform_6(%arg0: i32, %arg1: i32) -> (i32, i32, i32, i32) {
    %c0_i32 = arith.constant 0 : i32
    %c0_i32_0 = arith.constant 0 : i32
    %c0_i32_1 = arith.constant 0 : i32
    return %arg0, %arg1, %c0_i32, %c0_i32_0 : i32, i32, i32, i32
  }
  func.func @transform_7(%arg0: i32, %arg1: i32) -> (i32, i32, i32, i32) {
    %c0_i32 = arith.constant 0 : i32
    %c0_i32_0 = arith.constant 0 : i32
    %c0_i32_1 = arith.constant 0 : i32
    return %arg0, %arg1, %c0_i32, %c0_i32_0 : i32, i32, i32, i32
  }
  func.func @transform_8(%arg0: i32, %arg1: i32) -> (i32, i32, i32, i32) {
    %c0_i32 = arith.constant 0 : i32
    %c0_i32_0 = arith.constant 0 : i32
    %c0_i32_1 = arith.constant 0 : i32
    return %arg0, %arg1, %c0_i32, %c0_i32_0 : i32, i32, i32, i32
  }
}

module attributes {stable_mosaic.version = 11 : i64} {
  func.func @_bn_relu_kernel(%arg0: i32, %arg1: i32, %arg2: memref<1x16x16x128xbf16, #tpu.memory_space<vmem>>, %arg3: memref<1x1x128xf32, #tpu.memory_space<vmem>>, %arg4: memref<1x1x128xf32, #tpu.memory_space<vmem>>, %arg5: memref<1x16x16x8xf32, #tpu.memory_space<vmem>>) attributes {dimension_semantics = [#tpu.dimension_semantics<parallel>, #tpu.dimension_semantics<parallel>], iteration_bounds = array<i64: 2, 1>, scalar_prefetch = 0 : i64, scratch_operands = 0 : i64, tpu.core_type = #tpu.core_type<tc>, window_params = [{transform_indices = @transform_0, window_bounds = array<i64: 1, 16, 16, 128>}, {pipeline_mode = #tpu.pipeline_mode<synchronous>, transform_indices = @transform_1, window_bounds = array<i64: 1, 1, 128>}, {pipeline_mode = #tpu.pipeline_mode<synchronous>, transform_indices = @transform_2, window_bounds = array<i64: 1, 1, 128>}, {transform_indices = @transform_3, window_bounds = array<i64: 1, 16, 16, 8>}]} {
    %c0 = arith.constant 0 : index
    %c0_0 = arith.constant 0 : index
    %c0_1 = arith.constant 0 : index
    %c0_2 = arith.constant 0 : index
    %0 = vector.load %arg2[%c0, %c0_0, %c0_1, %c0_2] : memref<1x16x16x128xbf16, #tpu.memory_space<vmem>>, vector<1x16x16x128xbf16>
    %1 = vector.shape_cast %0 : vector<1x16x16x128xbf16> to vector<16x16x128xbf16>
    %2 = arith.extf %1 : vector<16x16x128xbf16> to vector<16x16x128xf32>
    %c0_3 = arith.constant 0 : index
    %c0_4 = arith.constant 0 : index
    %c0_5 = arith.constant 0 : index
    %3 = vector.load %arg3[%c0_3, %c0_4, %c0_5] : memref<1x1x128xf32, #tpu.memory_space<vmem>>, vector<1x1x128xf32>
    %4 = vector.broadcast %3 : vector<1x1x128xf32> to vector<16x16x128xf32>
    %5 = arith.mulf %2, %4 : vector<16x16x128xf32>
    %c0_6 = arith.constant 0 : index
    %c0_7 = arith.constant 0 : index
    %c0_8 = arith.constant 0 : index
    %6 = vector.load %arg4[%c0_6, %c0_7, %c0_8] : memref<1x1x128xf32, #tpu.memory_space<vmem>>, vector<1x1x128xf32>
    %7 = vector.broadcast %6 : vector<1x1x128xf32> to vector<16x16x128xf32>
    %8 = arith.addf %5, %7 : vector<16x16x128xf32>
    %cst = arith.constant 0.000000e+00 : f32
    %9 = vector.broadcast %cst : f32 to vector<16x16x128xf32>
    %10 = arith.maximumf %8, %9 : vector<16x16x128xf32>
    %11 = vector.extract_strided_slice %10 {offsets = [0, 0, 0], sizes = [16, 16, 8], strides = [1, 1, 1]} : vector<16x16x128xf32> to vector<16x16x8xf32>
    %c0_9 = arith.constant 0 : index
    %c0_10 = arith.constant 0 : index
    %c0_11 = arith.constant 0 : index
    %c0_12 = arith.constant 0 : index
    %12 = vector.load %arg5[%c0_9, %c0_10, %c0_11, %c0_12] : memref<1x16x16x8xf32, #tpu.memory_space<vmem>>, vector<1x16x16x8xf32>
    %13 = vector.shape_cast %12 : vector<1x16x16x8xf32> to vector<16x16x8xf32>
    %14 = vector.shape_cast %11 : vector<16x16x8xf32> to vector<1x16x16x8xf32>
    tpu.vector_store %arg5[%c0_9, %c0_10, %c0_11, %c0_12], %14 {strides = array<i32>} : memref<1x16x16x8xf32, #tpu.memory_space<vmem>>, vector<1x16x16x8xf32>,
    return
  }
  func.func @transform_0(%arg0: i32, %arg1: i32) -> (i32, i32, i32, i32) {
    %c0_i32 = arith.constant 0 : i32
    %c0_i32_0 = arith.constant 0 : i32
    %c0_i32_1 = arith.constant 0 : i32
    return %arg0, %arg1, %c0_i32, %c0_i32_0 : i32, i32, i32, i32
  }
  func.func @transform_1(%arg0: i32, %arg1: i32) -> (i32, i32, i32) {
    %c0_i32 = arith.constant 0 : i32
    %c0_i32_0 = arith.constant 0 : i32
    %c0_i32_1 = arith.constant 0 : i32
    %c0_i32_2 = arith.constant 0 : i32
    return %c0_i32, %c0_i32_0, %c0_i32_1 : i32, i32, i32
  }
  func.func @transform_2(%arg0: i32, %arg1: i32) -> (i32, i32, i32) {
    %c0_i32 = arith.constant 0 : i32
    %c0_i32_0 = arith.constant 0 : i32
    %c0_i32_1 = arith.constant 0 : i32
    %c0_i32_2 = arith.constant 0 : i32
    return %c0_i32, %c0_i32_0, %c0_i32_1 : i32, i32, i32
  }
  func.func @transform_3(%arg0: i32, %arg1: i32) -> (i32, i32, i32, i32) {
    %c0_i32 = arith.constant 0 : i32
    %c0_i32_0 = arith.constant 0 : i32
    %c0_i32_1 = arith.constant 0 : i32
    return %arg0, %arg1, %c0_i32, %c0_i32_0 : i32, i32, i32, i32
  }
}

</mosaic_0001>

<bundles_post_ra>
// kernel: double_conv.5
= control target key start
LH: loop header
LB: loop body
LE: loop exit
PB: predicated region body
PF: predicated region fallthrough
CT: control target
= control target key end

     0   :  { %s674_s12 = smov 0   ;;  %s676_s13 = smov 0   ;;  %s869_s0 = inlined_call_operand.vmem [shape: bf16[2,16,16,128], index: 0, kind: input, shape index: {}]   ;;  %s870_s1 = inlined_call_operand.vmem [shape: f32[1,1,128], index: 1, kind: input, shape index: {}]   ;;  %s871_s2 = inlined_call_operand.vmem [shape: f32[1,1,128], index: 2, kind: input, shape index: {}]   ;;  %s872_s3 = inlined_call_operand.vmem [shape: f32[2,16,16,8], index: 3, kind: output, shape index: {}]  }
   0x1   :  { %s678_s14 = smov 0  }
   0x2 LB: > { %s25_s15 = sadd.s32 1, %s648_s13  ;;  %p516_p0 = scmp.ge.s32.totalorder %s652_s14, 1  ;;  %s652_s14 = sphi %s678_s14, %s13_s14   ;;  %s648_s13 = sphi %s676_s13, %s874_s13   ;;  %s644_s12 = sphi %s674_s12, %s873_s12  }
   0x3   : > { %p27_p1 = scmp.ge.s32.totalorder %s25_s15, 2  ;;  %p159_p2 = scmp.lt.s32.totalorder %s652_s14, 3 }
   0x5   : > { %s876_s15 = smov (%p27_p1, %s25_s15), 0  ;;  %p160_p3 = pnand %p516_p0, %p159_p2 }
   0x6   : > { %p194_p4 = scmp.lt.s32.totalorder (!%p160_p3), %s644_s12, 1 }
   0x7   : > { %163 = sbr.rel (%p160_p3) target bundleno = 56 (0x38), region = 32 }
   0xc   : > { %s878_s12 = smov (!%p194_p4, %s644_s12), 1  ;;  %v703_v0 = vld [vmem:[%s870_s1] ss:$0 sm:$0xff]  ;;  %vm383_vm0 = vcmask 64512  }
   0xd   : > { %s523_s16 = sshll.u32 %s878_s12, 7  ;;  %v711_v5 = vld [vmem:[%s871_s2] ss:$0 sm:$0xff]  ;;  %s524_s24 = sshll.u32 %s878_s12, 8 }
   0xe   : > { %s698_s19 = scalar_lea.vmem %s869_s0, %s523_s16  ;;  %s730_s27 = scalar_lea.vmem %s872_s3, %s524_s24 }
   0xf   : > { %v526_v1 = vld [vmem:[%s698_s19] sm:$0xff]   ;;  %v589_v2 = vld [vmem:[%s698_s19 + $0x8] sm:$0xff]   ;;  %v590_v3 = vld [vmem:[%s698_s19 + $0x10] sm:$0xff]  }
  0x10   : > { %v527_v4 = vunpack.c.l.bf16 %v526_v1  ;;  %v528_v6 = vunpack.c.h.bf16 %v526_v1  ;;  %v531_v7 = vunpack.c.l.bf16 %v589_v2  ;;  %v532_v8 = vunpack.c.h.bf16 %v589_v2  ;;  %v591_v9 = vld [vmem:[%s698_s19 + $0x18] sm:$0xff]   ;;  %v592_v30 = vld [vmem:[%s698_s19 + $0x20] sm:$0xff]   ;;  %v593_v31 = vld [vmem:[%s698_s19 + $0x28] sm:$0xff]  }
  0x11   : > { %v535_v10 = vunpack.c.l.bf16 %v590_v3  ;;  %v536_v11 = vunpack.c.h.bf16 %v590_v3  ;;  %v539_v12 = vunpack.c.l.bf16 %v591_v9  ;;  %v540_v13 = vunpack.c.h.bf16 %v591_v9  ;;  %v594_v36 = vld [vmem:[%s698_s19 + $0x30] sm:$0xff]   ;;  %v595_v37 = vld [vmem:[%s698_s19 + $0x38] sm:$0xff]   ;;  %v596_v3 = vld [vmem:[%s698_s19 + $0x40] sm:$0xff]  }
  0x12   : > { %v283_v14 = vmul.f32 %v703_v0, %v527_v4  ;;  %v284_v15 = vmul.f32 %v703_v0, %v528_v6  ;;  %v285_v16 = vmul.f32 %v703_v0, %v531_v7  ;;  %v286_v17 = vmul.f32 %v703_v0, %v532_v8  ;;  %v597_v4 = vld [vmem:[%s698_s19 + $0x48] sm:$0xff]   ;;  %v598_v6 = vld [vmem:[%s698_s19 + $0x50] sm:$0xff]  }
  0x13   : > { %v287_v18 = vmul.f32 %v703_v0, %v535_v10  ;;  %v288_v19 = vmul.f32 %v703_v0, %v536_v11  ;;  %v289_v20 = vmul.f32 %v703_v0, %v539_v12  ;;  %v290_v21 = vmul.f32 %v703_v0, %v540_v13  ;;  %v599_v11 = vld [vmem:[%s698_s19 + $0x58] sm:$0xff]  }
  0x14   : > { %v319_v22 = vadd.f32 %v711_v5, %v283_v14  ;;  %v320_v23 = vadd.f32 %v711_v5, %v284_v15  ;;  %v321_v24 = vadd.f32 %v711_v5, %v285_v16  ;;  %v322_v25 = vadd.f32 %v711_v5, %v286_v17 }
  0x15   : > { %v323_v26 = vadd.f32 %v711_v5, %v287_v18  ;;  %v324_v27 = vadd.f32 %v711_v5, %v288_v19  ;;  %v325_v28 = vadd.f32 %v711_v5, %v289_v20  ;;  %v326_v29 = vadd.f32 %v711_v5, %v290_v21 }
  0x16   : > { %v351_v32 = vmax.f32 %v319_v22, 0.0  ;;  %v352_v33 = vmax.f32 %v320_v23, 0.0  ;;  %v353_v34 = vmax.f32 %v321_v24, 0.0  ;;  %v354_v35 = vmax.f32 %v322_v25, 0.0 }
  0x17   : > { %v355_v38 = vmax.f32 %v323_v26, 0.0  ;;  %v356_v39 = vmax.f32 %v324_v27, 0.0  ;;  %v357_v40 = vmax.f32 %v325_v28, 0.0  ;;  %v358_v41 = vmax.f32 %v326_v29, 0.0 }
  0x18   : > { %384 = vst.msk [vmem:[%s730_s27] sm:$0xff] %vm383_vm0, %v351_v32  ;;  %v543_v42 = vunpack.c.l.bf16 %v592_v30  ;;  %v544_v43 = vunpack.c.h.bf16 %v592_v30  ;;  %v547_v44 = vunpack.c.l.bf16 %v593_v31  ;;  %v548_v45 = vunpack.c.h.bf16 %v593_v31 }
  0x19   : > { %385 = vst.msk [vmem:[%s730_s27 + $0x8] sm:$0xff] %vm383_vm0, %v352_v33  ;;  %v551_v46 = vunpack.c.l.bf16 %v594_v36  ;;  %v552_v47 = vunpack.c.h.bf16 %v594_v36  ;;  %v555_v48 = vunpack.c.l.bf16 %v595_v37  ;;  %v556_v49 = vunpack.c.h.bf16 %v595_v37 }
  0x1a   : > { %386 = vst.msk [vmem:[%s730_s27 + $0x10] sm:$0xff] %vm383_vm0, %v353_v34  ;;  %v291_v50 = vmul.f32 %v703_v0, %v543_v42  ;;  %v292_v51 = vmul.f32 %v703_v0, %v544_v43  ;;  %v293_v52 = vmul.f32 %v703_v0, %v547_v44  ;;  %v294_v53 = vmul.f32 %v703_v0, %v548_v45  ;;  %v602_v42 = vld [vmem:[%s698_s19 + $0x70] sm:$0xff]  }
  0x1b   : > { %387 = vst.msk [vmem:[%s730_s27 + $0x18] sm:$0xff] %vm383_vm0, %v354_v35  ;;  %v295_v54 = vmul.f32 %v703_v0, %v551_v46  ;;  %v296_v55 = vmul.f32 %v703_v0, %v552_v47  ;;  %v297_v56 = vmul.f32 %v703_v0, %v555_v48  ;;  %v298_v57 = vmul.f32 %v703_v0, %v556_v49  ;;  %v603_v47 = vld [vmem:[%s698_s19 + $0x78] sm:$0xff]  }
  0x1c   : > { %388 = vst.msk [vmem:[%s730_s27 + $0x20] sm:$0xff] %vm383_vm0, %v355_v38  ;;  %v327_v58 = vadd.f32 %v711_v5, %v291_v50  ;;  %v328_v59 = vadd.f32 %v711_v5, %v292_v51  ;;  %v329_v60 = vadd.f32 %v711_v5, %v293_v52  ;;  %v330_v61 = vadd.f32 %v711_v5, %v294_v53 }
  0x1d   : > { %389 = vst.msk [vmem:[%s730_s27 + $0x28] sm:$0xff] %vm383_vm0, %v356_v39  ;;  %v331_v62 = vadd.f32 %v711_v5, %v295_v54  ;;  %v332_v63 = vadd.f32 %v711_v5, %v296_v55  ;;  %v333_v1 = vadd.f32 %v711_v5, %v297_v56  ;;  %v334_v2 = vadd.f32 %v711_v5, %v298_v57 }
  0x1e   : > { %390 = vst.msk [vmem:[%s730_s27 + $0x30] sm:$0xff] %vm383_vm0, %v357_v40  ;;  %v359_v7 = vmax.f32 %v327_v58, 0.0  ;;  %v360_v8 = vmax.f32 %v328_v59, 0.0  ;;  %v361_v9 = vmax.f32 %v329_v60, 0.0  ;;  %v362_v10 = vmax.f32 %v330_v61, 0.0  ;;  %v600_v40 = vld [vmem:[%s698_s19 + $0x60] sm:$0xff]  }
  0x1f   : > { %391 = vst.msk [vmem:[%s730_s27 + $0x38] sm:$0xff] %vm383_vm0, %v358_v41  ;;  %v363_v12 = vmax.f32 %v331_v62, 0.0  ;;  %v364_v13 = vmax.f32 %v332_v63, 0.0  ;;  %v365_v14 = vmax.f32 %v333_v1, 0.0  ;;  %v366_v15 = vmax.f32 %v334_v2, 0.0  ;;  %v601_v41 = vld [vmem:[%s698_s19 + $0x68] sm:$0xff]  }
  0x20   : > { %392 = vst.msk [vmem:[%s730_s27 + $0x40] sm:$0xff] %vm383_vm0, %v359_v7  ;;  %v559_v16 = vunpack.c.l.bf16 %v596_v3  ;;  %v560_v17 = vunpack.c.h.bf16 %v596_v3  ;;  %v563_v18 = vunpack.c.l.bf16 %v597_v4  ;;  %v564_v19 = vunpack.c.h.bf16 %v597_v4 }
  0x21   : > { %393 = vst.msk [vmem:[%s730_s27 + $0x48] sm:$0xff] %vm383_vm0, %v360_v8  ;;  %v567_v20 = vunpack.c.l.bf16 %v598_v6  ;;  %v568_v21 = vunpack.c.h.bf16 %v598_v6  ;;  %v571_v22 = vunpack.c.l.bf16 %v599_v11  ;;  %v572_v23 = vunpack.c.h.bf16 %v599_v11 }
  0x22   : > { %394 = vst.msk [vmem:[%s730_s27 + $0x50] sm:$0xff] %vm383_vm0, %v361_v9  ;;  %v299_v24 = vmul.f32 %v703_v0, %v559_v16  ;;  %v300_v25 = vmul.f32 %v703_v0, %v560_v17  ;;  %v301_v26 = vmul.f32 %v703_v0, %v563_v18  ;;  %v302_v27 = vmul.f32 %v703_v0, %v564_v19 }
  0x23   : > { %395 = vst.msk [vmem:[%s730_s27 + $0x58] sm:$0xff] %vm383_vm0, %v362_v10  ;;  %v303_v28 = vmul.f32 %v703_v0, %v567_v20  ;;  %v304_v29 = vmul.f32 %v703_v0, %v568_v21  ;;  %v305_v30 = vmul.f32 %v703_v0, %v571_v22  ;;  %v306_v31 = vmul.f32 %v703_v0, %v572_v23 }
  0x24   : > { %396 = vst.msk [vmem:[%s730_s27 + $0x60] sm:$0xff] %vm383_vm0, %v363_v12  ;;  %v335_v32 = vadd.f32 %v711_v5, %v299_v24  ;;  %v336_v33 = vadd.f32 %v711_v5, %v300_v25  ;;  %v337_v34 = vadd.f32 %v711_v5, %v301_v26  ;;  %v338_v35 = vadd.f32 %v711_v5, %v302_v27 }
  0x25   : > { %397 = vst.msk [vmem:[%s730_s27 + $0x68] sm:$0xff] %vm383_vm0, %v364_v13  ;;  %v339_v36 = vadd.f32 %v711_v5, %v303_v28  ;;  %v340_v37 = vadd.f32 %v711_v5, %v304_v29  ;;  %v341_v38 = vadd.f32 %v711_v5, %v305_v30  ;;  %v342_v39 = vadd.f32 %v711_v5, %v306_v31 }
  0x26   : > { %398 = vst.msk [vmem:[%s730_s27 + $0x70] sm:$0xff] %vm383_vm0, %v365_v14  ;;  %v367_v43 = vmax.f32 %v335_v32, 0.0  ;;  %v368_v44 = vmax.f32 %v336_v33, 0.0  ;;  %v369_v45 = vmax.f32 %v337_v34, 0.0  ;;  %v370_v46 = vmax.f32 %v338_v35, 0.0 }
  0x27   : > { %399 = vst.msk [vmem:[%s730_s27 + $0x78] sm:$0xff] %vm383_vm0, %v366_v15  ;;  %v371_v48 = vmax.f32 %v339_v36, 0.0  ;;  %v372_v49 = vmax.f32 %v340_v37, 0.0  ;;  %v373_v50 = vmax.f32 %v341_v38, 0.0  ;;  %v374_v51 = vmax.f32 %v342_v39, 0.0 }
  0x28   : > { %400 = vst.msk [vmem:[%s730_s27 + $0x80] sm:$0xff] %vm383_vm0, %v367_v43  ;;  %v575_v52 = vunpack.c.l.bf16 %v600_v40  ;;  %v576_v53 = vunpack.c.h.bf16 %v600_v40  ;;  %v579_v54 = vunpack.c.l.bf16 %v601_v41  ;;  %v580_v55 = vunpack.c.h.bf16 %v601_v41 }
  0x29   : > { %401 = vst.msk [vmem:[%s730_s27 + $0x88] sm:$0xff] %vm383_vm0, %v368_v44  ;;  %v583_v56 = vunpack.c.l.bf16 %v602_v42  ;;  %v584_v57 = vunpack.c.h.bf16 %v602_v42  ;;  %v587_v58 = vunpack.c.l.bf16 %v603_v47  ;;  %v588_v59 = vunpack.c.h.bf16 %v603_v47 }
  0x2a   : > { %402 = vst.msk [vmem:[%s730_s27 + $0x90] sm:$0xff] %vm383_vm0, %v369_v45  ;;  %v307_v60 = vmul.f32 %v703_v0, %v575_v52  ;;  %v308_v61 = vmul.f32 %v703_v0, %v576_v53  ;;  %v309_v62 = vmul.f32 %v703_v0, %v579_v54  ;;  %v310_v63 = vmul.f32 %v703_v0, %v580_v55 }
  0x2b   : > { %403 = vst.msk [vmem:[%s730_s27 + $0x98] sm:$0xff] %vm383_vm0, %v370_v46  ;;  %v311_v1 = vmul.f32 %v703_v0, %v583_v56  ;;  %v312_v2 = vmul.f32 %v703_v0, %v584_v57  ;;  %v313_v3 = vmul.f32 %v703_v0, %v587_v58  ;;  %v314_v4 = vmul.f32 %v703_v0, %v588_v59 }
  0x2c   : > { %404 = vst.msk [vmem:[%s730_s27 + $0xa0] sm:$0xff] %vm383_vm0, %v371_v48  ;;  %v343_v6 = vadd.f32 %v711_v5, %v307_v60  ;;  %v344_v7 = vadd.f32 %v711_v5, %v308_v61  ;;  %v345_v8 = vadd.f32 %v711_v5, %v309_v62  ;;  %v346_v9 = vadd.f32 %v711_v5, %v310_v63 }
  0x2d   : > { %405 = vst.msk [vmem:[%s730_s27 + $0xa8] sm:$0xff] %vm383_vm0, %v372_v49  ;;  %v347_v10 = vadd.f32 %v711_v5, %v311_v1  ;;  %v348_v0 = vadd.f32 %v711_v5, %v312_v2  ;;  %v349_v14 = vadd.f32 %v711_v5, %v313_v3  ;;  %v350_v16 = vadd.f32 %v711_v5, %v314_v4 }
  0x2e   : > { %406 = vst.msk [vmem:[%s730_s27 + $0xb0] sm:$0xff] %vm383_vm0, %v373_v50  ;;  %v375_v11 = vmax.f32 %v343_v6, 0.0  ;;  %v376_v12 = vmax.f32 %v344_v7, 0.0  ;;  %v377_v13 = vmax.f32 %v345_v8, 0.0  ;;  %v378_v15 = vmax.f32 %v346_v9, 0.0 }
  0x2f   : > { %407 = vst.msk [vmem:[%s730_s27 + $0xb8] sm:$0xff] %vm383_vm0, %v374_v51  ;;  %v379_v17 = vmax.f32 %v347_v10, 0.0  ;;  %v380_v18 = vmax.f32 %v348_v0, 0.0  ;;  %v381_v19 = vmax.f32 %v349_v14, 0.0  ;;  %v382_v20 = vmax.f32 %v350_v16, 0.0 }
  0x30   : > { %408 = vst.msk [vmem:[%s730_s27 + $0xc0] sm:$0xff] %vm383_vm0, %v375_v11 }
  0x31   : > { %409 = vst.msk [vmem:[%s730_s27 + $0xc8] sm:$0xff] %vm383_vm0, %v376_v12 }
  0x32   : > { %410 = vst.msk [vmem:[%s730_s27 + $0xd0] sm:$0xff] %vm383_vm0, %v377_v13 }
  0x33   : > { %411 = vst.msk [vmem:[%s730_s27 + $0xd8] sm:$0xff] %vm383_vm0, %v378_v15 }
  0x34   : > { %412 = vst.msk [vmem:[%s730_s27 + $0xe0] sm:$0xff] %vm383_vm0, %v379_v17 }
  0x35   : > { %413 = vst.msk [vmem:[%s730_s27 + $0xe8] sm:$0xff] %vm383_vm0, %v380_v18 }
  0x36   : > { %414 = vst.msk [vmem:[%s730_s27 + $0xf0] sm:$0xff] %vm383_vm0, %v381_v19 }
  0x37   : > { %415 = vst.msk [vmem:[%s730_s27 + $0xf8] sm:$0xff] %vm383_vm0, %v382_v20 }
  0x38 PF: > { %s13_s14 = sadd.s32 1, %s652_s14   ;;  %s873_s12 = smov %s648_s13 }
  0x39   : > { %p10_p5 = scmp.ge.s32.totalorder %s13_s14, 4   ;;  %s874_s13 = smov %s876_s15 }
  0x3b   :  { %12 = sbr.rel (!%p10_p5) target bundleno = 2 (0x2), region = 62 }

// kernel: double_conv.3
= control target key start
LH: loop header
LB: loop body
LE: loop exit
PB: predicated region body
PF: predicated region fallthrough
CT: control target
= control target key end

     0   :  { %s3829_s27 = smov 0   ;;  %s3831_s28 = smov 0   ;;  %s5288_s0 = inlined_call_operand.vmem [shape: bf16[2,16,16,128], index: 0, kind: input, shape index: {}, may-alias: {0,1,2}]   ;;  %s5289_s1 = inlined_call_operand.vmem [shape: bf16[2,16,16,128], index: 1, kind: input, shape index: {}, may-alias: {0,1,2}]   ;;  %s5290_s2 = inlined_call_operand.vmem [shape: bf16[2,16,16,128], index: 2, kind: input, shape index: {}, may-alias: {0,1,2}]   ;;  %s5291_s3 = inlined_call_operand.vmem [shape: bf16[3,384,128], index: 3, kind: input, shape index: {}]   ;;  %s5292_s4 = inlined_call_operand.vmem [shape: bf16[1,1,128], index: 4, kind: input, shape index: {}]   ;;  %s5293_s5 = inlined_call_operand.vmem [shape: bf16[1,1,128], index: 5, kind: input, shape index: {}]   ;;  %s5294_s6 = inlined_call_operand.vmem [shape: bf16[2,16,16,128], index: 6, kind: output, shape index: {0}]   ;;  %s5295_s7 = inlined_call_operand.vmem [shape: f32[2,1,1,128], index: 7, kind: output, shape index: {1}]   ;;  %s5296_s8 = inlined_call_operand.vmem [shape: f32[2,1,1,128], index: 8, kind: output, shape index: {2}]  }
   0x1   :  { %s3833_s29 = smov 0  }
   0x2 LB: > { %s31_s4 = sadd.s32 1, %s3778_s28  ;;  %p3007_p0 = scmp.ge.s32.totalorder %s3782_s29, 1  ;;  %s3782_s29 = sphi %s3833_s29, %s19_s29   ;;  %s3778_s28 = sphi %s3831_s28, %s5491_s28   ;;  %s3774_s27 = sphi %s3829_s27, %s5490_s27  }
   0x3   : > { %p33_p1 = scmp.ge.s32.totalorder %s31_s4, 2  ;;  %p373_p2 = scmp.lt.s32.totalorder %s3782_s29, 3 }
   0x5   : > { %s5493_s4 = smov (%p33_p1, %s31_s4), 0  ;;  %p374_p3 = pnand %p3007_p0, %p373_p2 }
   0x7   : > { %377 = sbr.rel (%p374_p3) target bundleno = 773 (0x305), region = 44 }
   0xc   : > { %v3850_v0 = vld [vmem:[%s5291_s3 + $0xf8] sm:$0xff]  ;;  %p460_p4 = scmp.lt.s32.totalorder %s3774_s27, 1  ;;  %v3857_v1 = vld [vmem:[%s5291_s3 + $0xf0] sm:$0xff]  ;;  %v3868_v2 = vld [vmem:[%s5291_s3 + $0xe8] sm:$0xff]  ;;  %vm855_vm0 = vcmask 1040384   ;;  %vm1018_vm3 = vcmask 1047552  }
   0xd   : > { %1358 = vmatpush.bf16.msra.mxu0 %v3850_v0  ;;  %3694 = vmatpush.bf16.msra.mxu1 %v3850_v0  ;;  %v3880_v3 = vld [vmem:[%s5291_s3 + $0xe0] sm:$0xff]  ;;  %v3895_v4 = vld [vmem:[%s5291_s3 + $0xd8] sm:$0xff]  ;;  %v3918_v11 = vld [vmem:[%s5291_s3 + $0xd0] sm:$0xff]  ;;  %vm856_vm1 = vsmask.f32 256 }
   0xe   : > { %3695 = vmatpush.bf16.msra.mxu2 %v3850_v0  ;;  %3696 = vmatpush.bf16.msra.mxu3 %v3850_v0  ;;  %s5495_s27 = smov (!%p460_p4, %s3774_s27), 1  ;;  %v3937_v22 = vld [vmem:[%s5291_s3 + $0xc8] sm:$0xff]  ;;  %v3954_v31 = vld [vmem:[%s5291_s3 + $0xc0] sm:$0xff]  ;;  %vm3962_vm2 = vmand %vm855_vm0, %vm856_vm1  ;;  %vm1019_vm4 = vsmask.f32 7424 }
   0xf   : > { %s3873_s13 = sshll.u32 %s5495_s27, 7  ;;  %v3973_v41 = vld [vmem:[%s5291_s3 + $0x178] sm:$0xff]  ;;  %v4019_v51 = vld [vmem:[%s5291_s3 + $0x170] sm:$0xff]  ;;  %v4053_v63 = vld [vmem:[%s5291_s3 + $0x168] sm:$0xff]  ;;  %s528_s30 = scalar_lea.vmem %s5295_s7, %s5495_s27 }
  0x10   : > { %s3888_s18 = scalar_lea.vmem %s5288_s0, %s3873_s13  ;;  %v3988_v44 = vld [vmem:[%s5291_s3 + $0x138] sm:$0xff]  ;;  %v4037_v58 = vld [vmem:[%s5291_s3 + $0x130] sm:$0xff]  ;;  %vm4209_vm5 = vmand %vm1018_vm3, %vm1019_vm4  ;;  %s3434_s21 = sadd.s32 8, %s3873_s13 }
  0x11   : > { %1359 = vmatpush.bf16.msra.mxu0 %v3857_v1  ;;  %3697 = vmatpush.bf16.msra.mxu1 %v3857_v1  ;;  %v3898_v5 = vld [vmem:[%s3888_s18 + $0x8] sm:$0xff]   ;;  %v3906_v7 = vld [vmem:[%s3888_s18 + $0x58] sm:$0xff]   ;;  %v3991_v45 = vld [vmem:[%s3888_s18 + $0x10] sm:$0xff]   ;;  %s483_s24 = scalar_lea.vmem %s5289_s1, %s3434_s21  ;;  %s3436_s14 = sadd.s32 112, %s3873_s13 }
  0x12   : > { %3698 = vmatpush.bf16.msra.mxu2 %v3857_v1  ;;  %3699 = vmatpush.bf16.msra.mxu3 %v3857_v1  ;;  %v3903_v6 = vld [vmem:[%s3888_s18 + $0x48] sm:$0xff]   ;;  %v3516_v9 = vunpack.c.l.b16 %v3898_v5  ;;  %v735_v10 = vshrl.u32 %v3898_v5, 16  ;;  %v3556_v14 = vunpack.c.l.b16 %v3906_v7  ;;  %v5303_v15 = vshrl.u32 %v3906_v7, 16  ;;  %v4006_v48 = vld [vmem:[%s5291_s3 + $0x78] sm:$0xff]  ;;  %v4009_v49 = vld [vmem:[%s3888_s18 + $0x50] sm:$0xff]   ;;  %s504_s17 = scalar_lea.vmem %s5290_s2, %s3436_s14  ;;  %s5147_s5 = scalar_lea.vmem %s5294_s6, %s3873_s13 }
  0x13   : > { %v3909_v8 = vld [vmem:[%s3888_s18 + $0x68] sm:$0xff]   ;;  %v3548_v12 = vunpack.c.l.b16 %v3903_v6  ;;  %v5307_v13 = vshrl.u32 %v3903_v6, 16  ;;  %v738_v20 = vshll.u32 %v3898_v5, 16  ;;  %v5308_v21 = vshll.u32 %v3903_v6, 16  ;;  %v4012_v50 = vld [vmem:[%s3888_s18 + $0x60] sm:$0xff]   ;;  %v4022_v52 = vld [vmem:[%s3888_s18 + $0x70] sm:$0xff]   ;;  %s534_s11 = scalar_lea.vmem %s5296_s8, %s5495_s27 }
  0x14   : > { %v3564_v16 = vunpack.c.l.b16 %v3909_v8  ;;  %v5299_v17 = vshrl.u32 %v3909_v8, 16  ;;  %v600_v18 = vpack.c.b16 %v3516_v9, %v3516_v9  ;;  %v737_v19 = vrot.slane %v735_v10, 7  ;;  %v4046_v62 = vld [vmem:[%s5291_s3 + $0x70] sm:$0xff] }
  0x15   : > { %1360 = vmatpush.bf16.msra.mxu0 %v3868_v2  ;;  %3700 = vmatpush.bf16.msra.mxu1 %v3868_v2  ;;  %v608_v23 = vpack.c.b16 %v3548_v12, %v3548_v12  ;;  %v793_v24 = vrot.slane %v5307_v13, 7  ;;  %v610_v25 = vpack.c.b16 %v3556_v14, %v3556_v14  ;;  %v5304_v26 = vshll.u32 %v3906_v7, 16 }
  0x16   : > { %3701 = vmatpush.bf16.msra.mxu2 %v3868_v2  ;;  %3702 = vmatpush.bf16.msra.mxu3 %v3868_v2  ;;  %v807_v27 = vrot.slane %v5303_v15, 7  ;;  %v612_v28 = vpack.c.b16 %v3564_v16, %v3564_v16  ;;  %v821_v29 = vrot.slane %v5299_v17, 7  ;;  %v5300_v30 = vshll.u32 %v3909_v8, 16 }
  0x17   : > { %v619_v32 = vshrl.u32 %v600_v18, 16  ;;  %v740_v33 = vor.u32 %v738_v20, %v737_v19  ;;  %v643_v34 = vshrl.u32 %v608_v23, 16  ;;  %v796_v35 = vor.u32 %v5308_v21, %v793_v24  ;;  %v4066_v23 = vld [vmem:[%s5291_s3 + $0x128] sm:$0xff] }
  0x18   : > { %v649_v37 = vshrl.u32 %v610_v25, 16  ;;  %v810_v38 = vor.u32 %v5304_v26, %v807_v27  ;;  %v655_v39 = vshrl.u32 %v612_v28, 16  ;;  %v824_v40 = vor.u32 %v5300_v30, %v821_v29  ;;  %v4077_v29 = vld [vmem:[%s5291_s3 + $0x68] sm:$0xff]  ;;  %v4266_v26 = vld [vmem:[%s5291_s3 + $0x58] sm:$0xff] }
  0x19   : > { %1361 = vmatpush.bf16.msra.mxu0 %v3880_v3  ;;  %3703 = vmatpush.bf16.msra.mxu1 %v3880_v3  ;;  %v3979_v42 = vsel %vm3962_vm2, %v619_v32, %v740_v33  ;;  %v3983_v43 = vsel %vm3962_vm2, %v643_v34, %v796_v35  ;;  %v3520_v53 = vunpack.c.l.b16 %v3991_v45  ;;  %v742_v54 = vshrl.u32 %v3991_v45, 16  ;;  %v4084_v32 = vld [vmem:[%s5291_s3 + $0x160] sm:$0xff] }
  0x1a   : > { %3704 = vmatpush.bf16.msra.mxu2 %v3880_v3  ;;  %3705 = vmatpush.bf16.msra.mxu3 %v3880_v3  ;;  %5373 = vst [vmem:[#allocation2_spill] sm:$0xff] %v3979_v42  ;;  %v3997_v46 = vsel %vm3962_vm2, %v649_v37, %v810_v38  ;;  %v4001_v47 = vsel %vm3962_vm2, %v655_v39, %v824_v40  ;;  %v3552_v55 = vunpack.c.l.b16 %v4009_v49  ;;  %v5305_v56 = vshrl.u32 %v4009_v49, 16 }
  0x1b   : > { %5374 = vst [vmem:[#allocation3_spill] sm:$0xff] %v3997_v46  ;;  %v3560_v57 = vunpack.c.l.b16 %v4012_v50  ;;  %v5301_v59 = vshrl.u32 %v4012_v50, 16  ;;  %v3568_v60 = vunpack.c.l.b16 %v4022_v52  ;;  %v5297_v61 = vshrl.u32 %v4022_v52, 16 }
  0x1c   : > { %5375 = vst [vmem:[#allocation4_spill] sm:$0xff] %v4001_v47  ;;  %v744_v9 = vrot.slane %v742_v54, 7  ;;  %v745_v12 = vshll.u32 %v3991_v45, 16  ;;  %v5306_v14 = vshll.u32 %v4009_v49, 16  ;;  %v609_v16 = vpack.c.b16 %v3552_v55, %v3552_v55  ;;  %v4106_v55 = vld [vmem:[%s5291_s3 + $0x158] sm:$0xff] }
  0x1d   : > { %1362 = vmatpush.bf16.msra.mxu0 %v3895_v4  ;;  %3706 = vmatpush.bf16.msra.mxu1 %v3895_v4  ;;  %v800_v18 = vrot.slane %v5305_v56, 7  ;;  %v611_v19 = vpack.c.b16 %v3560_v57, %v3560_v57  ;;  %v814_v24 = vrot.slane %v5301_v59, 7  ;;  %v613_v25 = vpack.c.b16 %v3568_v60, %v3568_v60 }
  0x1e   : > { %3707 = vmatpush.bf16.msra.mxu2 %v3895_v4  ;;  %3708 = vmatpush.bf16.msra.mxu3 %v3895_v4  ;;  %v828_v27 = vrot.slane %v5297_v61, 7  ;;  %v5298_v28 = vshll.u32 %v4022_v52, 16  ;;  %v747_v34 = vor.u32 %v745_v12, %v744_v9  ;;  %v646_v35 = vshrl.u32 %v609_v16, 16  ;;  %v4128_v9 = vld [vmem:[%s5291_s3 + $0x118] sm:$0xff] }
  0x1f   : > { %v803_v37 = vor.u32 %v5306_v14, %v800_v18  ;;  %v652_v38 = vshrl.u32 %v611_v19, 16  ;;  %v658_v40 = vshrl.u32 %v613_v25, 16  ;;  %v4131_v16 = vld [vmem:[%s3888_s18 + $0x18] sm:$0xff]   ;;  %v3517_v18 = vunpack.c.h.b16 %v3898_v5  ;;  %v4139_v19 = vld [vmem:[%s5291_s3 + $0x150] sm:$0xff] }
  0x20   : > { %v3524_v25 = vunpack.c.l.b16 %v4131_v16  ;;  %v878_v13 = vrot.slane %v745_v12, 1 }
  0x21   : > { %1363 = vmatpush.bf16.msra.mxu0 %v3918_v11  ;;  %3709 = vmatpush.bf16.msra.mxu1 %v3918_v11  ;;  %v4114_v60 = vsel %vm3962_vm2, %v646_v35, %v803_v37 }
  0x22   : > { %3710 = vmatpush.bf16.msra.mxu2 %v3918_v11  ;;  %3711 = vmatpush.bf16.msra.mxu3 %v3918_v11  ;;  %5377 = vst [vmem:[#allocation6_spill] sm:$0xff] %v4114_v60 }
  0x25   : > { %1364 = vmatpush.bf16.msra.mxu0 %v3937_v22  ;;  %3712 = vmatpush.bf16.msra.mxu1 %v3937_v22 }
  0x26   : > { %3713 = vmatpush.bf16.msra.mxu2 %v3937_v22  ;;  %3714 = vmatpush.bf16.msra.mxu3 %v3937_v22 }
  0x29   : > { %1365 = vmatpush.bf16.msra.mxu0 %v3954_v31  ;;  %3715 = vmatpush.bf16.msra.mxu1 %v3954_v31 }
  0x2a   : > { %3716 = vmatpush.bf16.msra.mxu2 %v3954_v31  ;;  %3717 = vmatpush.bf16.msra.mxu3 %v3954_v31 }
  0x2c   : > { %1366 = vmatmul.bf16.vlgmr.msra.gmra.mxu0 %v3979_v42  ;;  %1406 = vmatmul.bf16.vlgmr.msra.gmra.mxu1 %v3983_v43 }
  0x2d   : > { %1416 = vmatmul.bf16.vlgmr.msra.gmra.mxu2 %v3997_v46  ;;  %1426 = vmatmul.bf16.vlgmr.msra.gmra.mxu3 %v4001_v47 }
  0x2e   : > { %1516 = vmatpush.bf16.msrb.mxu2 %v3973_v41  ;;  %1595 = vmatpush.bf16.msrb.mxu3 %v3850_v0  ;;  %v601_v0 = vpack.c.b16 %v3520_v53, %v3520_v53  ;;  %v831_v53 = vor.u32 %v5298_v28, %v828_v27  ;;  %v5312_v27 = vshrl.u32 %v4131_v16, 16 }
  0x2f   : > { %1437 = vmatpush.bf16.msrb.mxu1 %v3988_v44  ;;  %1875 = vmatpush.bf16.msrb.mxu0 %v4006_v48 }
  0x30   : > { %v622_v33 = vshrl.u32 %v601_v0, 16 }
  0x32   : > { %1517 = vmatpush.bf16.msrb.mxu2 %v4019_v51  ;;  %1596 = vmatpush.bf16.msrb.mxu3 %v3857_v1  ;;  %v5302_v1 = vshll.u32 %v4012_v50, 16  ;;  %v4110_v57 = vsel %vm3962_vm2, %v622_v33, %v747_v34  ;;  %v923_v33 = vpack.c.b16 %v3517_v18, %v3517_v18  ;;  %v4161_v34 = vld [vmem:[%s5291_s3 + $0x148] sm:$0xff]  ;;  %v876_v18 = vrot.slane %v738_v20, 1 }
  0x33   : > { %1438 = vmatpush.bf16.msrb.mxu1 %v4037_v58  ;;  %1876 = vmatpush.bf16.msrb.mxu0 %v4046_v62  ;;  %5376 = vst [vmem:[#allocation5_spill] sm:$0xff] %v4110_v57 }
  0x34   : > { %v817_v39 = vor.u32 %v5302_v1, %v814_v24  ;;  %v4144_v24 = vld [vmem:[%s3888_s18] sm:$0xff]   ;;  %v943_v61 = vshll.u32 %v923_v33, 16  ;;  %v4205_v1 = vld [vmem:[%s5291_s3 + $0x38] sm:$0xff] }
  0x35   : > { %v3512_v35 = vunpack.c.l.b16 %v4144_v24  ;;  %v5309_v37 = vshrl.u32 %v4144_v24, 16  ;;  %v5310_v30 = vshll.u32 %v4144_v24, 16  ;;  %v5396_v46 = vshrl.u32 %v4144_v24, 16 }
  0x36   : > { %1518 = vmatpush.bf16.msrb.mxu2 %v4053_v63  ;;  %1597 = vmatpush.bf16.msrb.mxu3 %v3868_v2  ;;  %v4094_v2 = vld [vmem:[%s5291_s3 + $0x120] sm:$0xff]  ;;  %v4119_v0 = vsel %vm3962_vm2, %v652_v38, %v817_v39  ;;  %v602_v39 = vpack.c.b16 %v3524_v25, %v3524_v25  ;;  %v945_v59 = vrot.slane %v943_v61, 4 }
  0x37   : > { %1439 = vmatpush.bf16.msrb.mxu1 %v4066_v23  ;;  %1877 = vmatpush.bf16.msrb.mxu0 %v4077_v29  ;;  %5378 = vst [vmem:[#allocation7_spill] sm:$0xff] %v4119_v0  ;;  %v4168_v38 = vld [vmem:[%s5291_s3 + $0x60] sm:$0xff]  ;;  %v599_v28 = vpack.c.b16 %v3512_v35, %v3512_v35  ;;  %v730_v17 = vrot.slane %v5309_v37, 7  ;;  %v877_v35 = vor.u32 %v876_v18, %v735_v10  ;;  %v4218_v10 = vld [vmem:[%s5291_s3 + $0xb8] sm:$0xff] }
  0x38   : > { %v4187_v25 = vld [vmem:[%s5291_s3 + $0x140] sm:$0xff]  ;;  %v625_v20 = vshrl.u32 %v602_v39, 16  ;;  %v5380_v39 = vmov 0 }
  0x39   : > { %v5381_v39 = vsel %vm4209_vm5, 4294967295, %v5380_v39  ;;  %v733_v15 = vor.u32 %v5310_v30, %v730_v17  ;;  %v4229_v61 = vsel %vm4209_vm5, %v877_v35, %v945_v59  ;;  %v4232_v17 = vld [vmem:[%s3888_s18 + $0x20] sm:$0xff]   ;;  %v4248_v59 = vld [vmem:[%s5291_s3 + $0x30] sm:$0xff] }
  0x3a   : > { %1519 = vmatpush.bf16.msrb.mxu2 %v4084_v32  ;;  %1598 = vmatpush.bf16.msrb.mxu3 %v3880_v3  ;;  %v4123_v3 = vsel %vm3962_vm2, %v658_v40, %v831_v53  ;;  %v751_v40 = vrot.slane %v5312_v27, 7  ;;  %v4177_v53 = vld [vmem:[%s5291_s3 + $0x108] sm:$0xff]  ;;  %5382 = vst [vmem:[#allocation9_spill] sm:$0xff] %v5381_v39  ;;  %v759_v14 = vshll.u32 %v4232_v17, 16  ;;  %v879_v27 = vor.u32 %v878_v13, %v742_v54 }
  0x3b   : > { %1440 = vmatpush.bf16.msrb.mxu1 %v4094_v2  ;;  %5379 = vst [vmem:[#allocation8_spill] sm:$0xff] %v4123_v3  ;;  %1878 = vmatpush.bf16.msrb.mxu0 %v4168_v38 }
  0x3c   : > { %1371 = vmatmul.bf16.gmra.mxu0 %v4110_v57  ;;  %1411 = vmatmul.bf16.gmra.mxu1 %v4114_v60  ;;  %5384 = vst [vmem:[#allocation11_spill] sm:$0xff] %v4229_v61 }
  0x3d   : > { %1421 = vmatmul.bf16.gmra.mxu2 %v4119_v0  ;;  %1431 = vmatmul.bf16.gmra.mxu3 %v4123_v3 }
  0x3e   : > { %1520 = vmatpush.bf16.msrb.mxu2 %v4106_v55  ;;  %1599 = vmatpush.bf16.msrb.mxu3 %v3895_v4  ;;  %v4154_v4 = vld [vmem:[%s5291_s3 + $0x110] sm:$0xff] }
  0x3f   : > { %1441 = vmatpush.bf16.msrb.mxu1 %v4128_v9  ;;  %1879 = vmatpush.bf16.msrb.mxu0 %v4266_v26 }
  0x42   : > { %1521 = vmatpush.bf16.msrb.mxu2 %v4139_v19  ;;  %1600 = vmatpush.bf16.msrb.mxu3 %v3918_v11  ;;  %v5313_v11 = vshll.u32 %v4131_v16, 16 }
  0x43   : > { %1442 = vmatpush.bf16.msrb.mxu1 %v4154_v4 }
  0x44   : > { %v754_v33 = vor.u32 %v5313_v11, %v751_v40  ;;  %v616_v40 = vshrl.u32 %v599_v28, 16  ;;  %v3521_v28 = vunpack.c.h.b16 %v3991_v45 }
  0x46   : > { %1522 = vmatpush.bf16.msrb.mxu2 %v4161_v34  ;;  %1601 = vmatpush.bf16.msrb.mxu3 %v3937_v22  ;;  %v4198_v22 = vld [vmem:[%s5291_s3 + $0x100] sm:$0xff]  ;;  %v4237_v18 = vsel %vm3962_vm2, %v616_v40, %v733_v15  ;;  %v3528_v15 = vunpack.c.l.b16 %v4232_v17 }
  0x47   : > { %1443 = vmatpush.bf16.msrb.mxu1 %v4177_v53 }
  0x4a   : > { %1523 = vmatpush.bf16.msrb.mxu2 %v4187_v25  ;;  %1602 = vmatpush.bf16.msrb.mxu3 %v3954_v31  ;;  %v4224_v31 = vsel %vm3962_vm2, %v625_v20, %v754_v33  ;;  %v5311_v20 = vshrl.u32 %v4232_v17, 16  ;;  %v924_v33 = vpack.c.b16 %v3521_v28, %v3521_v28  ;;  %v603_v28 = vpack.c.b16 %v3528_v15, %v3528_v15 }
  0x4b   : > { %5383 = vst [vmem:[#allocation10_spill] sm:$0xff] %v4224_v31  ;;  %1444 = vmatpush.bf16.msrb.mxu1 %v4198_v22 }
  0x4c   : > { %1376 = vmatmul.bf16.gmra.mxu0 %v4224_v31  ;;  %v758_v56 = vrot.slane %v5311_v20, 7  ;;  %v947_v21 = vshll.u32 %v924_v33, 16  ;;  %v628_v15 = vshrl.u32 %v603_v28, 16 }
  0x4d   : > { %1524 = vmatmul.bf16.vlgmr.msrb.gmra.mxu2 %v4229_v61  ;;  %1603 = vmatmul.bf16.vlgmr.msrb.gmra.mxu3 %v4237_v18 }
  0x4e   : > { %1614 = vmatpush.bf16.msra.mxu3 %v3988_v44  ;;  %2033 = vmatpush.bf16.msra.mxu2 %v4205_v1  ;;  %v4243_v44 = vld [vmem:[%s3888_s18 + $0x78] sm:$0xff]   ;;  %v761_v20 = vor.u32 %v759_v14, %v758_v56  ;;  %v949_v11 = vrot.slane %v947_v21, 4  ;;  %v3525_v56 = vunpack.c.h.b16 %v4131_v16 }
  0x4f   : > { %1954 = vmatpush.bf16.msra.mxu1 %v4218_v10  ;;  %v3572_v35 = vunpack.c.l.b16 %v4243_v44  ;;  %v5316_v40 = vshrl.u32 %v4243_v44, 16  ;;  %v5402_v60 = vshrl.u32 %v4243_v44, 16 }
  0x50   : > { %1445 = vmatmul.bf16.vlgmr.msrb.gmra.mxu1 %v3898_v5  ;;  %v4289_v33 = vsel %vm3962_vm2, %v628_v15, %v761_v20  ;;  %v925_v54 = vpack.c.b16 %v3525_v56, %v3525_v56 }
  0x51   : > { %v614_v37 = vpack.c.b16 %v3572_v35, %v3572_v35  ;;  %v835_v30 = vrot.slane %v5316_v40, 7  ;;  %5385 = vst [vmem:[#allocation12_spill] sm:$0xff] %v4289_v33  ;;  %v4296_v35 = vld [vmem:[%s3888_s18 + $0x28] sm:$0xff]  }
  0x52   : > { %1615 = vmatpush.bf16.msra.mxu3 %v4037_v58  ;;  %2034 = vmatpush.bf16.msra.mxu2 %v4248_v59  ;;  %v4259_v58 = vld [vmem:[%s5291_s3 + $0xb0] sm:$0xff]  ;;  %v3532_v21 = vunpack.c.l.b16 %v4296_v35  ;;  %v951_v28 = vshll.u32 %v925_v54, 16 }
  0x53   : > { %1955 = vmatpush.bf16.msra.mxu1 %v4259_v58  ;;  %v661_v47 = vshrl.u32 %v614_v37, 16  ;;  %v766_v37 = vshll.u32 %v4296_v35, 16 }
  0x56   : > { %1616 = vmatpush.bf16.msra.mxu3 %v4066_v23  ;;  %v5317_v23 = vshll.u32 %v4243_v44, 16 }
  0x58   : > { %v838_v12 = vor.u32 %v5317_v23, %v835_v30  ;;  %v5318_v30 = vshrl.u32 %v4296_v35, 16  ;;  %v5391_v23 = vshrl.u32 %v4232_v17, 16 }
  0x5a   : > { %1617 = vmatpush.bf16.msra.mxu3 %v4094_v2  ;;  %v4293_v2 = vsel %vm4209_vm5, %v879_v27, %v949_v11  ;;  %v4301_v13 = vsel %vm3962_vm2, %v661_v47, %v838_v12  ;;  %v4313_v47 = vld [vmem:[%s5291_s3 + $0x50] sm:$0xff]  ;;  %v604_v27 = vpack.c.b16 %v3532_v21, %v3532_v21  ;;  %v5387_v11 = vshll.u32 %v4131_v16, 16 }
  0x5b   : > { %5386 = vst [vmem:[#allocation13_spill] sm:$0xff] %v4301_v13  ;;  %1880 = vmatpush.bf16.msrb.mxu0 %v4313_v47  ;;  %v5388_v12 = vshrl.u32 %v4131_v16, 16  ;;  %v953_v21 = vrot.slane %v951_v28, 4  ;;  %v4367_v28 = vld [vmem:[%s5291_s3 + $0x20] sm:$0xff] }
  0x5c   : > { %1381 = vmatmul.bf16.gmra.mxu0 %v4289_v33  ;;  %v880_v20 = vrot.slane %v5387_v11, 1  ;;  %v631_v15 = vshrl.u32 %v604_v27, 16  ;;  %v3529_v27 = vunpack.c.h.b16 %v4232_v17  ;;  %v4356_v11 = vld [vmem:[%s5291_s3 + $0xa8] sm:$0xff] }
  0x5d   : > { %1529 = vmatmul.bf16.gmra.mxu2 %v4293_v2  ;;  %1608 = vmatmul.bf16.gmra.mxu3 %v4301_v13 }
  0x5e   : > { %1618 = vmatpush.bf16.msra.mxu3 %v4128_v9  ;;  %v4318_v9 = vld [vmem:[%s5291_s3 + $0x28] sm:$0xff]  ;;  %v881_v56 = vor.u32 %v880_v20, %v5388_v12  ;;  %1956 = vmatpush.bf16.msra.mxu1 %v4356_v11 }
  0x5f   : > { %2035 = vmatpush.bf16.msra.mxu2 %v4318_v9  ;;  %v4361_v20 = vld [vmem:[%s5291_s3 + $0x48] sm:$0xff] }
  0x60   : > { %1450 = vmatmul.bf16.gmra.mxu1 %v3991_v45  ;;  %v4341_v54 = vsel %vm4209_vm5, %v881_v56, %v953_v21  ;;  %1881 = vmatpush.bf16.msrb.mxu0 %v4361_v20 }
  0x61   : > { %5390 = vst [vmem:[#allocation15_spill] sm:$0xff] %v4341_v54 }
  0x62   : > { %1619 = vmatpush.bf16.msra.mxu3 %v4154_v4  ;;  %v765_v4 = vrot.slane %v5318_v30, 7 }
  0x63   : > { %2036 = vmatpush.bf16.msra.mxu2 %v4367_v28 }
  0x66   : > { %1620 = vmatpush.bf16.msra.mxu3 %v4177_v53  ;;  %v768_v53 = vor.u32 %v766_v37, %v765_v4 }
  0x68   : > { %v4336_v40 = vsel %vm3962_vm2, %v631_v15, %v768_v53 }
  0x69   : > { %5389 = vst [vmem:[#allocation14_spill] sm:$0xff] %v4336_v40 }
  0x6a   : > { %1621 = vmatpush.bf16.msra.mxu3 %v4198_v22  ;;  %v4344_v22 = vld [vmem:[%s3888_s18 + $0x30] sm:$0xff]  }
  0x6b   : > { %v5319_v4 = vshrl.u32 %v4344_v22, 16  ;;  %v5320_v12 = vshll.u32 %v4344_v22, 16 }
  0x6c   : > { %1386 = vmatmul.bf16.gmra.mxu0 %v4336_v40 }
  0x6d   : > { %1534 = vmatmul.bf16.gmra.mxu2 %v4341_v54  ;;  %1622 = vmatmul.bf16.vlgmr.msra.gmra.mxu3 %v4144_v24  ;;  %v772_v53 = vrot.slane %v5319_v4, 7 }
  0x6e   : > { %1633 = vmatpush.bf16.msrb.mxu3 %v3973_v41  ;;  %v3536_v41 = vunpack.c.l.b16 %v4344_v22 }
  0x70   : > { %1455 = vmatmul.bf16.gmra.mxu1 %v4131_v16  ;;  %v605_v15 = vpack.c.b16 %v3536_v41, %v3536_v41 }
  0x72   : > { %1634 = vmatpush.bf16.msrb.mxu3 %v4019_v51  ;;  %v926_v51 = vpack.c.b16 %v3529_v27, %v3529_v27  ;;  %v634_v21 = vshrl.u32 %v605_v15, 16  ;;  %v775_v27 = vor.u32 %v5320_v12, %v772_v53  ;;  %v3513_v15 = vunpack.c.h.b16 %v4144_v24 }
  0x73   : > { %v5394_v12 = vshll.u32 %v4144_v24, 16 }
  0x74   : > { %v955_v56 = vshll.u32 %v926_v51, 16  ;;  %v4385_v4 = vsel %vm3962_vm2, %v634_v21, %v775_v27  ;;  %v4392_v51 = vld [vmem:[%s3888_s18 + $0x38] sm:$0xff]  }
  0x75   : > { %5392 = vst [vmem:[#allocation16_spill] sm:$0xff] %v4385_v4 }
  0x76   : > { %1635 = vmatpush.bf16.msrb.mxu3 %v4053_v63  ;;  %v882_v63 = vrot.slane %v759_v14, 1  ;;  %v957_v30 = vrot.slane %v955_v56, 4  ;;  %v4416_v56 = vld [vmem:[%s5291_s3 + $0xa0] sm:$0xff] }
  0x77   : > { %1957 = vmatpush.bf16.msra.mxu1 %v4416_v56 }
  0x78   : > { %v883_v41 = vor.u32 %v882_v63, %v5391_v23  ;;  %v5322_v23 = vshrl.u32 %v4392_v51, 16  ;;  %v922_v63 = vpack.c.b16 %v3513_v15, %v3513_v15 }
  0x7a   : > { %1636 = vmatpush.bf16.msrb.mxu3 %v4084_v32  ;;  %v4389_v14 = vsel %vm4209_vm5, %v883_v41, %v957_v30  ;;  %v3533_v32 = vunpack.c.h.b16 %v4296_v35  ;;  %v3441_v30 = vld [vmem:[%s5291_s3 + $0x18] sm:$0xff]  ;;  %v779_v27 = vrot.slane %v5322_v23, 7  ;;  %v5332_v41 = vshll.u32 %v4392_v51, 16 }
  0x7b   : > { %5393 = vst [vmem:[#allocation17_spill] sm:$0xff] %v4389_v14  ;;  %2037 = vmatpush.bf16.msra.mxu2 %v3441_v30  ;;  %v939_v13 = vshll.u32 %v922_v63, 16  ;;  %v3438_v63 = vld [vmem:[%s5291_s3] sm:$0xff] }
  0x7c   : > { %1391 = vmatmul.bf16.gmra.mxu0 %v4385_v4  ;;  %v927_v53 = vpack.c.b16 %v3533_v32, %v3533_v32  ;;  %v3440_v32 = vld [vmem:[%s5291_s3 + $0x10] sm:$0xff]  ;;  %v782_v0 = vor.u32 %v5332_v41, %v779_v27  ;;  %v4453_v27 = vld [vmem:[%s3888_s18 + $0x40] sm:$0xff]  }
  0x7d   : > { %1539 = vmatmul.bf16.gmra.mxu2 %v4389_v14  ;;  %1627 = vmatmul.bf16.gmra.mxu3 %v4243_v44  ;;  %v941_v54 = vrot.slane %v939_v13, 4 }
  0x7e   : > { %1637 = vmatpush.bf16.msrb.mxu3 %v4106_v55  ;;  %v3540_v55 = vunpack.c.l.b16 %v4392_v51  ;;  %v959_v15 = vshll.u32 %v927_v53, 16  ;;  %v5395_v53 = vshrl.u32 %v4296_v35, 16 }
  0x7f   : > { %2038 = vmatpush.bf16.msra.mxu2 %v3440_v32 }
  0x80   : > { %1460 = vmatmul.bf16.gmra.mxu1 %v4232_v17  ;;  %v606_v21 = vpack.c.b16 %v3540_v55, %v3540_v55  ;;  %v874_v55 = vrot.slane %v5394_v12, 1 }
  0x82   : > { %1638 = vmatpush.bf16.msrb.mxu3 %v4139_v19  ;;  %v4409_v19 = vld [vmem:[%s5291_s3 + $0x40] sm:$0xff]  ;;  %v637_v23 = vshrl.u32 %v606_v21, 16  ;;  %v875_v12 = vor.u32 %v874_v55, %v5396_v46  ;;  %v3537_v46 = vunpack.c.h.b16 %v4344_v22  ;;  %v3509_v55 = vld [vmem:[%s5291_s3 + $0x238] sm:$0xff] }
  0x83   : > { %1882 = vmatpush.bf16.msrb.mxu0 %v4409_v19 }
  0x84   : > { %v4458_v13 = vsel %vm4209_vm5, %v875_v12, %v941_v54 }
  0x86   : > { %1639 = vmatpush.bf16.msrb.mxu3 %v4161_v34  ;;  %v884_v34 = vrot.slane %v766_v37, 1  ;;  %v3439_v37 = vld [vmem:[%s5291_s3 + $0x8] sm:$0xff] }
  0x87   : > { %2039 = vmatpush.bf16.msra.mxu2 %v3439_v37  ;;  %2441 = vmatpush.bf16.msra.mxu0 %v3509_v55 }
  0x88   : > { %v885_v14 = vor.u32 %v884_v34, %v5395_v53  ;;  %v5399_v53 = vshll.u32 %v4344_v22, 16 }
  0x8a   : > { %1640 = vmatpush.bf16.msrb.mxu3 %v4187_v25  ;;  %v961_v25 = vrot.slane %v959_v15, 4  ;;  %v787_v15 = vshll.u32 %v4453_v27, 16 }
  0x8b   : > { %2040 = vmatpush.bf16.msra.mxu2 %v3438_v63 }
  0x8c   : > { %v4450_v21 = vsel %vm4209_vm5, %v885_v14, %v961_v25  ;;  %v5331_v14 = vshrl.u32 %v4453_v27, 16  ;;  %v886_v25 = vrot.slane %v5399_v53, 1 }
  0x8d   : > { %5398 = vst [vmem:[#allocation19_spill] sm:$0xff] %v4450_v21  ;;  %1544 = vmatmul.bf16.gmra.mxu2 %v4450_v21  ;;  %1641 = vmatmul.bf16.vlgmr.msrb.gmra.mxu3 %v4458_v13 }
  0x8e   : > { %1796 = vmatpush.bf16.msra.mxu3 %v4205_v1  ;;  %v4443_v1 = vsel %vm3962_vm2, %v637_v23, %v782_v0  ;;  %v3544_v0 = vunpack.c.l.b16 %v4453_v27  ;;  %v928_v23 = vpack.c.b16 %v3537_v46, %v3537_v46 }
  0x8f   : > { %5397 = vst [vmem:[#allocation18_spill] sm:$0xff] %v4443_v1  ;;  %1396 = vmatmul.bf16.gmra.mxu0 %v4443_v1  ;;  %2052 = vmatpush.bf16.msrb.mxu2 %v4006_v48  ;;  %v5400_v48 = vshll.u32 %v4243_v44, 16 }
  0x90   : > { %1465 = vmatmul.bf16.gmra.mxu1 %v4296_v35  ;;  %v607_v34 = vpack.c.b16 %v3544_v0, %v3544_v0  ;;  %v963_v12 = vshll.u32 %v928_v23, 16 }
  0x91   : > { %v904_v46 = vrot.slane %v5400_v48, 1 }
  0x92   : > { %1797 = vmatpush.bf16.msra.mxu3 %v4248_v59  ;;  %v3573_v59 = vunpack.c.h.b16 %v4243_v44  ;;  %v965_v21 = vrot.slane %v963_v12, 4 }
  0x93   : > { %2053 = vmatpush.bf16.msrb.mxu2 %v4046_v62  ;;  %v905_v53 = vor.u32 %v904_v46, %v5402_v60  ;;  %v4506_v60 = vld [vmem:[%s5291_s3 + $0x1f8] sm:$0xff] }
  0x94   : > { %v937_v54 = vpack.c.b16 %v3573_v59, %v3573_v59  ;;  %v640_v59 = vshrl.u32 %v607_v34, 16 }
  0x96   : > { %1798 = vmatpush.bf16.msra.mxu3 %v4318_v9  ;;  %v786_v9 = vrot.slane %v5331_v14, 7  ;;  %v5401_v14 = vshrl.u32 %v4344_v22, 16 }
  0x97   : > { %2054 = vmatpush.bf16.msrb.mxu2 %v4077_v29 }
  0x98   : > { %v789_v0 = vor.u32 %v787_v15, %v786_v9  ;;  %v887_v41 = vor.u32 %v886_v25, %v5401_v14 }
  0x9a   : > { %1799 = vmatpush.bf16.msra.mxu3 %v4367_v28  ;;  %v999_v28 = vshll.u32 %v937_v54, 16  ;;  %v4488_v62 = vsel %vm3962_vm2, %v640_v59, %v789_v0  ;;  %v3541_v54 = vunpack.c.h.b16 %v4392_v51  ;;  %v5409_v59 = vshrl.u32 %v4453_v27, 16 }
  0x9b   : > { %2055 = vmatpush.bf16.msrb.mxu2 %v4168_v38  ;;  %v4514_v38 = vld [vmem:[%s5291_s3 + $0x98] sm:$0xff] }
  0x9c   : > { %v1001_v23 = vrot.slane %v999_v28, 4  ;;  %v929_v44 = vpack.c.b16 %v3541_v54, %v3541_v54  ;;  %1958 = vmatpush.bf16.msra.mxu1 %v4514_v38  ;;  %v890_v28 = vrot.slane %v787_v15, 1 }
  0x9e   : > { %1800 = vmatpush.bf16.msra.mxu3 %v3441_v30  ;;  %v4492_v30 = vsel %vm4209_vm5, %v887_v41, %v965_v21  ;;  %v4498_v29 = vsel %vm4209_vm5, %v905_v53, %v1001_v23  ;;  %v5405_v41 = vshll.u32 %v4392_v51, 16  ;;  %v5406_v21 = vshrl.u32 %v4392_v51, 16 }
  0x9f   : > { %5403 = vst [vmem:[#allocation20_spill] sm:$0xff] %v4492_v30  ;;  %1401 = vmatmul.bf16.gmra.mxu0 %v4488_v62  ;;  %1549 = vmatmul.bf16.gmra.mxu2 %v4492_v30  ;;  %v891_v0 = vor.u32 %v890_v28, %v5409_v59  ;;  %v4584_v28 = vld [vmem:[%s5291_s3 + $0x1e8] sm:$0xff] }
  0xa0   : > { %5404 = vst [vmem:[#allocation21_spill] sm:$0xff] %v4498_v29  ;;  %1470 = vmatmul.bf16.gmra.mxu1 %v4344_v22  ;;  %1646 = vmatmul.bf16.gmra.mxu3 %v4498_v29 }
  0xa1   : > { %2056 = vmatpush.bf16.msrb.mxu2 %v4266_v26 }
  0xa2   : > { %1801 = vmatpush.bf16.msra.mxu3 %v3440_v32  ;;  %v888_v32 = vrot.slane %v5405_v41, 1 }
  0xa4   : > { %v889_v14 = vor.u32 %v888_v32, %v5406_v21  ;;  %v3549_v32 = vunpack.c.h.b16 %v3903_v6 }
  0xa5   : > { %2057 = vmatpush.bf16.msrb.mxu2 %v4313_v47  ;;  %v3545_v47 = vunpack.c.h.b16 %v4453_v27 }
  0xa6   : > { %1802 = vmatpush.bf16.msra.mxu3 %v3439_v37  ;;  %v967_v37 = vshll.u32 %v929_v44, 16  ;;  %v931_v15 = vpack.c.b16 %v3549_v32, %v3549_v32 }
  0xa8   : > { %v969_v26 = vrot.slane %v967_v37, 4 }
  0xa9   : > { %2058 = vmatpush.bf16.msrb.mxu2 %v4361_v20  ;;  %v1367_v34 = vpop.f32.mrf.mxu0  ;;  %v4528_v9 = vpop.f32.mrf.mxu1  ;;  %v930_v20 = vpack.c.b16 %v3545_v47, %v3545_v47  ;;  %v4576_v47 = vld [vmem:[%s5291_s3 + $0x90] sm:$0xff] }
  0xaa   : > { %1803 = vmatpush.bf16.msra.mxu3 %v3438_v63  ;;  %v4526_v63 = vld [vmem:[%s5291_s3 + $0x1f0] sm:$0xff]  ;;  %v4532_v55 = vsel %vm4209_vm5, %v889_v14, %v969_v26  ;;  %1959 = vmatpush.bf16.msra.mxu1 %v4576_v47 }
  0xab   : > { %5407 = vst [vmem:[#allocation22_spill] sm:$0xff] %v4532_v55 }
  0xad   : > { %2059 = vmatpush.bf16.msrb.mxu2 %v4409_v19  ;;  %v3508_v19 = vld [vmem:[%s5291_s3 + $0x230] sm:$0xff] }
  0xae   : > { %2362 = vmatpush.bf16.msrb.mxu3 %v4506_v60  ;;  %2442 = vmatpush.bf16.msra.mxu0 %v3508_v19  ;;  %v975_v19 = vshll.u32 %v931_v15, 16 }
  0xaf   : > { %1883 = vmatmul.bf16.vlgmr.msrb.gmra.mxu0 %v4144_v24  ;;  %1554 = vmatmul.bf16.gmra.mxu2 %v4532_v55  ;;  %v971_v24 = vshll.u32 %v930_v20, 16 }
  0xb0   : > { %1475 = vmatmul.bf16.gmra.mxu1 %v4392_v51  ;;  %1804 = vmatmul.bf16.vlgmr.msra.gmra.mxu3 %v4237_v18  ;;  %v4541_v25 = vpop.f32.mrf.mxu2  ;;  %v4543_v12 = vpop.f32.mrf.mxu3 }
  0xb1   : > { %5408 = vst [vmem:[#allocation23_spill] sm:$0xff] %v4543_v12  ;;  %v1369_v48 = vpop.f32.mrf.mxu0  ;;  %v4545_v46 = vpop.f32.mrf.mxu1  ;;  %v973_v53 = vrot.slane %v971_v24, 4  ;;  %v5416_v24 = vshrl.u32 %v3903_v6, 16 }
  0xb2   : > { %2363 = vmatpush.bf16.msrb.mxu3 %v4526_v63 }
  0xb3   : > { %v4560_v41 = vsel %vm4209_vm5, %v891_v0, %v973_v53  ;;  %v977_v0 = vrot.slane %v975_v19, 4  ;;  %v3507_v19 = vld [vmem:[%s5291_s3 + $0x228] sm:$0xff] }
  0xb4   : > { %5412 = vst [vmem:[#allocation26_spill] sm:$0xff] %v4560_v41  ;;  %2443 = vmatpush.bf16.msra.mxu0 %v3507_v19 }
  0xb6   : > { %2364 = vmatpush.bf16.msrb.mxu3 %v4584_v28 }
  0xb8   : > { %v4552_v18 = vpop.f32.mrf.mxu2  ;;  %v4554_v23 = vpop.f32.mrf.mxu3 }
  0xb9   : > { %5410 = vst [vmem:[#allocation24_spill] sm:$0xff] %v4552_v18  ;;  %v1372_v54 = vpop.f32.mrf.mxu0  ;;  %v4556_v44 = vpop.f32.mrf.mxu1 }
  0xba   : > { %5411 = vst [vmem:[#allocation25_spill] sm:$0xff] %v4554_v23 }
  0xbf   : > { %1888 = vmatmul.bf16.gmra.mxu0 %v3898_v5  ;;  %1559 = vmatmul.bf16.gmra.mxu2 %v4560_v41  ;;  %v5415_v5 = vshll.u32 %v3903_v6, 16 }
  0xc0   : > { %1480 = vmatmul.bf16.gmra.mxu1 %v4453_v27  ;;  %1809 = vmatmul.bf16.gmra.mxu3 %v3979_v42  ;;  %v4567_v37 = vpop.f32.mrf.mxu2  ;;  %v4569_v21 = vpop.f32.mrf.mxu3  ;;  %v3553_v42 = vunpack.c.h.b16 %v4009_v49 }
  0xc1   : > { %5413 = vst [vmem:[#allocation27_spill] sm:$0xff] %v4567_v37  ;;  %v1374_v14 = vpop.f32.mrf.mxu0  ;;  %v4571_v26 = vpop.f32.mrf.mxu1  ;;  %v892_v20 = vrot.slane %v5415_v5, 1 }
  0xc2   : > { %5414 = vst [vmem:[#allocation28_spill] sm:$0xff] %v4569_v21 }
  0xc3   : > { %v893_v59 = vor.u32 %v892_v20, %v5416_v24  ;;  %v932_v20 = vpack.c.b16 %v3553_v42, %v3553_v42 }
  0xc5   : > { %v4595_v15 = vsel %vm4209_vm5, %v893_v59, %v977_v0 }
  0xc6   : > { %5419 = vst [vmem:[#allocation31_spill] sm:$0xff] %v4595_v15 }
  0xc8   : > { %v4589_v53 = vpop.f32.mrf.mxu2  ;;  %v4591_v32 = vpop.f32.mrf.mxu3 }
  0xc9   : > { %5417 = vst [vmem:[#allocation29_spill] sm:$0xff] %v4589_v53  ;;  %v1377_v29 = vpop.f32.mrf.mxu0 }
  0xca   : > { %5418 = vst [vmem:[#allocation30_spill] sm:$0xff] %v4591_v32 }
  0xcd   : > { %v1446_v5 = vpop.f32.mrf.mxu1 }
  0xce   : > { %v1447_v41 = vadd.f32 %v1446_v5, %v1367_v34 }
  0xcf   : > { %1893 = vmatmul.bf16.gmra.mxu0 %v3991_v45  ;;  %1564 = vmatmul.bf16.gmra.mxu2 %v4595_v15  ;;  %v5420_v45 = vshll.u32 %v4009_v49, 16  ;;  %v5421_v15 = vshrl.u32 %v4009_v49, 16 }
  0xd0   : > { %1485 = vmatmul.bf16.gmra.mxu1 %v3903_v6  ;;  %1814 = vmatmul.bf16.gmra.mxu3 %v4110_v57  ;;  %v1525_v24 = vpop.f32.mrf.mxu2  ;;  %v1604_v0 = vpop.f32.mrf.mxu3  ;;  %v979_v6 = vshll.u32 %v932_v20, 16 }
  0xd1   : > { %v4605_v59 = vadd.f32 %v1525_v24, %v1447_v41  ;;  %v1379_v32 = vpop.f32.mrf.mxu0  ;;  %v894_v5 = vrot.slane %v5420_v45, 1  ;;  %v3557_v24 = vunpack.c.h.b16 %v3906_v7  ;;  %v4635_v45 = vld [vmem:[%s5291_s3 + $0x1e0] sm:$0xff] }
  0xd2   : > { %v981_v42 = vrot.slane %v979_v6, 4  ;;  %5424 = vst [vmem:[#allocation33_spill] sm:$0xff] %v4635_v45  ;;  %2365 = vmatpush.bf16.msrb.mxu3 %v4635_v45  ;;  %v5425_v6 = vshrl.u32 %v3906_v7, 16 }
  0xd3   : > { %v895_v55 = vor.u32 %v894_v5, %v5421_v15 }
  0xd5   : > { %v1448_v34 = vpop.f32.mrf.mxu1  ;;  %v4615_v41 = vsel %vm4209_vm5, %v895_v55, %v981_v42 }
  0xd6   : > { %v1449_v21 = vadd.f32 %v1448_v34, %v1369_v48  ;;  %5422 = vst [vmem:[#allocation32_spill] sm:$0xff] %v4615_v41  ;;  %v933_v48 = vpack.c.b16 %v3557_v24, %v3557_v24 }
  0xd8   : > { %v1527_v23 = vpop.f32.mrf.mxu2  ;;  %v1606_v57 = vpop.f32.mrf.mxu3  ;;  %v983_v34 = vshll.u32 %v933_v48, 16 }
  0xd9   : > { %v4611_v12 = vadd.f32 %v1527_v23, %v1449_v21  ;;  %v1382_v30 = vpop.f32.mrf.mxu0  ;;  %v4625_v23 = vld [vmem:[%s5291_s3 + $0x88] sm:$0xff] }
  0xda   : > { %1960 = vmatpush.bf16.msra.mxu1 %v4625_v23 }
  0xdd   : > { %v1451_v19 = vpop.f32.mrf.mxu1 }
  0xde   : > { %v1452_v53 = vadd.f32 %v1451_v19, %v1372_v54 }
  0xdf   : > { %1898 = vmatmul.bf16.gmra.mxu0 %v4131_v16  ;;  %1569 = vmatmul.bf16.gmra.mxu2 %v4615_v41 }
  0xe0   : > { %1490 = vmatmul.bf16.gmra.mxu1 %v4009_v49  ;;  %1819 = vmatmul.bf16.gmra.mxu3 %v4224_v31  ;;  %v1530_v21 = vpop.f32.mrf.mxu2  ;;  %v1609_v54 = vpop.f32.mrf.mxu3  ;;  %v5423_v49 = vshll.u32 %v3906_v7, 16 }
  0xe1   : > { %v4628_v55 = vadd.f32 %v1530_v21, %v1452_v53  ;;  %v1384_v15 = vpop.f32.mrf.mxu0  ;;  %v985_v53 = vrot.slane %v983_v34, 4 }
  0xe2   : > { %v896_v20 = vrot.slane %v5423_v49, 1  ;;  %v3561_v49 = vunpack.c.h.b16 %v4012_v50 }
  0xe4   : > { %v897_v42 = vor.u32 %v896_v20, %v5425_v6  ;;  %v934_v20 = vpack.c.b16 %v3561_v49, %v3561_v49 }
  0xe5   : > { %v1453_v16 = vpop.f32.mrf.mxu1 }
  0xe6   : > { %v1454_v5 = vadd.f32 %v1453_v16, %v1374_v14  ;;  %v4644_v48 = vsel %vm4209_vm5, %v897_v42, %v985_v53  ;;  %v4650_v14 = vld [vmem:[%s5291_s3 + $0x220] sm:$0xff] }
  0xe7   : > { %5426 = vst [vmem:[#allocation34_spill] sm:$0xff] %v4644_v48  ;;  %2444 = vmatpush.bf16.msra.mxu0 %v4650_v14 }
  0xe8   : > { %v1532_v19 = vpop.f32.mrf.mxu2  ;;  %v1611_v21 = vpop.f32.mrf.mxu3  ;;  %5427 = vst [vmem:[#allocation35_spill] sm:$0xff] %v4650_v14 }
  0xe9   : > { %v4640_v24 = vadd.f32 %v1532_v19, %v1454_v5  ;;  %v1387_v41 = vpop.f32.mrf.mxu0 }
  0xed   : > { %v1456_v31 = vpop.f32.mrf.mxu1 }
  0xee   : > { %v1457_v16 = vadd.f32 %v1456_v31, %v1377_v29  ;;  %v5428_v31 = vshll.u32 %v4012_v50, 16 }
  0xef   : > { %1903 = vmatmul.bf16.gmra.mxu0 %v4232_v17  ;;  %1574 = vmatmul.bf16.gmra.mxu2 %v4644_v48  ;;  %v987_v17 = vshll.u32 %v934_v20, 16 }
  0xf0   : > { %1495 = vmatmul.bf16.gmra.mxu1 %v3906_v7  ;;  %1824 = vmatmul.bf16.gmra.mxu3 %v4289_v33  ;;  %v1535_v34 = vpop.f32.mrf.mxu2  ;;  %v1623_v6 = vpop.f32.mrf.mxu3  ;;  %v898_v29 = vrot.slane %v5428_v31, 1  ;;  %v5429_v7 = vshrl.u32 %v4012_v50, 16 }
  0xf1   : > { %v4657_v5 = vadd.f32 %v1535_v34, %v1457_v16  ;;  %v1389_v42 = vpop.f32.mrf.mxu0  ;;  %v1624_v53 = vadd.f32 %v1623_v6, %v1604_v0  ;;  %v989_v45 = vrot.slane %v987_v17, 4  ;;  %v3565_v6 = vunpack.c.h.b16 %v3909_v8  ;;  %v4697_v17 = vld [vmem:[%s5291_s3 + $0x218] sm:$0xff] }
  0xf2   : > { %v899_v48 = vor.u32 %v898_v29, %v5429_v7  ;;  %5432 = vst [vmem:[#allocation37_spill] sm:$0xff] %v4697_v17  ;;  %2445 = vmatpush.bf16.msra.mxu0 %v4697_v17  ;;  %v5433_v7 = vshrl.u32 %v3909_v8, 16 }
  0xf4   : > { %v4669_v0 = vsel %vm4209_vm5, %v899_v48, %v989_v45 }
  0xf5   : > { %v1458_v19 = vpop.f32.mrf.mxu1  ;;  %5430 = vst [vmem:[#allocation36_spill] sm:$0xff] %v4669_v0 }
  0xf6   : > { %v1459_v37 = vadd.f32 %v1458_v19, %v1379_v32  ;;  %v4675_v32 = vld [vmem:[%s5291_s3 + $0x80] sm:$0xff] }
  0xf7   : > { %1961 = vmatpush.bf16.msra.mxu1 %v4675_v32 }
  0xf8   : > { %v1537_v33 = vpop.f32.mrf.mxu2  ;;  %v1625_v14 = vpop.f32.mrf.mxu3 }
  0xf9   : > { %v4663_v49 = vadd.f32 %v1537_v33, %v1459_v37  ;;  %v4665_v18 = vpop.f32.mrf.mxu0  ;;  %v1626_v16 = vadd.f32 %v1625_v14, %v1606_v57  ;;  %v935_v57 = vpack.c.b16 %v3565_v6, %v3565_v6  ;;  %v4685_v33 = vld [vmem:[%s5291_s3 + $0x1d8] sm:$0xff]  ;;  %v5431_v14 = vshll.u32 %v3909_v8, 16  ;;  %v4713_v8 = vld [vmem:[%s3888_s18 + $0x68] sm:$0xff]  }
  0xfa   : > { %2366 = vmatpush.bf16.msrb.mxu3 %v4685_v33  ;;  %5435 = vst [vmem:[#allocation39_spill] sm:$0xff] %v4713_v8 }
  0xfb   : > { %v900_v19 = vrot.slane %v5431_v14, 1  ;;  %v991_v31 = vshll.u32 %v935_v57, 16 }
  0xfd   : > { %v1461_v34 = vpop.f32.mrf.mxu1  ;;  %v993_v6 = vrot.slane %v991_v31, 4 }
  0xfe   : > { %v1462_v20 = vadd.f32 %v1461_v34, %v1382_v30  ;;  %v901_v34 = vor.u32 %v900_v19, %v5433_v7 }
  0xff   : > { %1908 = vmatmul.bf16.gmra.mxu0 %v4296_v35  ;;  %1579 = vmatmul.bf16.gmra.mxu2 %v4669_v0 }
 0x100   : > { %1500 = vmatmul.bf16.gmra.mxu1 %v4012_v50  ;;  %1829 = vmatmul.bf16.gmra.mxu3 %v4336_v40  ;;  %v1540_v37 = vpop.f32.mrf.mxu2  ;;  %v1628_v35 = vpop.f32.mrf.mxu3 }
 0x101   : > { %v4688_v30 = vadd.f32 %v1540_v37, %v1462_v20  ;;  %v4690_v45 = vpop.f32.mrf.mxu0  ;;  %v1629_v48 = vadd.f32 %v1628_v35, %v1609_v54 }
 0x105   : > { %v1463_v50 = vpop.f32.mrf.mxu1 }
 0x106   : > { %v1464_v29 = vadd.f32 %v1463_v50, %v1384_v15  ;;  %v4708_v15 = vsel %vm4209_vm5, %v901_v34, %v993_v6  ;;  %v3569_v50 = vunpack.c.h.b16 %v4022_v52 }
 0x107   : > { %5434 = vst [vmem:[#allocation38_spill] sm:$0xff] %v4708_v15 }
 0x108   : > { %v1542_v20 = vpop.f32.mrf.mxu2  ;;  %v1630_v37 = vpop.f32.mrf.mxu3 }
 0x109   : > { %v4702_v54 = vadd.f32 %v1542_v20, %v1464_v29  ;;  %v1631_v57 = vadd.f32 %v1630_v37, %v1611_v21  ;;  %v936_v21 = vpack.c.b16 %v3569_v50, %v3569_v50 }
 0x10b   : > { %v995_v20 = vshll.u32 %v936_v21, 16 }
 0x10c   : > { %v4704_v35 = vpop.f32.mrf.mxu0 }
 0x10d   : > { %v1466_v14 = vpop.f32.mrf.mxu1 }
 0x10e   : > { %v1467_v0 = vadd.f32 %v1466_v14, %v1387_v41  ;;  %v4729_v14 = vld [vmem:[%s5291_s3 + $0x1b8] sm:$0xff] }
 0x10f   : > { %1913 = vmatmul.bf16.gmra.mxu0 %v4344_v22  ;;  %1584 = vmatmul.bf16.gmra.mxu2 %v4708_v15  ;;  %v5437_v22 = vshll.u32 %v4022_v52, 16 }
 0x110   : > { %1505 = vmatmul.bf16.gmra.mxu1 %v4713_v8  ;;  %1834 = vmatmul.bf16.gmra.mxu3 %v4385_v4  ;;  %v1545_v19 = vpop.f32.mrf.mxu2  ;;  %v1642_v29 = vpop.f32.mrf.mxu3 }
 0x111   : > { %v4718_v31 = vadd.f32 %v1545_v19, %v1467_v0  ;;  %v4722_v34 = vadd.f32 %v1642_v29, %v1624_v53  ;;  %v902_v6 = vrot.slane %v5437_v22, 1  ;;  %2520 = vmatpush.bf16.msrb.mxu1 %v4729_v14  ;;  %v5438_v0 = vshrl.u32 %v4022_v52, 16 }
 0x112   : > { %v997_v19 = vrot.slane %v995_v20, 4 }
 0x113   : > { %5436 = vst [vmem:[#allocation40_spill] sm:$0xff] %v4722_v34  ;;  %v903_v50 = vor.u32 %v902_v6, %v5438_v0  ;;  %v4749_v6 = vld [vmem:[%s5291_s3 + $0x1d0] sm:$0xff]  ;;  %v4752_v0 = vld [vmem:[%s483_s24] sm:$0xff]  }
 0x114   : > { %v4720_v7 = vpop.f32.mrf.mxu0  ;;  %2367 = vmatpush.bf16.msrb.mxu3 %v4749_v6  ;;  %v1069_v15 = vshll.u32 %v4752_v0, 16 }
 0x115   : > { %v1468_v41 = vpop.f32.mrf.mxu1  ;;  %v4744_v17 = vsel %vm4209_vm5, %v903_v50, %v997_v19 }
 0x116   : > { %v1469_v37 = vadd.f32 %v1468_v41, %v1389_v42  ;;  %5440 = vst [vmem:[#allocation42_spill] sm:$0xff] %v4744_v17 }
 0x118   : > { %v1547_v53 = vpop.f32.mrf.mxu2  ;;  %v1644_v42 = vpop.f32.mrf.mxu3 }
 0x119   : > { %v4738_v29 = vadd.f32 %v1547_v53, %v1469_v37  ;;  %v4740_v41 = vadd.f32 %v1644_v42, %v1626_v16  ;;  %v3576_v16 = vunpack.c.l.b16 %v4752_v0  ;;  %v5363_v37 = vshrl.u32 %v4752_v0, 16 }
 0x11b   : > { %5439 = vst [vmem:[#allocation41_spill] sm:$0xff] %v4740_v41 }
 0x11c   : > { %v1402_v21 = vpop.f32.mrf.mxu0 }
 0x11d   : > { %v1471_v22 = vpop.f32.mrf.mxu1 }
 0x11e   : > { %v1472_v20 = vadd.f32 %v1471_v22, %v4665_v18  ;;  %v1057_v22 = vpack.c.b16 %v3576_v16, %v3576_v16 }
 0x11f   : > { %1918 = vmatmul.bf16.gmra.mxu0 %v4392_v51  ;;  %1589 = vmatmul.bf16.gmra.mxu2 %v4744_v17 }
 0x120   : > { %1510 = vmatmul.bf16.gmra.mxu1 %v4022_v52  ;;  %1839 = vmatmul.bf16.gmra.mxu3 %v4443_v1  ;;  %v1068_v52 = vrot.slane %v5363_v37, 7  ;;  %v4771_v1 = vld [vmem:[%s5291_s3 + $0x210] sm:$0xff] }
 0x121   : > { %2446 = vmatpush.bf16.msra.mxu0 %v4771_v1 }
 0x122   : > { %v1550_v50 = vpop.f32.mrf.mxu2 }
 0x123   : > { %v4761_v19 = vadd.f32 %v1550_v50, %v1472_v20  ;;  %v1647_v18 = vpop.f32.mrf.mxu3  ;;  %v1059_v20 = vshrl.u32 %v1057_v22, 16 }
 0x124   : > { %v1404_v53 = vpop.f32.mrf.mxu0  ;;  %v4763_v42 = vadd.f32 %v1647_v18, %v1629_v48  ;;  %v1071_v48 = vor.u32 %v1069_v15, %v1068_v52 }
 0x125   : > { %v1473_v51 = vpop.f32.mrf.mxu1 }
 0x126   : > { %5441 = vst [vmem:[#allocation43_spill] sm:$0xff] %v4763_v42  ;;  %v1474_v4 = vadd.f32 %v1473_v51, %v4690_v45  ;;  %v1073_v41 = vsel %vm3962_vm2, %v1059_v20, %v1071_v48  ;;  %v4810_v48 = vld [vmem:[%s3888_s18 + $0x48] sm:$0xff]  }
 0x12a   : > { %v1552_v50 = vpop.f32.mrf.mxu2 }
 0x12b   : > { %v4777_v16 = vadd.f32 %v1552_v50, %v1474_v4  ;;  %v1649_v18 = vpop.f32.mrf.mxu3 }
 0x12c   : > { %v1884_v37 = vpop.f32.mrf.mxu0  ;;  %v4779_v42 = vadd.f32 %v1649_v18, %v1631_v57 }
 0x12d   : > { %v1476_v40 = vpop.f32.mrf.mxu1 }
 0x12e   : > { %v1477_v34 = vadd.f32 %v1476_v40, %v4704_v35  ;;  %v3492_v40 = vld [vmem:[%s5291_s3 + $0x1b0] sm:$0xff] }
 0x12f   : > { %1923 = vmatmul.bf16.gmra.mxu0 %v4453_v27  ;;  %2041 = vmatmul.bf16.vlgmr.msra.gmra.mxu2 %v1073_v41 }
 0x130   : > { %1962 = vmatmul.bf16.vlgmr.msra.gmra.mxu1 %v4458_v13  ;;  %1844 = vmatmul.bf16.gmra.mxu3 %v4488_v62 }
 0x131   : > { %2071 = vmatpush.bf16.msra.mxu2 %v4218_v10  ;;  %v4799_v10 = vld [vmem:[%s5291_s3 + $0x1c8] sm:$0xff]  ;;  %2521 = vmatpush.bf16.msrb.mxu1 %v3492_v40 }
 0x132   : > { %v1555_v4 = vpop.f32.mrf.mxu2  ;;  %2368 = vmatpush.bf16.msrb.mxu3 %v4799_v10 }
 0x133   : > { %v4788_v45 = vadd.f32 %v1555_v4, %v1477_v34  ;;  %v1805_v57 = vpop.f32.mrf.mxu3 }
 0x134   : > { %v1886_v51 = vpop.f32.mrf.mxu0  ;;  %v1806_v22 = vadd.f32 %v1805_v57, %v4605_v59 }
 0x135   : > { %v1478_v52 = vpop.f32.mrf.mxu1  ;;  %2072 = vmatpush.bf16.msra.mxu2 %v4259_v58 }
 0x136   : > { %v1479_v27 = vadd.f32 %v1478_v52, %v4720_v7  ;;  %v4801_v13 = vadd.f32 %v1884_v37, %v1806_v22 }
 0x139   : > { %2073 = vmatpush.bf16.msra.mxu2 %v4356_v11  ;;  %v4822_v11 = vld [vmem:[%s5291_s3 + $0x208] sm:$0xff] }
 0x13a   : > { %v1557_v58 = vpop.f32.mrf.mxu2  ;;  %2447 = vmatpush.bf16.msra.mxu0 %v4822_v11 }
 0x13b   : > { %v4805_v59 = vadd.f32 %v1557_v58, %v1479_v27  ;;  %v1807_v35 = vpop.f32.mrf.mxu3 }
 0x13c   : > { %v1889_v34 = vpop.f32.mrf.mxu0  ;;  %v1808_v41 = vadd.f32 %v1807_v35, %v4611_v12 }
 0x13d   : > { %v1481_v7 = vpop.f32.mrf.mxu1  ;;  %2074 = vmatpush.bf16.msra.mxu2 %v4416_v56 }
 0x13e   : > { %v1482_v20 = vadd.f32 %v1481_v7, %v1402_v21  ;;  %v4813_v37 = vadd.f32 %v1886_v51, %v1808_v41  ;;  %v4837_v41 = vld [vmem:[%s3888_s18 + $0x50] sm:$0xff]  }
 0x13f   : > { %1928 = vmatmul.bf16.gmra.mxu0 %v4810_v48  ;;  %2046 = vmatmul.bf16.gmra.mxu2 %v4123_v3 }
 0x140   : > { %1967 = vmatmul.bf16.gmra.mxu1 %v4229_v61  ;;  %1849 = vmatmul.bf16.gmra.mxu3 %v3983_v43 }
 0x141   : > { %2075 = vmatpush.bf16.msra.mxu2 %v4514_v38 }
 0x142   : > { %v1560_v56 = vpop.f32.mrf.mxu2 }
 0x143   : > { %v4825_v12 = vadd.f32 %v1560_v56, %v1482_v20  ;;  %v1810_v21 = vpop.f32.mrf.mxu3 }
 0x144   : > { %v1891_v50 = vpop.f32.mrf.mxu0  ;;  %v1811_v18 = vadd.f32 %v1810_v21, %v4628_v55  ;;  %v3491_v55 = vld [vmem:[%s5291_s3 + $0x1a8] sm:$0xff] }
 0x145   : > { %v1483_v4 = vpop.f32.mrf.mxu1  ;;  %2076 = vmatpush.bf16.msra.mxu2 %v4576_v47  ;;  %2522 = vmatpush.bf16.msrb.mxu1 %v3491_v55 }
 0x146   : > { %v1484_v57 = vadd.f32 %v1483_v4, %v1404_v53  ;;  %v4829_v38 = vadd.f32 %v1889_v34, %v1811_v18 }
 0x149   : > { %2077 = vmatpush.bf16.msra.mxu2 %v4625_v23  ;;  %v5442_v23 = vld [vmem:[#allocation6_spill] sm:$0xff] }
 0x14a   : > { %v1562_v51 = vpop.f32.mrf.mxu2 }
 0x14b   : > { %v4832_v22 = vadd.f32 %v1562_v51, %v1484_v57  ;;  %v1812_v52 = vpop.f32.mrf.mxu3 }
 0x14c   : > { %v1894_v27 = vpop.f32.mrf.mxu0  ;;  %v1813_v58 = vadd.f32 %v1812_v52, %v4640_v24  ;;  %v3577_v52 = vunpack.c.h.b16 %v4752_v0 }
 0x14d   : > { %v1486_v35 = vpop.f32.mrf.mxu1  ;;  %2078 = vmatpush.bf16.msra.mxu2 %v4675_v32 }
 0x14e   : > { %v4840_v47 = vadd.f32 %v1891_v50, %v1813_v58  ;;  %v1487_v24 = vadd.f32 %v1486_v35, %v4528_v9  ;;  %v5443_v35 = vld [vmem:[#allocation15_spill] sm:$0xff] }
 0x14f   : > { %1933 = vmatmul.bf16.gmra.mxu0 %v4837_v41  ;;  %2060 = vmatmul.bf16.vlgmr.msrb.gmra.mxu2 %v4752_v0 }
 0x150   : > { %1972 = vmatmul.bf16.gmra.mxu1 %v4293_v2  ;;  %1854 = vmatmul.bf16.gmra.mxu3 %v5442_v23 }
 0x151   : > { %2283 = vmatpush.bf16.msrb.mxu2 %v4729_v14  ;;  %v4856_v14 = vld [vmem:[%s5291_s3 + $0x1c0] sm:$0xff] }
 0x152   : > { %v1565_v32 = vpop.f32.mrf.mxu2  ;;  %2369 = vmatpush.bf16.msrb.mxu3 %v4856_v14 }
 0x153   : > { %v4850_v53 = vadd.f32 %v1565_v32, %v1487_v24  ;;  %v1815_v34 = vpop.f32.mrf.mxu3  ;;  %v5445_v24 = vld [vmem:[#allocation3_spill] sm:$0xff]  ;;  %v1077_v32 = vpack.c.b16 %v3577_v52, %v3577_v52 }
 0x154   : > { %v1896_v7 = vpop.f32.mrf.mxu0  ;;  %v1816_v20 = vadd.f32 %v1815_v34, %v4657_v5 }
 0x155   : > { %v1488_v56 = vpop.f32.mrf.mxu1  ;;  %2284 = vmatpush.bf16.msrb.mxu2 %v3492_v40  ;;  %v3490_v40 = vld [vmem:[%s5291_s3 + $0x1a0] sm:$0xff]  ;;  %v1079_v52 = vshll.u32 %v1077_v32, 16 }
 0x156   : > { %v4859_v21 = vadd.f32 %v1894_v27, %v1816_v20  ;;  %v1489_v9 = vadd.f32 %v1488_v56, %v4545_v46  ;;  %v4872_v27 = vld [vmem:[%s5291_s3 + $0x200] sm:$0xff]  ;;  %2523 = vmatpush.bf16.msrb.mxu1 %v3490_v40  ;;  %v4875_v46 = vld [vmem:[%s3888_s18 + $0x58] sm:$0xff]  }
 0x157   : > { %2448 = vmatpush.bf16.msra.mxu0 %v4872_v27 }
 0x159   : > { %2285 = vmatpush.bf16.msrb.mxu2 %v3491_v55  ;;  %v4882_v55 = vld [vmem:[%s3888_s18 + $0x70] sm:$0xff]  }
 0x15a   : > { %v1567_v50 = vpop.f32.mrf.mxu2  ;;  %5444 = vst [vmem:[#allocation6_spill] sm:$0xff] %v4882_v55 }
 0x15b   : > { %v4862_v18 = vadd.f32 %v1567_v50, %v1489_v9  ;;  %v1817_v5 = vpop.f32.mrf.mxu3  ;;  %v3488_v50 = vld [vmem:[%s5291_s3 + $0x190] sm:$0xff] }
 0x15c   : > { %v1899_v4 = vpop.f32.mrf.mxu0  ;;  %v1818_v57 = vadd.f32 %v1817_v5, %v4663_v49  ;;  %v3489_v49 = vld [vmem:[%s5291_s3 + $0x198] sm:$0xff] }
 0x15d   : > { %v1491_v51 = vpop.f32.mrf.mxu1  ;;  %2286 = vmatpush.bf16.msrb.mxu2 %v3490_v40  ;;  %2524 = vmatpush.bf16.msrb.mxu1 %v3489_v49 }
 0x15e   : > { %v4878_v58 = vadd.f32 %v1896_v7, %v1818_v57  ;;  %v1492_v34 = vadd.f32 %v1491_v51, %v4556_v44  ;;  %v1074_v57 = vrot.slane %v1069_v15, 1  ;;  %v3487_v44 = vld [vmem:[%s5291_s3 + $0x188] sm:$0xff] }
 0x15f   : > { %1938 = vmatmul.bf16.gmra.mxu0 %v4875_v46  ;;  %2065 = vmatmul.bf16.gmra.mxu2 %v4882_v55 }
 0x160   : > { %1977 = vmatmul.bf16.gmra.mxu1 %v5443_v35  ;;  %1859 = vmatmul.bf16.gmra.mxu3 %v5445_v24 }
 0x161   : > { %2287 = vmatpush.bf16.msrb.mxu2 %v3489_v49  ;;  %2525 = vmatpush.bf16.msrb.mxu1 %v3488_v50  ;;  %v5446_v49 = vshrl.u32 %v4752_v0, 16 }
 0x162   : > { %v1570_v7 = vpop.f32.mrf.mxu2 }
 0x163   : > { %v4891_v20 = vadd.f32 %v1570_v7, %v1492_v34  ;;  %v1820_v56 = vpop.f32.mrf.mxu3  ;;  %v1075_v34 = vor.u32 %v1074_v57, %v5446_v49  ;;  %v1081_v7 = vrot.slane %v1079_v52, 4  ;;  %v5447_v57 = vld [vmem:[#allocation17_spill] sm:$0xff]  ;;  %v5448_v52 = vld [vmem:[#allocation7_spill] sm:$0xff] }
 0x164   : > { %v1901_v9 = vpop.f32.mrf.mxu0  ;;  %v1821_v5 = vadd.f32 %v1820_v56, %v4688_v30 }
 0x165   : > { %v1493_v40 = vpop.f32.mrf.mxu1  ;;  %2288 = vmatpush.bf16.msrb.mxu2 %v3488_v50  ;;  %2526 = vmatpush.bf16.msrb.mxu1 %v3487_v44  ;;  %v3486_v50 = vld [vmem:[%s5291_s3 + $0x180] sm:$0xff]  ;;  %v1083_v0 = vsel %vm4209_vm5, %v1075_v34, %v1081_v7 }
 0x166   : > { %v4902_v51 = vadd.f32 %v1899_v4, %v1821_v5  ;;  %v1494_v30 = vadd.f32 %v1493_v40, %v4571_v26  ;;  %v4916_v26 = vld [vmem:[%s3888_s18 + $0x60] sm:$0xff]  }
 0x169   : > { %2289 = vmatpush.bf16.msrb.mxu2 %v3487_v44  ;;  %2527 = vmatpush.bf16.msrb.mxu1 %v3486_v50 }
 0x16a   : > { %v1572_v56 = vpop.f32.mrf.mxu2 }
 0x16b   : > { %v4907_v15 = vadd.f32 %v1572_v56, %v1494_v30  ;;  %v1822_v32 = vpop.f32.mrf.mxu3 }
 0x16c   : > { %v1904_v55 = vpop.f32.mrf.mxu0  ;;  %v1823_v4 = vadd.f32 %v1822_v32, %v4702_v54 }
 0x16d   : > { %v1496_v5 = vpop.f32.mrf.mxu1  ;;  %2290 = vmatpush.bf16.msrb.mxu2 %v3486_v50  ;;  %2539 = vmatpush.bf16.msra.mxu1 %v4506_v60  ;;  %v5449_v60 = vld [vmem:[#allocation24_spill] sm:$0xff] }
 0x16e   : > { %v4919_v40 = vadd.f32 %v1901_v9, %v1823_v4  ;;  %v1497_v54 = vadd.f32 %v1496_v5, %v4541_v25  ;;  %v5450_v4 = vld [vmem:[#allocation33_spill] sm:$0xff] }
 0x16f   : > { %1943 = vmatmul.bf16.gmra.mxu0 %v4916_v26  ;;  %2079 = vmatmul.bf16.vlgmr.msra.gmra.mxu2 %v1083_v0 }
 0x170   : > { %1982 = vmatmul.bf16.gmra.mxu1 %v5447_v57  ;;  %1864 = vmatmul.bf16.gmra.mxu3 %v5448_v52 }
 0x171   : > { %2540 = vmatpush.bf16.msra.mxu1 %v4526_v63 }
 0x172   : > { %v1575_v44 = vpop.f32.mrf.mxu2 }
 0x173   : > { %v4926_v49 = vadd.f32 %v1575_v44, %v1497_v54  ;;  %v1825_v34 = vpop.f32.mrf.mxu3  ;;  %v5453_v44 = vld [vmem:[#allocation27_spill] sm:$0xff] }
 0x174   : > { %v1906_v7 = vpop.f32.mrf.mxu0  ;;  %v1826_v30 = vadd.f32 %v1825_v34, %v4718_v31 }
 0x175   : > { %v1498_v9 = vpop.f32.mrf.mxu1  ;;  %2541 = vmatpush.bf16.msra.mxu1 %v4584_v28  ;;  %v5452_v28 = vld [vmem:[#allocation4_spill] sm:$0xff] }
 0x176   : > { %v4929_v56 = vadd.f32 %v1904_v55, %v1826_v30  ;;  %v1499_v32 = vadd.f32 %v1498_v9, %v5449_v60  ;;  %v5451_v55 = vld [vmem:[#allocation19_spill] sm:$0xff] }
 0x179   : > { %2542 = vmatpush.bf16.msra.mxu1 %v5450_v4 }
 0x17a   : > { %v1577_v50 = vpop.f32.mrf.mxu2 }
 0x17b   : > { %v4934_v25 = vadd.f32 %v1577_v50, %v1499_v32  ;;  %v1827_v5 = vpop.f32.mrf.mxu3  ;;  %v5454_v50 = vld [vmem:[#allocation29_spill] sm:$0xff] }
 0x17c   : > { %v1909_v63 = vpop.f32.mrf.mxu0  ;;  %v1828_v0 = vadd.f32 %v1827_v5, %v4738_v29 }
 0x17d   : > { %v1501_v54 = vpop.f32.mrf.mxu1  ;;  %2543 = vmatpush.bf16.msra.mxu1 %v4685_v33 }
 0x17e   : > { %v4938_v31 = vadd.f32 %v1906_v7, %v1828_v0  ;;  %v1502_v34 = vadd.f32 %v1501_v54, %v5453_v44 }
 0x17f   : > { %1948 = vmatmul.bf16.gmra.mxu0 %v4713_v8  ;;  %2084 = vmatmul.bf16.gmra.mxu2 %v4744_v17 }
 0x180   : > { %1987 = vmatmul.bf16.gmra.mxu1 %v5451_v55  ;;  %1869 = vmatmul.bf16.gmra.mxu3 %v5452_v28 }
 0x181   : > { %2544 = vmatpush.bf16.msra.mxu1 %v4749_v6 }
 0x182   : > { %v1580_v30 = vpop.f32.mrf.mxu2 }
 0x183   : > { %v4946_v9 = vadd.f32 %v1580_v30, %v1502_v34  ;;  %v1830_v29 = vpop.f32.mrf.mxu3  ;;  %v5456_v30 = vld [vmem:[#allocation5_spill] sm:$0xff] }
 0x184   : > { %v1911_v60 = vpop.f32.mrf.mxu0  ;;  %v1831_v7 = vadd.f32 %v1830_v29, %v4761_v19  ;;  %v5457_v29 = vld [vmem:[#allocation23_spill] sm:$0xff] }
 0x185   : > { %v1503_v32 = vpop.f32.mrf.mxu1  ;;  %2545 = vmatpush.bf16.msra.mxu1 %v4799_v10  ;;  %v3748_v10 = vld [vmem:[%s3888_s18 + $0x10] sm:$0xff]  }
 0x186   : > { %v4949_v33 = vadd.f32 %v1909_v63, %v1831_v7  ;;  %v1504_v4 = vadd.f32 %v1503_v32, %v5454_v50  ;;  %v5455_v63 = vld [vmem:[#allocation20_spill] sm:$0xff] }
 0x189   : > { %2546 = vmatpush.bf16.msra.mxu1 %v4856_v14 }
 0x18a   : > { %v1582_v5 = vpop.f32.mrf.mxu2 }
 0x18b   : > { %v4954_v0 = vadd.f32 %v1582_v5, %v1504_v4  ;;  %v1832_v6 = vpop.f32.mrf.mxu3 }
 0x18c   : > { %v1914_v54 = vpop.f32.mrf.mxu0  ;;  %v1833_v44 = vadd.f32 %v1832_v6, %v4777_v16 }
 0x18d   : > { %v1506_v34 = vpop.f32.mrf.mxu1 }
 0x18e   : > { %v4958_v19 = vadd.f32 %v1911_v60, %v1833_v44  ;;  %v1507_v7 = vadd.f32 %v1506_v34, %v5457_v29  ;;  %v5458_v60 = vld [vmem:[#allocation25_spill] sm:$0xff] }
 0x18f   : > { %2449 = vmatmul.bf16.vlgmr.msra.gmra.mxu0 %v4293_v2  ;;  %2291 = vmatmul.bf16.vlgmr.msrb.gmra.mxu2 %v5456_v30 }
 0x190   : > { %1992 = vmatmul.bf16.gmra.mxu1 %v5455_v63  ;;  %2370 = vmatmul.bf16.vlgmr.msrb.gmra.mxu3 %v3748_v10 }
 0x192   : > { %v1585_v14 = vpop.f32.mrf.mxu2 }
 0x193   : > { %v4964_v32 = vadd.f32 %v1585_v14, %v1507_v7  ;;  %v1835_v50 = vpop.f32.mrf.mxu3  ;;  %v5459_v14 = vld [vmem:[#allocation22_spill] sm:$0xff] }
 0x194   : > { %v1916_v4 = vpop.f32.mrf.mxu0  ;;  %v1836_v16 = vadd.f32 %v1835_v50, %v4788_v45  ;;  %v5460_v45 = vld [vmem:[#allocation10_spill] sm:$0xff]  ;;  %v5461_v50 = vld [vmem:[#allocation28_spill] sm:$0xff] }
 0x195   : > { %v1508_v5 = vpop.f32.mrf.mxu1 }
 0x196   : > { %v4967_v2 = vadd.f32 %v1914_v54, %v1836_v16  ;;  %v1509_v6 = vadd.f32 %v1508_v5, %v5458_v60  ;;  %v3749_v54 = vld [vmem:[%s3888_s18 + $0x18] sm:$0xff]  }
 0x19a   : > { %v1587_v44 = vpop.f32.mrf.mxu2 }
 0x19b   : > { %v4970_v39 = vadd.f32 %v1587_v44, %v1509_v6  ;;  %v1837_v30 = vpop.f32.mrf.mxu3 }
 0x19c   : > { %v1919_v10 = vpop.f32.mrf.mxu0  ;;  %v1838_v34 = vadd.f32 %v1837_v30, %v4805_v59 }
 0x19d   : > { %v1511_v29 = vpop.f32.mrf.mxu1 }
 0x19e   : > { %v4974_v7 = vadd.f32 %v1916_v4, %v1838_v34  ;;  %v1512_v16 = vadd.f32 %v1511_v29, %v5461_v50  ;;  %v5462_v4 = vld [vmem:[#allocation30_spill] sm:$0xff] }
 0x19f   : > { %2454 = vmatmul.bf16.gmra.mxu0 %v5443_v35  ;;  %2296 = vmatmul.bf16.gmra.mxu2 %v5460_v45 }
 0x1a0   : > { %1997 = vmatmul.bf16.gmra.mxu1 %v5459_v14  ;;  %2375 = vmatmul.bf16.gmra.mxu3 %v3749_v54 }
 0x1a2   : > { %v1590_v5 = vpop.f32.mrf.mxu2 }
 0x1a3   : > { %v4980_v60 = vadd.f32 %v1590_v5, %v1512_v16  ;;  %v1840_v6 = vpop.f32.mrf.mxu3 }
 0x1a4   : > { %v1921_v44 = vpop.f32.mrf.mxu0  ;;  %v1841_v59 = vadd.f32 %v1840_v6, %v4825_v12  ;;  %v5463_v12 = vld [vmem:[#allocation26_spill] sm:$0xff] }
 0x1a5   : > { %v1513_v30 = vpop.f32.mrf.mxu1  ;;  %v3750_v6 = vld [vmem:[%s3888_s18 + $0x20] sm:$0xff]  }
 0x1a6   : > { %v4983_v35 = vadd.f32 %v1919_v10, %v1841_v59  ;;  %v1514_v34 = vadd.f32 %v1513_v30, %v5462_v4  ;;  %v5464_v10 = vld [vmem:[#allocation12_spill] sm:$0xff] }
 0x1a7   : > { %v5465_v30 = vld [vmem:[#allocation40_spill] sm:$0xff] }
 0x1aa   : > { %v1592_v61 = vpop.f32.mrf.mxu2 }
 0x1ab   : > { %v4986_v3 = vadd.f32 %v1592_v61, %v1514_v34  ;;  %v1842_v45 = vpop.f32.mrf.mxu3 }
 0x1ac   : > { %v1924_v54 = vpop.f32.mrf.mxu0  ;;  %v1843_v29 = vadd.f32 %v1842_v45, %v4832_v22 }
 0x1ad   : > { %v1963_v50 = vpop.f32.mrf.mxu1 }
 0x1ae   : > { %v4990_v16 = vadd.f32 %v1963_v50, %v4801_v13  ;;  %v4993_v5 = vadd.f32 %v1921_v44, %v1843_v29  ;;  %v5466_v50 = vld [vmem:[#allocation41_spill] sm:$0xff] }
 0x1af   : > { %2459 = vmatmul.bf16.gmra.mxu0 %v5447_v57  ;;  %2301 = vmatmul.bf16.gmra.mxu2 %v5464_v10 }
 0x1b0   : > { %2002 = vmatmul.bf16.gmra.mxu1 %v5463_v12  ;;  %2380 = vmatmul.bf16.gmra.mxu3 %v3750_v6 }
 0x1b2   : > { %v2042_v61 = vpop.f32.mrf.mxu2 }
 0x1b3   : > { %v1845_v59 = vpop.f32.mrf.mxu3  ;;  %v2043_v4 = vadd.f32 %v2042_v61, %v5465_v30 }
 0x1b4   : > { %v1926_v34 = vpop.f32.mrf.mxu0  ;;  %v1846_v22 = vadd.f32 %v1845_v59, %v4850_v53  ;;  %v5467_v59 = vld [vmem:[#allocation31_spill] sm:$0xff] }
 0x1b5   : > { %v1965_v13 = vpop.f32.mrf.mxu1 }
 0x1b6   : > { %v5001_v45 = vadd.f32 %v1965_v13, %v4813_v37  ;;  %v5003_v57 = vadd.f32 %v1924_v54, %v1846_v22  ;;  %v5468_v37 = vld [vmem:[#allocation14_spill] sm:$0xff]  ;;  %v3751_v54 = vld [vmem:[%s3888_s18 + $0x28] sm:$0xff]  }
 0x1b7   : > { %v5469_v13 = vld [vmem:[#allocation43_spill] sm:$0xff] }
 0x1ba   : > { %v2044_v44 = vpop.f32.mrf.mxu2 }
 0x1bb   : > { %v1847_v29 = vpop.f32.mrf.mxu3  ;;  %v2045_v10 = vadd.f32 %v2044_v44, %v5466_v50 }
 0x1bc   : > { %v1929_v17 = vpop.f32.mrf.mxu0  ;;  %v1848_v6 = vadd.f32 %v1847_v29, %v4862_v18 }
 0x1bd   : > { %v1968_v8 = vpop.f32.mrf.mxu1 }
 0x1be   : > { %v5008_v61 = vadd.f32 %v1968_v8, %v4829_v38  ;;  %v5011_v53 = vadd.f32 %v1926_v34, %v1848_v6 }
 0x1bf   : > { %2464 = vmatmul.bf16.gmra.mxu0 %v5451_v55  ;;  %2306 = vmatmul.bf16.gmra.mxu2 %v5468_v37 }
 0x1c0   : > { %2007 = vmatmul.bf16.gmra.mxu1 %v5467_v59  ;;  %2385 = vmatmul.bf16.gmra.mxu3 %v3751_v54 }
 0x1c2   : > { %v2047_v30 = vpop.f32.mrf.mxu2 }
 0x1c3   : > { %v1850_v22 = vpop.f32.mrf.mxu3  ;;  %v2048_v44 = vadd.f32 %v2047_v30, %v5469_v13 }
 0x1c4   : > { %v1931_v50 = vpop.f32.mrf.mxu0  ;;  %v1851_v18 = vadd.f32 %v1850_v22, %v4891_v20  ;;  %v5471_v22 = vld [vmem:[#allocation32_spill] sm:$0xff] }
 0x1c5   : > { %v1970_v8 = vpop.f32.mrf.mxu1 }
 0x1c6   : > { %v5019_v38 = vadd.f32 %v1970_v8, %v4840_v47  ;;  %v5021_v55 = vadd.f32 %v1929_v17, %v1851_v18  ;;  %v5472_v47 = vld [vmem:[#allocation16_spill] sm:$0xff] }
 0x1c7   : > { %v3752_v17 = vld [vmem:[%s3888_s18 + $0x30] sm:$0xff]  }
 0x1ca   : > { %v2049_v34 = vpop.f32.mrf.mxu2 }
 0x1cb   : > { %v1852_v29 = vpop.f32.mrf.mxu3  ;;  %v2050_v6 = vadd.f32 %v2049_v34, %v4779_v42 }
 0x1cc   : > { %v1934_v37 = vpop.f32.mrf.mxu0  ;;  %v1853_v54 = vadd.f32 %v1852_v29, %v4907_v15 }
 0x1cd   : > { %v1973_v28 = vpop.f32.mrf.mxu1 }
 0x1ce   : > { %v5026_v30 = vadd.f32 %v1973_v28, %v4859_v21  ;;  %v5029_v20 = vadd.f32 %v1931_v50, %v1853_v54 }
 0x1cf   : > { %2469 = vmatmul.bf16.gmra.mxu0 %v5455_v63  ;;  %2311 = vmatmul.bf16.gmra.mxu2 %v5472_v47 }
 0x1d0   : > { %5470 = vst [vmem:[#allocation15_spill] sm:$0xff] %v5029_v20  ;;  %2012 = vmatmul.bf16.gmra.mxu1 %v5471_v22  ;;  %2390 = vmatmul.bf16.gmra.mxu3 %v3752_v17 }
 0x1d2   : > { %v2061_v13 = vpop.f32.mrf.mxu2 }
 0x1d3   : > { %v1855_v18 = vpop.f32.mrf.mxu3  ;;  %v2062_v42 = vadd.f32 %v2061_v13, %v2043_v4 }
 0x1d4   : > { %v1936_v8 = vpop.f32.mrf.mxu0  ;;  %v1856_v15 = vadd.f32 %v1855_v18, %v4926_v49  ;;  %v5473_v49 = vld [vmem:[#allocation34_spill] sm:$0xff] }
 0x1d5   : > { %v1975_v34 = vpop.f32.mrf.mxu1 }
 0x1d6   : > { %v5036_v21 = vadd.f32 %v1975_v34, %v4878_v58  ;;  %v5038_v28 = vadd.f32 %v1934_v37, %v1856_v15  ;;  %v5474_v58 = vld [vmem:[#allocation18_spill] sm:$0xff]  ;;  %v3753_v37 = vld [vmem:[%s3888_s18 + $0x38] sm:$0xff]  }
 0x1da   : > { %v2063_v63 = vpop.f32.mrf.mxu2 }
 0x1db   : > { %v1857_v50 = vpop.f32.mrf.mxu3  ;;  %v2064_v29 = vadd.f32 %v2063_v63, %v2045_v10 }
 0x1dc   : > { %v1939_v54 = vpop.f32.mrf.mxu0  ;;  %v1858_v47 = vadd.f32 %v1857_v50, %v4934_v25 }
 0x1dd   : > { %v1978_v17 = vpop.f32.mrf.mxu1 }
 0x1de   : > { %v5042_v20 = vadd.f32 %v1978_v17, %v4902_v51  ;;  %v5045_v4 = vadd.f32 %v1936_v8, %v1858_v47 }
 0x1df   : > { %2474 = vmatmul.bf16.gmra.mxu0 %v5459_v14  ;;  %2316 = vmatmul.bf16.gmra.mxu2 %v5474_v58 }
 0x1e0   : > { %2017 = vmatmul.bf16.gmra.mxu1 %v5473_v49  ;;  %2395 = vmatmul.bf16.gmra.mxu3 %v3753_v37 }
 0x1e2   : > { %v2066_v13 = vpop.f32.mrf.mxu2 }
 0x1e3   : > { %v1860_v18 = vpop.f32.mrf.mxu3  ;;  %v2067_v10 = vadd.f32 %v2066_v13, %v2048_v44 }
 0x1e4   : > { %v1941_v15 = vpop.f32.mrf.mxu0  ;;  %v1861_v25 = vadd.f32 %v1860_v18, %v4946_v9  ;;  %v5475_v9 = vld [vmem:[#allocation36_spill] sm:$0xff] }
 0x1e5   : > { %v1980_v34 = vpop.f32.mrf.mxu1 }
 0x1e6   : > { %v5052_v51 = vadd.f32 %v1980_v34, %v4919_v40  ;;  %v5054_v14 = vadd.f32 %v1939_v54, %v1861_v25  ;;  %v3754_v40 = vld [vmem:[%s3888_s18 + $0x40] sm:$0xff]  }
 0x1ea   : > { %v2068_v8 = vpop.f32.mrf.mxu2 }
 0x1eb   : > { %v1862_v63 = vpop.f32.mrf.mxu3  ;;  %v2069_v50 = vadd.f32 %v2068_v8, %v2050_v6 }
 0x1ec   : > { %v1944_v47 = vpop.f32.mrf.mxu0  ;;  %v1863_v17 = vadd.f32 %v1862_v63, %v4954_v0 }
 0x1ed   : > { %v1983_v58 = vpop.f32.mrf.mxu1 }
 0x1ee   : > { %v5058_v37 = vadd.f32 %v1983_v58, %v4929_v56  ;;  %v5061_v44 = vadd.f32 %v1941_v15, %v1863_v17 }
 0x1ef   : > { %2479 = vmatmul.bf16.gmra.mxu0 %v5463_v12  ;;  %2321 = vmatmul.bf16.gmra.mxu2 %v4488_v62 }
 0x1f0   : > { %2022 = vmatmul.bf16.gmra.mxu1 %v5475_v9  ;;  %2400 = vmatmul.bf16.gmra.mxu3 %v3754_v40 }
 0x1f2   : > { %v2080_v54 = vpop.f32.mrf.mxu2 }
 0x1f3   : > { %v1865_v13 = vpop.f32.mrf.mxu3  ;;  %v5066_v6 = vadd.f32 %v2080_v54, %v2062_v42 }
 0x1f4   : > { %v1946_v18 = vpop.f32.mrf.mxu0  ;;  %v1866_v0 = vadd.f32 %v1865_v13, %v4964_v32 }
 0x1f5   : > { %v1985_v25 = vpop.f32.mrf.mxu1 }
 0x1f6   : > { %v5070_v56 = vadd.f32 %v1985_v25, %v4938_v31  ;;  %v5072_v12 = vadd.f32 %v1944_v47, %v1866_v0  ;;  %v5476_v31 = vld [vmem:[#allocation38_spill] sm:$0xff] }
 0x1fa   : > { %v2082_v15 = vpop.f32.mrf.mxu2 }
 0x1fb   : > { %v1867_v34 = vpop.f32.mrf.mxu3  ;;  %v5074_v8 = vadd.f32 %v2082_v15, %v2064_v29  ;;  %v5477_v15 = vld [vmem:[#allocation2_spill] sm:$0xff] }
 0x1fc   : > { %v1949_v62 = vpop.f32.mrf.mxu0  ;;  %v1868_v63 = vadd.f32 %v1867_v34, %v4970_v39 }
 0x1fd   : > { %v1988_v17 = vpop.f32.mrf.mxu1 }
 0x1fe   : > { %v5078_v42 = vadd.f32 %v1988_v17, %v4949_v33  ;;  %v5081_v32 = vadd.f32 %v1946_v18, %v1868_v63 }
 0x1ff   : > { %2484 = vmatmul.bf16.gmra.mxu0 %v5467_v59  ;;  %2326 = vmatmul.bf16.gmra.mxu2 %v3983_v43 }
 0x200   : > { %2027 = vmatmul.bf16.gmra.mxu1 %v5476_v31  ;;  %2405 = vmatmul.bf16.gmra.mxu3 %v4810_v48 }
 0x202   : > { %v2085_v29 = vpop.f32.mrf.mxu2 }
 0x203   : > { %v1870_v47 = vpop.f32.mrf.mxu3  ;;  %v5086_v58 = vadd.f32 %v2085_v29, %v2067_v10 }
 0x204   : > { %v1951_v39 = vpop.f32.mrf.mxu0  ;;  %v1871_v40 = vadd.f32 %v1870_v47, %v4980_v60 }
 0x205   : > { %v1990_v54 = vpop.f32.mrf.mxu1 }
 0x206   : > { %v5090_v33 = vadd.f32 %v1990_v54, %v4958_v19  ;;  %v5092_v59 = vadd.f32 %v1949_v62, %v1871_v40  ;;  %v5104_v19 = vld [vmem:[%s504_s17] sm:$0xff]  }
 0x207   : > { %v1101_v29 = vshll.u32 %v5104_v19, 16 }
 0x20a   : > { %v2087_v13 = vpop.f32.mrf.mxu2 }
 0x20b   : > { %v1872_v43 = vpop.f32.mrf.mxu3  ;;  %v5098_v48 = vadd.f32 %v2087_v13, %v2069_v50  ;;  %v3580_v50 = vunpack.c.l.b16 %v5104_v19  ;;  %v3757_v13 = vld [vmem:[%s5291_s3 + $0x228] sm:$0xff] }
 0x20c   : > { %v2450_v10 = vpop.f32.mrf.mxu0  ;;  %v1873_v18 = vadd.f32 %v1872_v43, %v4986_v3  ;;  %v1098_v3 = vshrl.u32 %v5104_v19, 16 }
 0x20d   : > { %v1993_v0 = vpop.f32.mrf.mxu1  ;;  %v1089_v17 = vpack.c.b16 %v3580_v50, %v3580_v50 }
 0x20e   : > { %v5102_v60 = vadd.f32 %v1993_v0, %v4967_v2  ;;  %v5107_v25 = vadd.f32 %v1951_v39, %v1873_v18  ;;  %v3755_v2 = vld [vmem:[%s5291_s3 + $0x238] sm:$0xff] }
 0x20f   : > { %2489 = vmatmul.bf16.gmra.mxu0 %v5471_v22  ;;  %2331 = vmatmul.bf16.gmra.mxu2 %v5442_v23  ;;  %v1100_v23 = vrot.slane %v1098_v3, 7  ;;  %v1091_v40 = vshrl.u32 %v1089_v17, 16 }
 0x210   : > { %2528 = vmatmul.bf16.vlgmr.msrb.gmra.mxu1 %v5477_v15  ;;  %2410 = vmatmul.bf16.gmra.mxu3 %v4837_v41  ;;  %v3756_v41 = vld [vmem:[%s5291_s3 + $0x230] sm:$0xff] }
 0x211   : > { %2558 = vmatpush.bf16.msrb.mxu1 %v3755_v2  ;;  %v1103_v54 = vor.u32 %v1101_v29, %v1100_v23  ;;  %v5479_v23 = vld [vmem:[#allocation37_spill] sm:$0xff] }
 0x212   : > { %v2292_v34 = vpop.f32.mrf.mxu2 }
 0x213   : > { %v2371_v62 = vpop.f32.mrf.mxu3 }
 0x214   : > { %v2452_v22 = vpop.f32.mrf.mxu0  ;;  %v2372_v39 = vadd.f32 %v2371_v62, %v2292_v34  ;;  %v5478_v34 = vld [vmem:[#allocation35_spill] sm:$0xff] }
 0x215   : > { %v1995_v63 = vpop.f32.mrf.mxu1  ;;  %2559 = vmatpush.bf16.msrb.mxu1 %v3756_v41 }
 0x216   : > { %v5124_v47 = vadd.f32 %v1995_v63, %v4974_v7  ;;  %v2451_v43 = vadd.f32 %v2450_v10, %v2372_v39  ;;  %v1105_v7 = vsel %vm3962_vm2, %v1091_v40, %v1103_v54 }
 0x218   : > { %v2577_v63 = vadd.f32 %v2451_v43, %v4990_v16 }
 0x219   : > { %2560 = vmatpush.bf16.msrb.mxu1 %v3757_v13 }
 0x21a   : > { %v2294_v18 = vpop.f32.mrf.mxu2  ;;  %v2718_v36 = vmul.f32 %v2577_v63, %v2577_v63 }
 0x21b   : > { %v2373_v0 = vpop.f32.mrf.mxu3 }
 0x21c   : > { %v2455_v15 = vpop.f32.mrf.mxu0  ;;  %v2374_v50 = vadd.f32 %v2373_v0, %v2294_v18 }
 0x21d   : > { %v1998_v2 = vpop.f32.mrf.mxu1  ;;  %2561 = vmatpush.bf16.msrb.mxu1 %v5478_v34 }
 0x21e   : > { %v5135_v62 = vadd.f32 %v1998_v2, %v4983_v35  ;;  %v2453_v17 = vadd.f32 %v2452_v22, %v2374_v50 }
 0x21f   : > { %2494 = vmatmul.bf16.gmra.mxu0 %v5473_v49  ;;  %2336 = vmatmul.bf16.gmra.mxu2 %v5445_v24 }
 0x220   : > { %2533 = vmatmul.bf16.gmra.mxu1 %v1105_v7  ;;  %v2578_v10 = vadd.f32 %v2453_v17, %v5001_v45  ;;  %2415 = vmatmul.bf16.gmra.mxu3 %v4875_v46 }
 0x221   : > { %2562 = vmatpush.bf16.msrb.mxu1 %v5479_v23 }
 0x222   : > { %v3585_v35 = vpack.c.bf16 %v2578_v10, %v2577_v63  ;;  %v2675_v16 = vadd.f32 %v2578_v10, %v2577_v63  ;;  %v2719_v22 = vmul.f32 %v2578_v10, %v2578_v10  ;;  %v2297_v49 = vpop.f32.mrf.mxu2 }
 0x223   : > { %v2376_v41 = vpop.f32.mrf.mxu3 }
 0x224   : > { %v2457_v24 = vpop.f32.mrf.mxu0  ;;  %3679 = vst [vmem:[%s5147_s5 + $0x8] sm:$0xff] %v3585_v35   ;;  %v2746_v39 = vadd.f32 %v2719_v22, %v2718_v36  ;;  %v2377_v45 = vadd.f32 %v2376_v41, %v2297_v49 }
 0x225   : > { %v2000_v40 = vpop.f32.mrf.mxu1  ;;  %2563 = vmatpush.bf16.msrb.mxu1 %v4771_v1 }
 0x226   : > { %v5152_v46 = vadd.f32 %v2000_v40, %v4993_v5  ;;  %v2456_v54 = vadd.f32 %v2455_v15, %v2377_v45 }
 0x228   : > { %v2579_v13 = vadd.f32 %v2456_v54, %v5008_v61 }
 0x229   : > { %2564 = vmatpush.bf16.msrb.mxu1 %v4822_v11  ;;  %v3758_v11 = vld [vmem:[%s3888_s18 + $0x8] sm:$0xff]  }
 0x22a   : > { %v2676_v43 = vadd.f32 %v2675_v16, %v2579_v13  ;;  %v2720_v18 = vmul.f32 %v2579_v13, %v2579_v13  ;;  %v2299_v0 = vpop.f32.mrf.mxu2 }
 0x22b   : > { %v2378_v50 = vpop.f32.mrf.mxu3 }
 0x22c   : > { %v2460_v2 = vpop.f32.mrf.mxu0  ;;  %v2747_v7 = vadd.f32 %v2746_v39, %v2720_v18  ;;  %v2379_v34 = vadd.f32 %v2378_v50, %v2299_v0 }
 0x22d   : > { %v2003_v63 = vpop.f32.mrf.mxu1  ;;  %2565 = vmatpush.bf16.msrb.mxu1 %v4872_v27 }
 0x22e   : > { %v5158_v1 = vadd.f32 %v2003_v63, %v5003_v57  ;;  %v2458_v5 = vadd.f32 %v2457_v24, %v2379_v34 }
 0x22f   : > { %2499 = vmatmul.bf16.gmra.mxu0 %v5475_v9  ;;  %2341 = vmatmul.bf16.gmra.mxu2 %v5448_v52 }
 0x230   : > { %2547 = vmatmul.bf16.vlgmr.msra.gmra.mxu1 %v3758_v11  ;;  %v2580_v61 = vadd.f32 %v2458_v5, %v5019_v38  ;;  %2420 = vmatmul.bf16.gmra.mxu3 %v4916_v26  ;;  %v5482_v11 = vld [vmem:[#allocation15_spill] sm:$0xff] }
 0x232   : > { %v3590_v15 = vpack.c.bf16 %v2580_v61, %v2579_v13  ;;  %v2677_v17 = vadd.f32 %v2676_v43, %v2580_v61  ;;  %v2721_v10 = vmul.f32 %v2580_v61, %v2580_v61  ;;  %v2302_v23 = vpop.f32.mrf.mxu2  ;;  %v5481_v43 = vld [vmem:[#allocation39_spill] sm:$0xff] }
 0x233   : > { %v2381_v36 = vpop.f32.mrf.mxu3 }
 0x234   : > { %v2462_v27 = vpop.f32.mrf.mxu0  ;;  %3680 = vst [vmem:[%s5147_s5 + $0x10] sm:$0xff] %v3590_v15   ;;  %v2748_v57 = vadd.f32 %v2747_v7, %v2721_v10  ;;  %v2382_v35 = vadd.f32 %v2381_v36, %v2302_v23 }
 0x235   : > { %v2005_v16 = vpop.f32.mrf.mxu1 }
 0x236   : > { %v5167_v9 = vadd.f32 %v2005_v16, %v5011_v53  ;;  %v2461_v52 = vadd.f32 %v2460_v2, %v2382_v35  ;;  %v5480_v53 = vld [vmem:[#allocation4_spill] sm:$0xff]  ;;  %v3581_v16 = vunpack.c.h.b16 %v5104_v19 }
 0x238   : > { %v2581_v22 = vadd.f32 %v2461_v52, %v5026_v30 }
 0x23a   : > { %v2678_v49 = vadd.f32 %v2677_v17, %v2581_v22  ;;  %v2722_v38 = vmul.f32 %v2581_v22, %v2581_v22  ;;  %v2304_v41 = vpop.f32.mrf.mxu2 }
 0x23b   : > { %v2383_v26 = vpop.f32.mrf.mxu3 }
 0x23c   : > { %v2465_v24 = vpop.f32.mrf.mxu0  ;;  %v2749_v39 = vadd.f32 %v2748_v57, %v2722_v38  ;;  %v2384_v45 = vadd.f32 %v2383_v26, %v2304_v41  ;;  %v5484_v38 = vld [vmem:[#allocation8_spill] sm:$0xff]  ;;  %v5486_v26 = vld [vmem:[#allocation6_spill] sm:$0xff] }
 0x23d   : > { %v2008_v40 = vpop.f32.mrf.mxu1 }
 0x23e   : > { %v5171_v54 = vadd.f32 %v2008_v40, %v5021_v55  ;;  %v2463_v13 = vadd.f32 %v2462_v27, %v2384_v45 }
 0x23f   : > { %2504 = vmatmul.bf16.gmra.mxu0 %v5476_v31  ;;  %2346 = vmatmul.bf16.gmra.mxu2 %v5480_v53 }
 0x240   : > { %2552 = vmatmul.bf16.gmra.mxu1 %v5104_v19  ;;  %v2582_v30 = vadd.f32 %v2463_v13, %v5036_v21  ;;  %2425 = vmatmul.bf16.gmra.mxu3 %v5481_v43  ;;  %v5488_v19 = vld [vmem:[#allocation21_spill] sm:$0xff] }
 0x242   : > { %v3595_v18 = vpack.c.bf16 %v2582_v30, %v2581_v22  ;;  %v2679_v0 = vadd.f32 %v2678_v49, %v2582_v30  ;;  %v2723_v50 = vmul.f32 %v2582_v30, %v2582_v30  ;;  %v2307_v2 = vpop.f32.mrf.mxu2  ;;  %v5483_v49 = vld [vmem:[#allocation42_spill] sm:$0xff] }
 0x243   : > { %v2386_v7 = vpop.f32.mrf.mxu3 }
 0x244   : > { %v2467_v34 = vpop.f32.mrf.mxu0  ;;  %3681 = vst [vmem:[%s5147_s5 + $0x18] sm:$0xff] %v3595_v18   ;;  %v2750_v55 = vadd.f32 %v2749_v39, %v2723_v50  ;;  %v2387_v63 = vadd.f32 %v2386_v7, %v2307_v2 }
 0x245   : > { %v2010_v5 = vpop.f32.mrf.mxu1 }
 0x246   : > { %v5180_v31 = vadd.f32 %v2010_v5, %v5482_v11  ;;  %v2466_v61 = vadd.f32 %v2465_v24, %v2387_v63  ;;  %v1109_v24 = vpack.c.b16 %v3581_v16, %v3581_v16 }
 0x248   : > { %v2583_v15 = vadd.f32 %v2466_v61, %v5042_v20  ;;  %v5485_v20 = vld [vmem:[#allocation11_spill] sm:$0xff]  ;;  %v1111_v50 = vshll.u32 %v1109_v24, 16 }
 0x24a   : > { %v2680_v17 = vadd.f32 %v2679_v0, %v2583_v15  ;;  %v2724_v21 = vmul.f32 %v2583_v15, %v2583_v15  ;;  %v2309_v10 = vpop.f32.mrf.mxu2  ;;  %v1106_v0 = vrot.slane %v1101_v29, 1 }
 0x24b   : > { %v2388_v23 = vpop.f32.mrf.mxu3 }
 0x24c   : > { %v2470_v36 = vpop.f32.mrf.mxu0  ;;  %v2751_v27 = vadd.f32 %v2750_v55, %v2724_v21  ;;  %v2389_v57 = vadd.f32 %v2388_v23, %v2309_v10  ;;  %v1113_v55 = vrot.slane %v1111_v50, 4 }
 0x24d   : > { %v2013_v35 = vpop.f32.mrf.mxu1 }
 0x24e   : > { %v5185_v52 = vadd.f32 %v2013_v35, %v5038_v28  ;;  %v2468_v22 = vadd.f32 %v2467_v34, %v2389_v57  ;;  %v1107_v34 = vor.u32 %v1106_v0, %v1098_v3  ;;  %v5489_v3 = vld [vmem:[#allocation13_spill] sm:$0xff] }
 0x24f   : > { %2509 = vmatmul.bf16.gmra.mxu0 %v5483_v49  ;;  %2351 = vmatmul.bf16.gmra.mxu2 %v5484_v38 }
 0x250   : > { %2566 = vmatmul.bf16.vlgmr.msrb.gmra.mxu1 %v5485_v20  ;;  %v2584_v41 = vadd.f32 %v2468_v22, %v5052_v51  ;;  %2430 = vmatmul.bf16.gmra.mxu3 %v5486_v26 }
 0x252   : > { %v3600_v39 = vpack.c.bf16 %v2584_v41, %v2583_v15  ;;  %v2681_v45 = vadd.f32 %v2680_v17, %v2584_v41  ;;  %v2725_v40 = vmul.f32 %v2584_v41, %v2584_v41  ;;  %v2312_v13 = vpop.f32.mrf.mxu2 }
 0x253   : > { %v2391_v53 = vpop.f32.mrf.mxu3 }
 0x254   : > { %v2472_v30 = vpop.f32.mrf.mxu0  ;;  %3682 = vst [vmem:[%s5147_s5 + $0x20] sm:$0xff] %v3600_v39   ;;  %v2752_v28 = vadd.f32 %v2751_v27, %v2725_v40  ;;  %v2392_v43 = vadd.f32 %v2391_v53, %v2312_v13  ;;  %v3759_v27 = vld [vmem:[%s3888_s18 + $0x78] sm:$0xff]  }
 0x255   : > { %v2015_v18 = vpop.f32.mrf.mxu1 }
 0x256   : > { %v5196_v2 = vadd.f32 %v2015_v18, %v5045_v4  ;;  %v2471_v51 = vadd.f32 %v2470_v36, %v2392_v43  ;;  %v1115_v4 = vsel %vm4209_vm5, %v1107_v34, %v1113_v55 }
 0x258   : > { %v2585_v7 = vadd.f32 %v2471_v51, %v5058_v37 }
 0x25a   : > { %v2682_v63 = vadd.f32 %v2681_v45, %v2585_v7  ;;  %v2726_v5 = vmul.f32 %v2585_v7, %v2585_v7  ;;  %v2314_v11 = vpop.f32.mrf.mxu2 }
 0x25b   : > { %v2393_v61 = vpop.f32.mrf.mxu3 }
 0x25c   : > { %v2475_v15 = vpop.f32.mrf.mxu0  ;;  %v2753_v17 = vadd.f32 %v2752_v28, %v2726_v5  ;;  %v2394_v21 = vadd.f32 %v2393_v61, %v2314_v11 }
 0x25d   : > { %v2018_v29 = vpop.f32.mrf.mxu1 }
 0x25e   : > { %v5204_v23 = vadd.f32 %v2018_v29, %v5054_v14  ;;  %v2473_v37 = vadd.f32 %v2472_v30, %v2394_v21 }
 0x25f   : > { %2514 = vmatmul.bf16.gmra.mxu0 %v5488_v19  ;;  %2356 = vmatmul.bf16.gmra.mxu2 %v5489_v3 }
 0x260   : > { %2571 = vmatmul.bf16.gmra.mxu1 %v1115_v4  ;;  %v2586_v36 = vadd.f32 %v2473_v37, %v5070_v56  ;;  %2435 = vmatmul.bf16.gmra.mxu3 %v3759_v27 }
 0x262   : > { %v3605_v57 = vpack.c.bf16 %v2586_v36, %v2585_v7  ;;  %v2683_v35 = vadd.f32 %v2682_v63, %v2586_v36  ;;  %v2727_v16 = vmul.f32 %v2586_v36, %v2586_v36  ;;  %v2317_v22 = vpop.f32.mrf.mxu2 }
 0x263   : > { %v2396_v49 = vpop.f32.mrf.mxu3 }
 0x264   : > { %v2477_v38 = vpop.f32.mrf.mxu0  ;;  %3683 = vst [vmem:[%s5147_s5 + $0x28] sm:$0xff] %v3605_v57   ;;  %v2754_v20 = vadd.f32 %v2753_v17, %v2727_v16  ;;  %v2397_v14 = vadd.f32 %v2396_v49, %v2317_v22 }
 0x265   : > { %v2020_v41 = vpop.f32.mrf.mxu1 }
 0x266   : > { %v5212_v26 = vadd.f32 %v2020_v41, %v5061_v44  ;;  %v2476_v24 = vadd.f32 %v2475_v15, %v2397_v14 }
 0x268   : > { %v2587_v39 = vadd.f32 %v2476_v24, %v5078_v42 }
 0x26a   : > { %v2684_v45 = vadd.f32 %v2683_v35, %v2587_v39  ;;  %v2728_v56 = vmul.f32 %v2587_v39, %v2587_v39  ;;  %v2319_v40 = vpop.f32.mrf.mxu2 }
 0x26b   : > { %v2398_v13 = vpop.f32.mrf.mxu3 }
 0x26c   : > { %v2480_v53 = vpop.f32.mrf.mxu0  ;;  %v2755_v30 = vadd.f32 %v2754_v20, %v2728_v56  ;;  %v2399_v28 = vadd.f32 %v2398_v13, %v2319_v40 }
 0x26d   : > { %v2023_v43 = vpop.f32.mrf.mxu1 }
 0x26e   : > { %v5216_v18 = vadd.f32 %v2023_v43, %v5072_v12  ;;  %v2478_v0 = vadd.f32 %v2477_v38, %v2399_v28 }
 0x270   : > { %v2588_v50 = vadd.f32 %v2478_v0, %v5090_v33 }
 0x272   : > { %v3610_v44 = vpack.c.bf16 %v2588_v50, %v2587_v39  ;;  %v2685_v51 = vadd.f32 %v2684_v45, %v2588_v50  ;;  %v2729_v7 = vmul.f32 %v2588_v50, %v2588_v50  ;;  %v2322_v34 = vpop.f32.mrf.mxu2 }
 0x273   : > { %v2401_v42 = vpop.f32.mrf.mxu3 }
 0x274   : > { %v2482_v55 = vpop.f32.mrf.mxu0  ;;  %3684 = vst [vmem:[%s5147_s5 + $0x30] sm:$0xff] %v3610_v44   ;;  %v2756_v63 = vadd.f32 %v2755_v30, %v2729_v7  ;;  %v2402_v5 = vadd.f32 %v2401_v42, %v2322_v34 }
 0x275   : > { %v2025_v11 = vpop.f32.mrf.mxu1 }
 0x276   : > { %v5221_v61 = vadd.f32 %v2025_v11, %v5081_v32  ;;  %v2481_v15 = vadd.f32 %v2480_v53, %v2402_v5 }
 0x278   : > { %v2589_v12 = vadd.f32 %v2481_v15, %v5102_v60 }
 0x27a   : > { %v2686_v17 = vadd.f32 %v2685_v51, %v2589_v12  ;;  %v2730_v21 = vmul.f32 %v2589_v12, %v2589_v12  ;;  %v2324_v33 = vpop.f32.mrf.mxu2 }
 0x27b   : > { %v2403_v29 = vpop.f32.mrf.mxu3 }
 0x27c   : > { %v2485_v10 = vpop.f32.mrf.mxu0  ;;  %v2757_v4 = vadd.f32 %v2756_v63, %v2730_v21  ;;  %v2404_v37 = vadd.f32 %v2403_v29, %v2324_v33 }
 0x27d   : > { %v2028_v19 = vpop.f32.mrf.mxu1 }
 0x27e   : > { %v5225_v3 = vadd.f32 %v2028_v19, %v5092_v59  ;;  %v2483_v36 = vadd.f32 %v2482_v55, %v2404_v37 }
 0x280   : > { %v2590_v27 = vadd.f32 %v2483_v36, %v5124_v47 }
 0x282   : > { %v3615_v32 = vpack.c.bf16 %v2590_v27, %v2589_v12  ;;  %v2687_v57 = vadd.f32 %v2686_v17, %v2590_v27  ;;  %v2731_v35 = vmul.f32 %v2590_v27, %v2590_v27  ;;  %v2327_v16 = vpop.f32.mrf.mxu2 }
 0x283   : > { %v2406_v60 = vpop.f32.mrf.mxu3 }
 0x284   : > { %v2487_v22 = vpop.f32.mrf.mxu0  ;;  %3685 = vst [vmem:[%s5147_s5 + $0x38] sm:$0xff] %v3615_v32   ;;  %v2758_v49 = vadd.f32 %v2757_v4, %v2731_v35  ;;  %v2407_v38 = vadd.f32 %v2406_v60, %v2327_v16 }
 0x285   : > { %v2030_v20 = vpop.f32.mrf.mxu1 }
 0x286   : > { %v5230_v14 = vadd.f32 %v2030_v20, %v5107_v25  ;;  %v2486_v41 = vadd.f32 %v2485_v10, %v2407_v38 }
 0x288   : > { %v2591_v59 = vadd.f32 %v2486_v41, %v5135_v62 }
 0x28a   : > { %v2688_v24 = vadd.f32 %v2687_v57, %v2591_v59  ;;  %v2732_v39 = vmul.f32 %v2591_v59, %v2591_v59  ;;  %v2329_v47 = vpop.f32.mrf.mxu2 }
 0x28b   : > { %v2408_v45 = vpop.f32.mrf.mxu3 }
 0x28c   : > { %v2490_v56 = vpop.f32.mrf.mxu0  ;;  %v2759_v40 = vadd.f32 %v2758_v49, %v2732_v39  ;;  %v2409_v13 = vadd.f32 %v2408_v45, %v2329_v47 }
 0x28d   : > { %v5233_v53 = vpop.f32.mrf.mxu1 }
 0x28e   : > { %v2488_v30 = vadd.f32 %v2487_v22, %v2409_v13 }
 0x290   : > { %v2592_v28 = vadd.f32 %v2488_v30, %v5152_v46 }
 0x292   : > { %v3620_v43 = vpack.c.bf16 %v2592_v28, %v2591_v59  ;;  %v2689_v0 = vadd.f32 %v2688_v24, %v2592_v28  ;;  %v2733_v25 = vmul.f32 %v2592_v28, %v2592_v28  ;;  %v2332_v50 = vpop.f32.mrf.mxu2 }
 0x293   : > { %v2411_v44 = vpop.f32.mrf.mxu3 }
 0x294   : > { %v2492_v51 = vpop.f32.mrf.mxu0  ;;  %3686 = vst [vmem:[%s5147_s5 + $0x40] sm:$0xff] %v3620_v43   ;;  %v2760_v62 = vadd.f32 %v2759_v40, %v2733_v25  ;;  %v2412_v7 = vadd.f32 %v2411_v44, %v2332_v50 }
 0x295   : > { %v5237_v34 = vpop.f32.mrf.mxu1 }
 0x296   : > { %v2491_v42 = vadd.f32 %v2490_v56, %v2412_v7 }
 0x298   : > { %v2593_v55 = vadd.f32 %v2491_v42, %v5158_v1 }
 0x29a   : > { %v2690_v63 = vadd.f32 %v2689_v0, %v2593_v55  ;;  %v2734_v5 = vmul.f32 %v2593_v55, %v2593_v55  ;;  %v2334_v11 = vpop.f32.mrf.mxu2 }
 0x29b   : > { %v2413_v15 = vpop.f32.mrf.mxu3 }
 0x29c   : > { %v2495_v46 = vpop.f32.mrf.mxu0  ;;  %v2761_v12 = vadd.f32 %v2760_v62, %v2734_v5  ;;  %v2414_v17 = vadd.f32 %v2413_v15, %v2334_v11 }
 0x29d   : > { %v5240_v21 = vpop.f32.mrf.mxu1 }
 0x29e   : > { %v2493_v33 = vadd.f32 %v2492_v51, %v2414_v17 }
 0x2a0   : > { %v2594_v29 = vadd.f32 %v2493_v33, %v5167_v9 }
 0x2a2   : > { %v3625_v10 = vpack.c.bf16 %v2594_v29, %v2593_v55  ;;  %v2691_v4 = vadd.f32 %v2690_v63, %v2594_v29  ;;  %v2735_v37 = vmul.f32 %v2594_v29, %v2594_v29  ;;  %v2337_v19 = vpop.f32.mrf.mxu2 }
 0x2a3   : > { %v2416_v36 = vpop.f32.mrf.mxu3 }
 0x2a4   : > { %v2497_v27 = vpop.f32.mrf.mxu0  ;;  %3687 = vst [vmem:[%s5147_s5 + $0x48] sm:$0xff] %v3625_v10   ;;  %v2762_v1 = vadd.f32 %v2761_v12, %v2735_v37  ;;  %v2417_v32 = vadd.f32 %v2416_v36, %v2337_v19 }
 0x2a5   : > { %v5244_v57 = vpop.f32.mrf.mxu1 }
 0x2a6   : > { %v2496_v35 = vadd.f32 %v2495_v46, %v2417_v32 }
 0x2a8   : > { %v2595_v16 = vadd.f32 %v2496_v35, %v5171_v54 }
 0x2aa   : > { %v2692_v60 = vadd.f32 %v2691_v4, %v2595_v16  ;;  %v2736_v22 = vmul.f32 %v2595_v16, %v2595_v16  ;;  %v2339_v49 = vpop.f32.mrf.mxu2 }
 0x2ab   : > { %v2418_v38 = vpop.f32.mrf.mxu3 }
 0x2ac   : > { %v2500_v9 = vpop.f32.mrf.mxu0  ;;  %v2763_v20 = vadd.f32 %v2762_v1, %v2736_v22  ;;  %v2419_v41 = vadd.f32 %v2418_v38, %v2339_v49 }
 0x2ad   : > { %v2548_v59 = vpop.f32.mrf.mxu1 }
 0x2ae   : > { %v2498_v24 = vadd.f32 %v2497_v27, %v2419_v41  ;;  %v2549_v1 = vadd.f32 %v2548_v59, %v5233_v53 }
 0x2b0   : > { %v2596_v39 = vadd.f32 %v2498_v24, %v5180_v31 }
 0x2b2   : > { %v3630_v47 = vpack.c.bf16 %v2596_v39, %v2595_v16  ;;  %v2693_v45 = vadd.f32 %v2692_v60, %v2596_v39  ;;  %v2737_v56 = vmul.f32 %v2596_v39, %v2596_v39  ;;  %v2342_v40 = vpop.f32.mrf.mxu2 }
 0x2b3   : > { %v2421_v13 = vpop.f32.mrf.mxu3 }
 0x2b4   : > { %v2502_v30 = vpop.f32.mrf.mxu0  ;;  %3688 = vst [vmem:[%s5147_s5 + $0x50] sm:$0xff] %v3630_v47   ;;  %v2764_v54 = vadd.f32 %v2763_v20, %v2737_v56  ;;  %v2422_v28 = vadd.f32 %v2421_v13, %v2342_v40 }
 0x2b5   : > { %v2550_v43 = vpop.f32.mrf.mxu1 }
 0x2b6   : > { %v2501_v0 = vadd.f32 %v2500_v9, %v2422_v28  ;;  %v2551_v39 = vadd.f32 %v2550_v43, %v5237_v34 }
 0x2b8   : > { %v2597_v25 = vadd.f32 %v2501_v0, %v5185_v52 }
 0x2ba   : > { %v2694_v50 = vadd.f32 %v2693_v45, %v2597_v25  ;;  %v2738_v44 = vmul.f32 %v2597_v25, %v2597_v25  ;;  %v2344_v51 = vpop.f32.mrf.mxu2 }
 0x2bb   : > { %v2423_v62 = vpop.f32.mrf.mxu3 }
 0x2bc   : > { %v2505_v7 = vpop.f32.mrf.mxu0  ;;  %v2765_v31 = vadd.f32 %v2764_v54, %v2738_v44  ;;  %v2424_v42 = vadd.f32 %v2423_v62, %v2344_v51 }
 0x2bd   : > { %v2553_v55 = vpop.f32.mrf.mxu1 }
 0x2be   : > { %v2503_v63 = vadd.f32 %v2502_v30, %v2424_v42  ;;  %v2554_v43 = vadd.f32 %v2553_v55, %v5240_v21 }
 0x2c0   : > { %v2598_v5 = vadd.f32 %v2503_v63, %v5196_v2 }
 0x2c2   : > { %v3635_v11 = vpack.c.bf16 %v2598_v5, %v2597_v25  ;;  %v2695_v15 = vadd.f32 %v2694_v50, %v2598_v5  ;;  %v2739_v46 = vmul.f32 %v2598_v5, %v2598_v5  ;;  %v2347_v12 = vpop.f32.mrf.mxu2 }
 0x2c3   : > { %v2426_v17 = vpop.f32.mrf.mxu3 }
 0x2c4   : > { %3689 = vst [vmem:[%s5147_s5 + $0x58] sm:$0xff] %v3635_v11   ;;  %v2766_v33 = vadd.f32 %v2765_v31, %v2739_v46  ;;  %v2427_v52 = vadd.f32 %v2426_v17, %v2347_v12  ;;  %v2507_v10 = vpop.f32.mrf.mxu0 }
 0x2c5   : > { %v2555_v29 = vpop.f32.mrf.mxu1 }
 0x2c6   : > { %v2506_v4 = vadd.f32 %v2505_v7, %v2427_v52  ;;  %v2556_v21 = vadd.f32 %v2555_v29, %v5244_v57 }
 0x2c8   : > { %v2599_v37 = vadd.f32 %v2506_v4, %v5204_v23 }
 0x2ca   : > { %v2696_v19 = vadd.f32 %v2695_v15, %v2599_v37  ;;  %v2740_v36 = vmul.f32 %v2599_v37, %v2599_v37  ;;  %v2349_v27 = vpop.f32.mrf.mxu2 }
 0x2cb   : > { %v2428_v2 = vpop.f32.mrf.mxu3 }
 0x2cc   : > { %v2767_v32 = vadd.f32 %v2766_v33, %v2740_v36  ;;  %v2429_v35 = vadd.f32 %v2428_v2, %v2349_v27  ;;  %v2510_v49 = vpop.f32.mrf.mxu0 }
 0x2cd   : > { %v2567_v16 = vpop.f32.mrf.mxu1 }
 0x2ce   : > { %v2568_v60 = vadd.f32 %v2567_v16, %v2549_v1  ;;  %v2508_v22 = vadd.f32 %v2507_v10, %v2429_v35 }
 0x2d0   : > { %v2605_v38 = vadd.f32 %v2568_v60, %v5066_v6  ;;  %v2600_v9 = vadd.f32 %v2508_v22, %v5212_v26 }
 0x2d2   : > { %v3640_v20 = vpack.c.bf16 %v2600_v9, %v2599_v37  ;;  %v2697_v41 = vadd.f32 %v2696_v19, %v2600_v9  ;;  %v2741_v23 = vmul.f32 %v2600_v9, %v2600_v9  ;;  %v2352_v24 = vpop.f32.mrf.mxu2  ;;  %v2779_v30 = vmul.f32 %v2605_v38, %v2605_v38 }
 0x2d3   : > { %v2431_v47 = vpop.f32.mrf.mxu3 }
 0x2d4   : > { %3690 = vst [vmem:[%s5147_s5 + $0x60] sm:$0xff] %v3640_v20   ;;  %v2768_v53 = vadd.f32 %v2767_v32, %v2741_v23  ;;  %v2432_v59 = vadd.f32 %v2431_v47, %v2352_v24  ;;  %v2512_v26 = vpop.f32.mrf.mxu0 }
 0x2d5   : > { %v2569_v45 = vpop.f32.mrf.mxu1 }
 0x2d6   : > { %v2570_v56 = vadd.f32 %v2569_v45, %v2551_v39  ;;  %v2511_v40 = vadd.f32 %v2510_v49, %v2432_v59 }
 0x2d8   : > { %v2606_v13 = vadd.f32 %v2570_v56, %v5074_v8  ;;  %v2601_v6 = vadd.f32 %v2511_v40, %v5216_v18 }
 0x2da   : > { %v3655_v54 = vpack.c.bf16 %v2606_v13, %v2605_v38  ;;  %v2708_v28 = vadd.f32 %v2606_v13, %v2605_v38  ;;  %v2780_v0 = vmul.f32 %v2606_v13, %v2606_v13  ;;  %v2698_v25 = vadd.f32 %v2697_v41, %v2601_v6  ;;  %v2354_v34 = vpop.f32.mrf.mxu2 }
 0x2db   : > { %v2742_v50 = vmul.f32 %v2601_v6, %v2601_v6  ;;  %v2433_v51 = vpop.f32.mrf.mxu3 }
 0x2dc   : > { %3656 = vst [vmem:[%s5147_s5] sm:$0xff] %v3655_v54   ;;  %v2783_v44 = vadd.f32 %v2780_v0, %v2779_v30  ;;  %v2434_v7 = vadd.f32 %v2433_v51, %v2354_v34  ;;  %v2515_v55 = vpop.f32.mrf.mxu0 }
 0x2dd   : > { %v2769_v62 = vadd.f32 %v2768_v53, %v2742_v50  ;;  %v2572_v31 = vpop.f32.mrf.mxu1 }
 0x2de   : > { %v2573_v8 = vadd.f32 %v2572_v31, %v2554_v43  ;;  %v2513_v42 = vadd.f32 %v2512_v26, %v2434_v7 }
 0x2e0   : > { %v2607_v18 = vadd.f32 %v2573_v8, %v5086_v58  ;;  %v2602_v63 = vadd.f32 %v2513_v42, %v5221_v61 }
 0x2e2   : > { %v2709_v5 = vadd.f32 %v2708_v28, %v2607_v18  ;;  %v2781_v11 = vmul.f32 %v2607_v18, %v2607_v18  ;;  %v3645_v15 = vpack.c.bf16 %v2602_v63, %v2601_v6  ;;  %v2699_v46 = vadd.f32 %v2698_v25, %v2602_v63  ;;  %v2357_v17 = vpop.f32.mrf.mxu2 }
 0x2e3   : > { %v2743_v12 = vmul.f32 %v2602_v63, %v2602_v63  ;;  %v2436_v52 = vpop.f32.mrf.mxu3 }
 0x2e4   : > { %v2784_v33 = vadd.f32 %v2783_v44, %v2781_v11  ;;  %3691 = vst [vmem:[%s5147_s5 + $0x68] sm:$0xff] %v3645_v15   ;;  %v2437_v4 = vadd.f32 %v2436_v52, %v2357_v17  ;;  %v2517_v38 = vpop.f32.mrf.mxu0 }
 0x2e5   : > { %v2770_v10 = vadd.f32 %v2769_v62, %v2743_v12  ;;  %v2574_v37 = vpop.f32.mrf.mxu1 }
 0x2e6   : > { %v2575_v19 = vadd.f32 %v2574_v37, %v2556_v21  ;;  %v2516_v58 = vadd.f32 %v2515_v55, %v2437_v4 }
 0x2e8   : > { %v2608_v61 = vadd.f32 %v2575_v19, %v5098_v48  ;;  %v2603_v36 = vadd.f32 %v2516_v58, %v5225_v3 }
 0x2ea   : > { %v3660_v27 = vpack.c.bf16 %v2608_v61, %v2607_v18  ;;  %v2710_v1 = vadd.f32 %v2709_v5, %v2608_v61  ;;  %v2782_v2 = vmul.f32 %v2608_v61, %v2608_v61  ;;  %v2700_v32 = vadd.f32 %v2699_v46, %v2603_v36  ;;  %v2359_v57 = vpop.f32.mrf.mxu2 }
 0x2eb   : > { %v2744_v35 = vmul.f32 %v2603_v36, %v2603_v36  ;;  %v2438_v60 = vpop.f32.mrf.mxu3 }
 0x2ec   : > { %3693 = vst [vmem:[%s5147_s5 + $0x78] sm:$0xff] %v3660_v27   ;;  %v2711_v29 = vrot.slane %v2710_v1, 4  ;;  %v2785_v16 = vadd.f32 %v2784_v33, %v2782_v2  ;;  %v2439_v49 = vadd.f32 %v2438_v60, %v2359_v57 }
 0x2ed   : > { %v2771_v22 = vadd.f32 %v2770_v10, %v2744_v35 }
 0x2ee   : > { %v2786_v9 = vrot.slane %v2785_v16, 4  ;;  %v2712_v20 = vadd.f32 %v2711_v29, %v2710_v1  ;;  %v2518_v41 = vadd.f32 %v2517_v38, %v2439_v49 }
 0x2f0   : > { %v2787_v48 = vadd.f32 %v2786_v9, %v2785_v16  ;;  %v2604_v3 = vadd.f32 %v2518_v41, %v5230_v14  ;;  %v2713_v23 = vrot.slane %v2712_v20, 2 }
 0x2f2   : > { %v3650_v24 = vpack.c.bf16 %v2604_v3, %v2603_v36  ;;  %v2701_v39 = vadd.f32 %v2700_v32, %v2604_v3  ;;  %v2745_v47 = vmul.f32 %v2604_v3, %v2604_v3  ;;  %v2788_v53 = vrot.slane %v2787_v48, 2 }
 0x2f3   : > { %v2714_v56 = vadd.f32 %v2713_v23, %v2712_v20 }
 0x2f4   : > { %3692 = vst [vmem:[%s5147_s5 + $0x70] sm:$0xff] %v3650_v24   ;;  %v2702_v59 = vrot.slane %v2701_v39, 4  ;;  %v2772_v45 = vadd.f32 %v2771_v22, %v2745_v47  ;;  %v2789_v6 = vadd.f32 %v2788_v53, %v2787_v48 }
 0x2f5   : > { %v2715_v54 = vrot.slane %v2714_v56, 1 }
 0x2f6   : > { %v2703_v40 = vadd.f32 %v2702_v59, %v2701_v39  ;;  %v2773_v13 = vrot.slane %v2772_v45, 4  ;;  %v2790_v14 = vrot.slane %v2789_v6, 1 }
 0x2f7   : > { %v2716_v34 = vadd.f32 %v2715_v54, %v2714_v56 }
 0x2f8   : > { %v2704_v30 = vrot.slane %v2703_v40, 2  ;;  %v2774_v26 = vadd.f32 %v2773_v13, %v2772_v45  ;;  %v2791_v51 = vadd.f32 %v2790_v14, %v2789_v6 }
 0x2fa   : > { %v2705_v28 = vadd.f32 %v2704_v30, %v2703_v40  ;;  %v2775_v0 = vrot.slane %v2774_v26, 2 }
 0x2fc   : > { %v2706_v25 = vrot.slane %v2705_v28, 1  ;;  %v2776_v50 = vadd.f32 %v2775_v0, %v2774_v26 }
 0x2fe   : > { %v2707_v43 = vadd.f32 %v2706_v25, %v2705_v28  ;;  %v2777_v44 = vrot.slane %v2776_v50, 1 }
 0x300   : > { %v2717_v62 = vadd.f32 %v2716_v34, %v2707_v43  ;;  %v2778_v7 = vadd.f32 %v2777_v44, %v2776_v50 }
 0x302   : > { %v2792_v31 = vadd.f32 %v2791_v51, %v2778_v7  ;;  %2793 = vst [vmem:[%s528_s30] sm:$0x1] %v2717_v62 }
 0x304   : > { %2794 = vst [vmem:[%s534_s11] sm:$0x1] %v2792_v31 }
 0x305 PF: > { %s19_s29 = sadd.s32 1, %s3782_s29   ;;  %s5490_s27 = smov %s3778_s28 }
 0x306   : > { %p16_p5 = scmp.ge.s32.totalorder %s19_s29, 4   ;;  %s5491_s28 = smov %s5493_s4 }
 0x308   :  { %18 = sbr.rel (!%p16_p5) target bundleno = 2 (0x2), region = 108 }

// kernel: double_conv.4
= control target key start
LH: loop header
LB: loop body
LE: loop exit
PB: predicated region body
PF: predicated region fallthrough
CT: control target
= control target key end

     0   :  { %s4151_s27 = smov 0   ;;  %s4153_s28 = smov 0   ;;  %s5749_s0 = inlined_call_operand.vmem [shape: bf16[2,16,16,128], index: 0, kind: input, shape index: {}, may-alias: {0,1,2}]   ;;  %s5750_s1 = inlined_call_operand.vmem [shape: bf16[2,16,16,128], index: 1, kind: input, shape index: {}, may-alias: {0,1,2}]   ;;  %s5751_s2 = inlined_call_operand.vmem [shape: bf16[2,16,16,128], index: 2, kind: input, shape index: {}, may-alias: {0,1,2}]   ;;  %s5752_s3 = inlined_call_operand.vmem [shape: bf16[3,384,128], index: 3, kind: input, shape index: {}]   ;;  %s5753_s4 = inlined_call_operand.vmem [shape: bf16[1,1,128], index: 4, kind: input, shape index: {}]   ;;  %s5754_s5 = inlined_call_operand.vmem [shape: bf16[1,1,128], index: 5, kind: input, shape index: {}]   ;;  %s5755_s6 = inlined_call_operand.vmem [shape: bf16[2,16,16,128], index: 6, kind: output, shape index: {0}]   ;;  %s5756_s7 = inlined_call_operand.vmem [shape: f32[2,1,1,128], index: 7, kind: output, shape index: {1}]   ;;  %s5757_s8 = inlined_call_operand.vmem [shape: f32[2,1,1,128], index: 8, kind: output, shape index: {2}]  }
   0x1   :  { %s4155_s29 = smov 0  }
   0x2 LB: > { %s31_s30 = sadd.s32 1, %s4100_s28  ;;  %p3343_p0 = scmp.ge.s32.totalorder %s4104_s29, 1  ;;  %s4104_s29 = sphi %s4155_s29, %s19_s29   ;;  %s4100_s28 = sphi %s4153_s28, %s6020_s28   ;;  %s4096_s27 = sphi %s4151_s27, %s6019_s27  }
   0x3   : > { %p33_p1 = scmp.ge.s32.totalorder %s31_s30, 2  ;;  %p373_p2 = scmp.lt.s32.totalorder %s4104_s29, 3 }
   0x5   : > { %s6022_s30 = smov (%p33_p1, %s31_s30), 0  ;;  %p374_p3 = pnand %p3343_p0, %p373_p2 }
   0x7   : > { %377 = sbr.rel (%p374_p3) target bundleno = 789 (0x315), region = 44 }
   0xc   : > { %v4172_v0 = vld [vmem:[%s5752_s3 + $0xf8] sm:$0xff]  ;;  %p460_p4 = scmp.lt.s32.totalorder %s4096_s27, 1  ;;  %v4179_v1 = vld [vmem:[%s5752_s3 + $0xf0] sm:$0xff]  ;;  %v535_v2 = vld [vmem:[%s5753_s4] sm:$0x1]  ;;  %vm1155_vm0 = vcmask 1040384  }
   0xd   : > { %1694 = vmatpush.bf16.msra.mxu0 %v4172_v0  ;;  %4030 = vmatpush.bf16.msra.mxu1 %v4172_v0  ;;  %v536_v3 = vld [vmem:[%s5754_s5] sm:$0x1]  ;;  %v570_v4 = vpack.i.b16 %v535_v2, %v535_v2  ;;  %v4197_v6 = vld [vmem:[%s5752_s3 + $0xe8] sm:$0xff]  ;;  %v4243_v43 = vld [vmem:[%s5752_s3 + $0xd8] sm:$0xff]  ;;  %vm1156_vm1 = vsmask.f32 256 }
   0xe   : > { %s6024_s27 = smov (!%p460_p4, %s4096_s27), 1  ;;  %4031 = vmatpush.bf16.msra.mxu2 %v4172_v0  ;;  %4032 = vmatpush.bf16.msra.mxu3 %v4172_v0  ;;  %v671_v5 = vpack.i.b16 %v536_v3, %v536_v3  ;;  %v4228_v26 = vld [vmem:[%s5752_s3 + $0xe0] sm:$0xff]  ;;  %v4262_v61 = vld [vmem:[%s5752_s3 + $0xd0] sm:$0xff]  ;;  %vm4313_vm2 = vmand %vm1155_vm0, %vm1156_vm1  ;;  %vm1318_vm3 = vcmask 1047552   ;;  %vm1319_vm4 = vsmask.f32 7424 }
   0xf   : > { %s4192_s17 = sshll.u32 %s6024_s27, 7  ;;  %v572_v7 = vperm.slane %v570_v4, 0  ;;  %vm4604_vm5 = vmand %vm1318_vm3, %vm1319_vm4 }
  0x10   : > { %s4203_s22 = scalar_lea.vmem %s5749_s0, %s4192_s17  ;;  %v673_v9 = vperm.slane %v671_v5, 0  ;;  %s3770_s10 = sadd.s32 8, %s4192_s17 }
  0x11   : > { %1695 = vmatpush.bf16.msra.mxu0 %v4179_v1  ;;  %4033 = vmatpush.bf16.msra.mxu1 %v4179_v1  ;;  %v4000_v8 = vld [vmem:[%s4203_s22 + $0x8] sm:$0xff]   ;;  %v4010_v11 = vld [vmem:[%s4203_s22 + $0x58] sm:$0xff]   ;;  %v4212_v14 = vunpack.c.l.bf16 %v572_v7  ;;  %v4221_v25 = vld [vmem:[%s4203_s22 + $0x10] sm:$0xff]   ;;  %s483_s13 = scalar_lea.vmem %s5750_s1, %s3770_s10  ;;  %s3772_s16 = sadd.s32 112, %s4192_s17 }
  0x12   : > { %v4008_v10 = vld [vmem:[%s4203_s22 + $0x48] sm:$0xff]   ;;  %4034 = vmatpush.bf16.msra.mxu2 %v4179_v1  ;;  %4035 = vmatpush.bf16.msra.mxu3 %v4179_v1  ;;  %v3852_v12 = vunpack.c.l.bf16 %v4000_v8  ;;  %v3853_v13 = vunpack.c.h.bf16 %v4000_v8  ;;  %v4215_v17 = vunpack.c.l.bf16 %v673_v9  ;;  %v3892_v19 = vunpack.c.l.bf16 %v4010_v11  ;;  %v4255_v56 = vld [vmem:[%s4203_s22 + $0x50] sm:$0xff]   ;;  %s504_s20 = scalar_lea.vmem %s5751_s2, %s3772_s16  ;;  %s5612_s11 = scalar_lea.vmem %s5755_s6, %s4192_s17 }
  0x13   : > { %5859 = vst [vmem:[#allocation2_spill] sm:$0xff] %v4212_v14  ;;  %v3884_v15 = vunpack.c.l.bf16 %v4008_v10  ;;  %v4012_v16 = vld [vmem:[%s4203_s22 + $0x68] sm:$0xff]   ;;  %v3885_v18 = vunpack.c.h.bf16 %v4008_v10  ;;  %v3893_v20 = vunpack.c.h.bf16 %v4010_v11  ;;  %v3856_v34 = vunpack.c.l.bf16 %v4221_v25  ;;  %s534_s16 = scalar_lea.vmem %s5757_s8, %s6024_s27 }
  0x14   : > { %5860 = vst [vmem:[#allocation3_spill] sm:$0xff] %v4215_v17  ;;  %v608_v21 = vmul.f32 %v3852_v12, %v4212_v14  ;;  %v609_v22 = vmul.f32 %v3853_v13, %v4212_v14  ;;  %v3900_v24 = vunpack.c.l.bf16 %v4012_v16  ;;  %v628_v28 = vmul.f32 %v3892_v19, %v4212_v14  ;;  %v4276_v19 = vld [vmem:[%s5752_s3 + $0xc8] sm:$0xff] }
  0x15   : > { %v624_v23 = vmul.f32 %v3884_v15, %v4212_v14  ;;  %1696 = vmatpush.bf16.msra.mxu0 %v4197_v6  ;;  %4036 = vmatpush.bf16.msra.mxu1 %v4197_v6  ;;  %v625_v27 = vmul.f32 %v3885_v18, %v4212_v14  ;;  %v629_v29 = vmul.f32 %v3893_v20, %v4212_v14  ;;  %v3901_v30 = vunpack.c.h.bf16 %v4012_v16 }
  0x16   : > { %4037 = vmatpush.bf16.msra.mxu2 %v4197_v6  ;;  %4038 = vmatpush.bf16.msra.mxu3 %v4197_v6  ;;  %v640_v31 = vpack.c.bf16 %v608_v21, %v608_v21  ;;  %v641_v32 = vpack.c.bf16 %v609_v22, %v609_v22  ;;  %v660_v36 = vpack.c.bf16 %v628_v28, %v628_v28  ;;  %v3857_v51 = vunpack.c.h.bf16 %v4221_v25  ;;  %v4346_v25 = vld [vmem:[%s5752_s3 + $0x138] sm:$0xff] }
  0x17   : > { %v656_v33 = vpack.c.bf16 %v624_v23, %v624_v23  ;;  %v657_v35 = vpack.c.bf16 %v625_v27, %v625_v27  ;;  %v661_v37 = vpack.c.bf16 %v629_v29, %v629_v29  ;;  %v632_v38 = vmul.f32 %v3900_v24, %v4212_v14 }
  0x18   : > { %v676_v39 = vunpack.c.l.bf16 %v640_v31  ;;  %v677_v40 = vunpack.c.l.bf16 %v641_v32  ;;  %v633_v42 = vmul.f32 %v3901_v30, %v4212_v14  ;;  %v696_v45 = vunpack.c.l.bf16 %v660_v36 }
  0x19   : > { %v692_v41 = vunpack.c.l.bf16 %v656_v33  ;;  %1697 = vmatpush.bf16.msra.mxu0 %v4228_v26  ;;  %4039 = vmatpush.bf16.msra.mxu1 %v4228_v26  ;;  %v693_v44 = vunpack.c.l.bf16 %v657_v35  ;;  %v697_v46 = vunpack.c.l.bf16 %v661_v37  ;;  %v664_v47 = vpack.c.bf16 %v632_v38, %v632_v38 }
  0x1a   : > { %4040 = vmatpush.bf16.msra.mxu2 %v4228_v26  ;;  %4041 = vmatpush.bf16.msra.mxu3 %v4228_v26  ;;  %v709_v48 = vadd.f32 %v4215_v17, %v676_v39  ;;  %v710_v49 = vadd.f32 %v4215_v17, %v677_v40  ;;  %v729_v53 = vadd.f32 %v4215_v17, %v696_v45  ;;  %v3888_v8 = vunpack.c.l.bf16 %v4255_v56  ;;  %v4300_v39 = vld [vmem:[%s5752_s3 + $0xc0] sm:$0xff] }
  0x1b   : > { %v725_v50 = vadd.f32 %v4215_v17, %v692_v41  ;;  %v726_v52 = vadd.f32 %v4215_v17, %v693_v44  ;;  %v730_v54 = vadd.f32 %v4215_v17, %v697_v46  ;;  %v665_v55 = vpack.c.bf16 %v633_v42, %v633_v42 }
  0x1c   : > { %v805_v57 = vmax.f32 %v709_v48, 0.0  ;;  %v806_v58 = vmax.f32 %v710_v49, 0.0  ;;  %v700_v60 = vunpack.c.l.bf16 %v664_v47  ;;  %v825_v63 = vmax.f32 %v729_v53, 0.0  ;;  %v4011_v49 = vld [vmem:[%s4203_s22 + $0x60] sm:$0xff]  }
  0x1d   : > { %v821_v59 = vmax.f32 %v725_v50, 0.0  ;;  %1698 = vmatpush.bf16.msra.mxu0 %v4243_v43  ;;  %4042 = vmatpush.bf16.msra.mxu1 %v4243_v43  ;;  %v822_v62 = vmax.f32 %v726_v52, 0.0  ;;  %v826_v2 = vmax.f32 %v730_v54, 0.0  ;;  %v701_v3 = vunpack.c.l.bf16 %v665_v55  ;;  %v4324_v54 = vld [vmem:[%s5752_s3 + $0x178] sm:$0xff] }
  0x1e   : > { %4043 = vmatpush.bf16.msra.mxu2 %v4243_v43  ;;  %4044 = vmatpush.bf16.msra.mxu3 %v4243_v43  ;;  %v837_v4 = vpack.c.bf16 %v805_v57, %v805_v57  ;;  %v838_v5 = vpack.c.bf16 %v806_v58, %v806_v58  ;;  %v857_v10 = vpack.c.bf16 %v825_v63, %v825_v63 }
  0x1f   : > { %v853_v7 = vpack.c.bf16 %v821_v59, %v821_v59  ;;  %v854_v9 = vpack.c.bf16 %v822_v62, %v822_v62  ;;  %v858_v11 = vpack.c.bf16 %v826_v2, %v826_v2  ;;  %v733_v12 = vadd.f32 %v4215_v17, %v700_v60 }
  0x20   : > { %v884_v13 = vunpack.c.l.b16 %v837_v4  ;;  %v4268_v15 = vunpack.c.l.b16 %v838_v5  ;;  %v734_v18 = vadd.f32 %v4215_v17, %v701_v3  ;;  %v894_v21 = vunpack.c.l.b16 %v857_v10 }
  0x21   : > { %v892_v16 = vunpack.c.l.b16 %v853_v7  ;;  %1699 = vmatpush.bf16.msra.mxu0 %v4262_v61  ;;  %4045 = vmatpush.bf16.msra.mxu1 %v4262_v61  ;;  %v4278_v20 = vunpack.c.l.b16 %v854_v9  ;;  %v4280_v22 = vunpack.c.l.b16 %v858_v11  ;;  %v829_v23 = vmax.f32 %v733_v12, 0.0  ;;  %v4360_v7 = vld [vmem:[%s5752_s3 + $0x78] sm:$0xff]  ;;  %v4375_v12 = vld [vmem:[%s5752_s3 + $0x170] sm:$0xff] }
  0x22   : > { %4046 = vmatpush.bf16.msra.mxu2 %v4262_v61  ;;  %4047 = vmatpush.bf16.msra.mxu3 %v4262_v61  ;;  %v900_v24 = vpack.c.b16 %v884_v13, %v884_v13  ;;  %v4285_v27 = vpack.c.b16 %v4268_v15, %v884_v13  ;;  %v830_v29 = vmax.f32 %v734_v18, 0.0  ;;  %v910_v31 = vpack.c.b16 %v894_v21, %v894_v21  ;;  %v4013_v18 = vld [vmem:[%s4203_s22 + $0x70] sm:$0xff]  }
  0x23   : > { %v908_v28 = vpack.c.b16 %v892_v16, %v892_v16  ;;  %v4288_v30 = vpack.c.b16 %v4278_v20, %v892_v16  ;;  %v4291_v32 = vpack.c.b16 %v4280_v22, %v894_v21  ;;  %v861_v33 = vpack.c.bf16 %v829_v23, %v829_v23 }
  0x24   : > { %5861 = vst [vmem:[#allocation4_spill] sm:$0xff] %v4285_v27  ;;  %v919_v35 = vshrl.u32 %v900_v24, 16  ;;  %v1035_v36 = vshrl.u32 %v4285_v27, 16  ;;  %v1038_v37 = vshll.u32 %v4285_v27, 16  ;;  %v949_v42 = vshrl.u32 %v910_v31, 16 }
  0x25   : > { %5862 = vst [vmem:[#allocation5_spill] sm:$0xff] %v4291_v32  ;;  %v943_v38 = vshrl.u32 %v908_v28, 16  ;;  %1700 = vmatpush.bf16.msra.mxu0 %v4276_v19  ;;  %4048 = vmatpush.bf16.msra.mxu1 %v4276_v19  ;;  %v5766_v40 = vshrl.u32 %v4288_v30, 16  ;;  %v5767_v41 = vshll.u32 %v4288_v30, 16  ;;  %v5760_v44 = vshrl.u32 %v4291_v32, 16 }
  0x26   : > { %4049 = vmatpush.bf16.msra.mxu2 %v4276_v19  ;;  %4050 = vmatpush.bf16.msra.mxu3 %v4276_v19  ;;  %v1037_v45 = vrot.slane %v1035_v36, 7  ;;  %v5761_v46 = vshll.u32 %v4291_v32, 16  ;;  %v862_v47 = vpack.c.bf16 %v830_v29, %v830_v29  ;;  %v896_v48 = vunpack.c.l.b16 %v861_v33 }
  0x27   : > { %v1093_v52 = vrot.slane %v5766_v40, 7  ;;  %v1107_v53 = vrot.slane %v5760_v44, 7  ;;  %v610_v55 = vmul.f32 %v3856_v34, %v4212_v14  ;;  %v611_v57 = vmul.f32 %v3857_v51, %v4212_v14 }
  0x28   : > { %v1040_v58 = vor.u32 %v1038_v37, %v1037_v45  ;;  %v912_v59 = vpack.c.b16 %v896_v48, %v896_v48  ;;  %v4334_v60 = vunpack.c.l.b16 %v862_v47  ;;  %v3889_v62 = vunpack.c.h.bf16 %v4255_v56  ;;  %v4391_v56 = vld [vmem:[%s5752_s3 + $0x130] sm:$0xff]  ;;  %v4409_v47 = vld [vmem:[%s5752_s3 + $0x168] sm:$0xff] }
  0x29   : > { %1701 = vmatpush.bf16.msra.mxu0 %v4300_v39  ;;  %4051 = vmatpush.bf16.msra.mxu1 %v4300_v39  ;;  %v1096_v63 = vor.u32 %v5767_v41, %v1093_v52  ;;  %v1110_v34 = vor.u32 %v5761_v46, %v1107_v53  ;;  %v642_v51 = vpack.c.bf16 %v610_v55, %v610_v55  ;;  %v3896_v2 = vunpack.c.l.bf16 %v4011_v49  ;;  %v4402_v45 = vld [vmem:[%s5752_s3 + $0x70] sm:$0xff] }
  0x2a   : > { %5865 = vst [vmem:[#allocation6_spill] sm:$0xff] %v4334_v60  ;;  %4052 = vmatpush.bf16.msra.mxu2 %v4300_v39  ;;  %4053 = vmatpush.bf16.msra.mxu3 %v4300_v39  ;;  %v4352_v3 = vsel %vm4313_vm2, %v919_v35, %v1040_v58  ;;  %v955_v4 = vshrl.u32 %v912_v59, 16  ;;  %v4355_v5 = vpack.c.b16 %v4334_v60, %v896_v48  ;;  %v3897_v29 = vunpack.c.h.bf16 %v4011_v49  ;;  %v4005_v60 = vld [vmem:[%s4203_s22 + $0x30] sm:$0xff]  }
  0x2b   : > { %5866 = vst [vmem:[#allocation7_spill] sm:$0xff] %v4352_v3  ;;  %v643_v9 = vpack.c.bf16 %v611_v57, %v611_v57  ;;  %v4364_v10 = vsel %vm4313_vm2, %v943_v38, %v1096_v63  ;;  %v4368_v11 = vsel %vm4313_vm2, %v949_v42, %v1110_v34  ;;  %v678_v13 = vunpack.c.l.bf16 %v642_v51 }
  0x2c   : > { %5867 = vst [vmem:[#allocation8_spill] sm:$0xff] %v4355_v5  ;;  %v626_v16 = vmul.f32 %v3888_v8, %v4212_v14  ;;  %1702 = vmatmul.bf16.vlgmr.msra.gmra.mxu0 %v4352_v3  ;;  %1742 = vmatmul.bf16.vlgmr.msra.gmra.mxu1 %v4364_v10  ;;  %v5758_v21 = vshrl.u32 %v4355_v5, 16  ;;  %v5759_v23 = vshll.u32 %v4355_v5, 16  ;;  %v627_v24 = vmul.f32 %v3889_v62, %v4212_v14 }
  0x2d   : > { %5868 = vst [vmem:[#allocation9_spill] sm:$0xff] %v4364_v10  ;;  %1752 = vmatmul.bf16.vlgmr.msra.gmra.mxu2 %v4368_v11  ;;  %1773 = vmatpush.bf16.msrb.mxu1 %v4346_v25  ;;  %v711_v8 = vadd.f32 %v4215_v17, %v678_v13  ;;  %v630_v31 = vmul.f32 %v3896_v2, %v4212_v14  ;;  %v3904_v42 = vunpack.c.l.bf16 %v4013_v18  ;;  %v3905_v59 = vunpack.c.h.bf16 %v4013_v18  ;;  %v4433_v18 = vld [vmem:[%s5752_s3 + $0x160] sm:$0xff] }
  0x2e   : > { %5869 = vst [vmem:[#allocation10_spill] sm:$0xff] %v4368_v11  ;;  %1852 = vmatpush.bf16.msrb.mxu2 %v4324_v54  ;;  %1931 = vmatpush.bf16.msrb.mxu3 %v4172_v0  ;;  %v679_v0 = vunpack.c.l.bf16 %v643_v9  ;;  %v658_v28 = vpack.c.bf16 %v626_v16, %v626_v16  ;;  %v1121_v33 = vrot.slane %v5758_v21, 7  ;;  %v659_v38 = vpack.c.bf16 %v627_v24, %v627_v24 }
  0x2f   : > { %2211 = vmatpush.bf16.msrb.mxu0 %v4360_v7  ;;  %v807_v48 = vmax.f32 %v711_v8, 0.0  ;;  %v631_v52 = vmul.f32 %v3897_v29, %v4212_v14  ;;  %v662_v53 = vpack.c.bf16 %v630_v31, %v630_v31  ;;  %v634_v16 = vmul.f32 %v3904_v42, %v4212_v14 }
  0x30   : > { %v712_v35 = vadd.f32 %v4215_v17, %v679_v0  ;;  %v694_v49 = vunpack.c.l.bf16 %v658_v28  ;;  %v1124_v55 = vor.u32 %v5759_v23, %v1121_v33  ;;  %v695_v58 = vunpack.c.l.bf16 %v659_v38 }
  0x31   : > { %1774 = vmatpush.bf16.msrb.mxu1 %v4391_v56  ;;  %v839_v62 = vpack.c.bf16 %v807_v48, %v807_v48  ;;  %v663_v34 = vpack.c.bf16 %v631_v52, %v631_v52  ;;  %v698_v51 = vunpack.c.l.bf16 %v662_v53  ;;  %v635_v31 = vmul.f32 %v3905_v59, %v4212_v14 }
  0x32   : > { %1853 = vmatpush.bf16.msrb.mxu2 %v4375_v12  ;;  %1932 = vmatpush.bf16.msrb.mxu3 %v4179_v1  ;;  %v808_v57 = vmax.f32 %v712_v35, 0.0  ;;  %v4418_v1 = vld [vmem:[%s5752_s3 + $0x128] sm:$0xff]  ;;  %v727_v63 = vadd.f32 %v4215_v17, %v694_v49  ;;  %v4423_v2 = vsel %vm4313_vm2, %v955_v4, %v1124_v55  ;;  %v728_v13 = vadd.f32 %v4215_v17, %v695_v58  ;;  %v4444_v35 = vld [vmem:[%s5752_s3 + $0x120] sm:$0xff] }
  0x33   : > { %5870 = vst [vmem:[#allocation11_spill] sm:$0xff] %v4423_v2  ;;  %2212 = vmatpush.bf16.msrb.mxu0 %v4402_v45  ;;  %1762 = vmatmul.bf16.vlgmr.msra.gmra.mxu3 %v4423_v2  ;;  %v885_v0 = vunpack.c.l.b16 %v839_v62  ;;  %v699_v4 = vunpack.c.l.bf16 %v663_v34  ;;  %v731_v8 = vadd.f32 %v4215_v17, %v698_v51  ;;  %v666_v33 = vpack.c.bf16 %v634_v16, %v634_v16  ;;  %v4002_v34 = vld [vmem:[%s4203_s22 + $0x18] sm:$0xff]  }
  0x34   : > { %v840_v9 = vpack.c.bf16 %v808_v57, %v808_v57  ;;  %v823_v24 = vmax.f32 %v727_v63, 0.0  ;;  %v824_v29 = vmax.f32 %v728_v13, 0.0  ;;  %v667_v53 = vpack.c.bf16 %v635_v31, %v635_v31  ;;  %v4454_v63 = vld [vmem:[%s5752_s3 + $0x158] sm:$0xff] }
  0x35   : > { %1775 = vmatpush.bf16.msrb.mxu1 %v4418_v1  ;;  %v901_v38 = vpack.c.b16 %v885_v0, %v885_v0  ;;  %v732_v48 = vadd.f32 %v4215_v17, %v699_v4  ;;  %v827_v49 = vmax.f32 %v731_v8, 0.0  ;;  %v702_v55 = vunpack.c.l.bf16 %v666_v33  ;;  %v4014_v2 = vld [vmem:[%s4203_s22 + $0x78] sm:$0xff]  }
  0x36   : > { %1854 = vmatpush.bf16.msrb.mxu2 %v4409_v47  ;;  %1933 = vmatpush.bf16.msrb.mxu3 %v4197_v6  ;;  %v4437_v28 = vunpack.c.l.b16 %v840_v9  ;;  %v855_v42 = vpack.c.bf16 %v823_v24, %v823_v24  ;;  %v856_v52 = vpack.c.bf16 %v824_v29, %v824_v29  ;;  %v703_v16 = vunpack.c.l.bf16 %v667_v53  ;;  %v4467_v29 = vld [vmem:[%s5752_s3 + $0x118] sm:$0xff]  ;;  %v4481_v53 = vld [vmem:[%s5752_s3 + $0x150] sm:$0xff] }
  0x37   : > { %v922_v57 = vshrl.u32 %v901_v38, 16  ;;  %v828_v59 = vmax.f32 %v732_v48, 0.0  ;;  %v859_v62 = vpack.c.bf16 %v827_v49, %v827_v49  ;;  %v735_v8 = vadd.f32 %v4215_v17, %v702_v55 }
  0x38   : > { %v4448_v6 = vpack.c.b16 %v4437_v28, %v885_v0  ;;  %v893_v58 = vunpack.c.l.b16 %v855_v42  ;;  %v4460_v13 = vunpack.c.l.b16 %v856_v52  ;;  %v736_v33 = vadd.f32 %v4215_v17, %v703_v16 }
  0x39   : > { %1776 = vmatpush.bf16.msrb.mxu1 %v4444_v35  ;;  %v860_v24 = vpack.c.bf16 %v828_v59, %v828_v59  ;;  %v895_v4 = vunpack.c.l.b16 %v859_v62  ;;  %v3860_v38 = vunpack.c.l.bf16 %v4002_v34  ;;  %v831_v52 = vmax.f32 %v735_v8, 0.0  ;;  %v4495_v8 = vld [vmem:[%s5752_s3 + $0x110] sm:$0xff] }
  0x3a   : > { %5871 = vst [vmem:[#allocation12_spill] sm:$0xff] %v4448_v6  ;;  %1855 = vmatpush.bf16.msrb.mxu2 %v4433_v18  ;;  %1934 = vmatpush.bf16.msrb.mxu3 %v4228_v26  ;;  %v5768_v51 = vshrl.u32 %v4448_v6, 16  ;;  %v5769_v9 = vshll.u32 %v4448_v6, 16  ;;  %v909_v0 = vpack.c.b16 %v893_v58, %v893_v58  ;;  %v4472_v31 = vpack.c.b16 %v4460_v13, %v893_v58 }
  0x3b   : > { %v911_v48 = vpack.c.b16 %v895_v4, %v895_v4  ;;  %v4475_v49 = vunpack.c.l.b16 %v860_v24  ;;  %v832_v62 = vmax.f32 %v736_v33, 0.0  ;;  %v863_v24 = vpack.c.bf16 %v831_v52, %v831_v52 }
  0x3c   : > { %v1044_v26 = vrot.slane %v5768_v51, 7  ;;  %v946_v42 = vshrl.u32 %v909_v0, 16  ;;  %v5762_v58 = vshrl.u32 %v4472_v31, 16  ;;  %v5764_v59 = vshll.u32 %v4472_v31, 16 }
  0x3d   : > { %v952_v16 = vshrl.u32 %v911_v48, 16  ;;  %v4489_v0 = vpack.c.b16 %v4475_v49, %v895_v4  ;;  %1777 = vmatpush.bf16.msrb.mxu1 %v4467_v29  ;;  %v864_v33 = vpack.c.bf16 %v832_v62, %v832_v62  ;;  %v612_v4 = vmul.f32 %v3860_v38, %v4212_v14  ;;  %v4517_v38 = vld [vmem:[%s5752_s3 + $0x68] sm:$0xff] }
  0x3e   : > { %1856 = vmatpush.bf16.msrb.mxu2 %v4454_v63  ;;  %v1047_v55 = vor.u32 %v5769_v9, %v1044_v26  ;;  %1935 = vmatpush.bf16.msrb.mxu3 %v4243_v43  ;;  %v3861_v26 = vunpack.c.h.bf16 %v4002_v34  ;;  %v1100_v43 = vrot.slane %v5762_v58, 7  ;;  %v897_v23 = vunpack.c.l.b16 %v863_v24  ;;  %v4532_v58 = vld [vmem:[%s5752_s3 + $0x108] sm:$0xff] }
  0x3f   : > { %5872 = vst [vmem:[#allocation13_spill] sm:$0xff] %v4489_v0  ;;  %v5763_v48 = vshrl.u32 %v4489_v0, 16  ;;  %v5765_v52 = vshll.u32 %v4489_v0, 16  ;;  %v4521_v62 = vunpack.c.l.b16 %v864_v33  ;;  %v644_v24 = vpack.c.bf16 %v612_v4, %v612_v4  ;;  %2213 = vmatpush.bf16.msrb.mxu0 %v4517_v38 }
  0x40   : > { %v4499_v21 = vsel %vm4313_vm2, %v922_v57, %v1047_v55  ;;  %v4511_v57 = vld [vmem:[%s5752_s3 + $0x148] sm:$0xff]  ;;  %v613_v34 = vmul.f32 %v3861_v26, %v4212_v14  ;;  %v1103_v55 = vor.u32 %v5764_v59, %v1100_v43  ;;  %v1176_v44 = vrot.slane %v1038_v37, 1 }
  0x41   : > { %5873 = vst [vmem:[#allocation14_spill] sm:$0xff] %v4499_v21  ;;  %1707 = vmatmul.bf16.gmra.mxu0 %v4499_v21  ;;  %v1114_v46 = vrot.slane %v5763_v48, 7  ;;  %v913_v26 = vpack.c.b16 %v897_v23, %v897_v23  ;;  %1778 = vmatpush.bf16.msrb.mxu1 %v4495_v8  ;;  %v4542_v33 = vpack.c.b16 %v4521_v62, %v897_v23  ;;  %v680_v4 = vunpack.c.l.bf16 %v644_v24 }
  0x42   : > { %1857 = vmatpush.bf16.msrb.mxu2 %v4481_v53  ;;  %5874 = vst [vmem:[#allocation15_spill] sm:$0xff] %v4521_v62  ;;  %1936 = vmatpush.bf16.msrb.mxu3 %v4262_v61  ;;  %v645_v43 = vpack.c.bf16 %v613_v34, %v613_v34  ;;  %v1223_v61 = vpack.c.b16 %v4268_v15, %v4268_v15  ;;  %v4551_v15 = vld [vmem:[%s5752_s3 + $0x140] sm:$0xff] }
  0x43   : > { %v4539_v37 = vsel %vm4313_vm2, %v946_v42, %v1103_v55  ;;  %5876 = vst [vmem:[#allocation17_spill] sm:$0xff] %v4542_v33  ;;  %v1117_v48 = vor.u32 %v5765_v52, %v1114_v46  ;;  %v1177_v42 = vor.u32 %v1176_v44, %v1035_v36  ;;  %v3847_v55 = vld [vmem:[%s4203_s22] sm:$0xff]   ;;  %v958_v23 = vshrl.u32 %v913_v26, 16 }
  0x44   : > { %5875 = vst [vmem:[#allocation16_spill] sm:$0xff] %v4539_v37  ;;  %1747 = vmatmul.bf16.gmra.mxu1 %v4539_v37  ;;  %v681_v34 = vunpack.c.l.bf16 %v645_v43  ;;  %v5770_v24 = vshrl.u32 %v4542_v33, 16  ;;  %v5771_v59 = vshll.u32 %v4542_v33, 16  ;;  %v713_v46 = vadd.f32 %v4215_v17, %v680_v4  ;;  %v4003_v52 = vld [vmem:[%s4203_s22 + $0x20] sm:$0xff]  }
  0x45   : > { %v4563_v40 = vsel %vm4313_vm2, %v952_v16, %v1117_v48  ;;  %1779 = vmatpush.bf16.msrb.mxu1 %v4532_v58  ;;  %v4569_v36 = vld [vmem:[%s5752_s3 + $0x100] sm:$0xff]  ;;  %v1243_v26 = vshll.u32 %v1223_v61, 16  ;;  %v3848_v4 = vunpack.c.l.bf16 %v3847_v55  ;;  %v3849_v16 = vunpack.c.h.bf16 %v3847_v55  ;;  %v3797_v48 = vld [vmem:[%s5752_s3 + $0xb8] sm:$0xff] }
  0x46   : > { %1858 = vmatpush.bf16.msrb.mxu2 %v4511_v57  ;;  %1937 = vmatpush.bf16.msrb.mxu3 %v4276_v19  ;;  %5877 = vst [vmem:[#allocation18_spill] sm:$0xff] %v4563_v40  ;;  %v714_v44 = vadd.f32 %v4215_v17, %v681_v34  ;;  %v1128_v19 = vrot.slane %v5770_v24, 7  ;;  %v809_v43 = vmax.f32 %v713_v46, 0.0  ;;  %v3864_v51 = vunpack.c.l.bf16 %v4003_v52  ;;  %v4587_v24 = vld [vmem:[%s5752_s3 + $0x38] sm:$0xff] }
  0x47   : > { %1757 = vmatmul.bf16.gmra.mxu2 %v4563_v40  ;;  %v3865_v34 = vunpack.c.h.bf16 %v4003_v52  ;;  %v606_v46 = vmul.f32 %v3848_v4, %v4212_v14  ;;  %v607_v55 = vmul.f32 %v3849_v16, %v4212_v14  ;;  %v1245_v52 = vrot.slane %v1243_v26, 4 }
  0x48   : > { %v810_v41 = vmax.f32 %v714_v44, 0.0  ;;  %v1131_v61 = vor.u32 %v5771_v59, %v1128_v19  ;;  %v841_v9 = vpack.c.bf16 %v809_v43, %v809_v43  ;;  %v614_v19 = vmul.f32 %v3864_v51, %v4212_v14 }
  0x49   : > { %1780 = vmatpush.bf16.msrb.mxu1 %v4569_v36  ;;  %v638_v16 = vpack.c.bf16 %v606_v46, %v606_v46  ;;  %v639_v59 = vpack.c.bf16 %v607_v55, %v607_v55  ;;  %v3908_v55 = vunpack.c.l.bf16 %v4014_v2 }
  0x4a   : > { %1859 = vmatpush.bf16.msrb.mxu2 %v4551_v15  ;;  %1938 = vmatpush.bf16.msrb.mxu3 %v4300_v39  ;;  %v842_v44 = vpack.c.bf16 %v810_v41, %v810_v41  ;;  %v615_v39 = vmul.f32 %v3865_v34, %v4212_v14  ;;  %v4595_v43 = vsel %vm4313_vm2, %v958_v23, %v1131_v61  ;;  %v886_v4 = vunpack.c.l.b16 %v841_v9 }
  0x4b   : > { %5878 = vst [vmem:[#allocation19_spill] sm:$0xff] %v4595_v43  ;;  %1767 = vmatmul.bf16.gmra.mxu3 %v4595_v43  ;;  %v646_v51 = vpack.c.bf16 %v614_v19, %v614_v19  ;;  %v674_v9 = vunpack.c.l.bf16 %v638_v16  ;;  %v675_v34 = vunpack.c.l.bf16 %v639_v59  ;;  %v4625_v16 = vld [vmem:[%s5752_s3 + $0x60] sm:$0xff]  ;;  %v636_v59 = vmul.f32 %v3908_v55, %v4212_v14 }
  0x4c   : > { %v4600_v41 = vunpack.c.l.b16 %v842_v44  ;;  %v647_v23 = vpack.c.bf16 %v615_v39, %v615_v39  ;;  %v902_v26 = vpack.c.b16 %v886_v4, %v886_v4  ;;  %v4614_v44 = vsel %vm4604_vm5, %v1177_v42, %v1245_v52  ;;  %2214 = vmatpush.bf16.msrb.mxu0 %v4625_v16 }
  0x4d   : > { %2290 = vmatpush.bf16.msra.mxu1 %v3797_v48  ;;  %v682_v48 = vunpack.c.l.bf16 %v646_v51  ;;  %5883 = vst [vmem:[#allocation22_spill] sm:$0xff] %v4614_v44  ;;  %v707_v40 = vadd.f32 %v4215_v17, %v674_v9  ;;  %v708_v19 = vadd.f32 %v4215_v17, %v675_v34  ;;  %v4630_v9 = vld [vmem:[%s5752_s3 + $0x30] sm:$0xff]  ;;  %v668_v55 = vpack.c.bf16 %v636_v59, %v636_v59 }
  0x4e   : > { %1950 = vmatpush.bf16.msra.mxu3 %v4346_v25  ;;  %2369 = vmatpush.bf16.msra.mxu2 %v4587_v24  ;;  %v5879_v25 = vmov 0  ;;  %v4609_v61 = vpack.c.b16 %v4600_v41, %v886_v4  ;;  %v683_v46 = vunpack.c.l.bf16 %v647_v23  ;;  %v925_v42 = vshrl.u32 %v902_v26, 16  ;;  %v4004_v26 = vld [vmem:[%s4203_s22 + $0x28] sm:$0xff]  }
  0x4f   : > { %v5880_v25 = vsel %vm4604_vm5, 4294967295, %v5879_v25  ;;  %v715_v4 = vadd.f32 %v4215_v17, %v682_v48  ;;  %v803_v52 = vmax.f32 %v707_v40, 0.0  ;;  %v804_v51 = vmax.f32 %v708_v19, 0.0 }
  0x50   : > { %5881 = vst [vmem:[#allocation20_spill] sm:$0xff] %v5880_v25  ;;  %v5778_v39 = vshrl.u32 %v4609_v61, 16  ;;  %v3909_v23 = vunpack.c.h.bf16 %v4014_v2  ;;  %v1224_v2 = vpack.c.b16 %v4437_v28, %v4437_v28 }
  0x51   : > { %5882 = vst [vmem:[#allocation21_spill] sm:$0xff] %v4609_v61  ;;  %v811_v48 = vmax.f32 %v715_v4, 0.0  ;;  %v835_v40 = vpack.c.bf16 %v803_v52, %v803_v52  ;;  %v836_v19 = vpack.c.bf16 %v804_v51, %v804_v51  ;;  %v3868_v51 = vunpack.c.l.bf16 %v4004_v26 }
  0x52   : > { %1951 = vmatpush.bf16.msra.mxu3 %v4391_v56  ;;  %v716_v56 = vadd.f32 %v4215_v17, %v683_v46  ;;  %v1051_v34 = vrot.slane %v5778_v39, 7  ;;  %v637_v11 = vmul.f32 %v3909_v23, %v4212_v14  ;;  %2370 = vmatpush.bf16.msra.mxu2 %v4630_v9  ;;  %v5884_v39 = vshll.u32 %v4609_v61, 16 }
  0x53   : > { %v4645_v10 = vunpack.c.l.b16 %v836_v19  ;;  %v5887_v19 = vshll.u32 %v4448_v6, 16 }
  0x54   : > { %v812_v46 = vmax.f32 %v716_v56, 0.0  ;;  %v1054_v37 = vor.u32 %v5884_v39, %v1051_v34  ;;  %1781 = vmatmul.bf16.vlgmr.msrb.gmra.mxu1 %v4285_v27  ;;  %v883_v56 = vunpack.c.l.b16 %v835_v40  ;;  %v669_v52 = vpack.c.bf16 %v637_v11, %v637_v11 }
  0x55   : > { %v704_v39 = vunpack.c.l.bf16 %v668_v55 }
  0x56   : > { %1952 = vmatpush.bf16.msra.mxu3 %v4418_v1  ;;  %v843_v1 = vpack.c.bf16 %v811_v48, %v811_v48  ;;  %v844_v4 = vpack.c.bf16 %v812_v46, %v812_v46  ;;  %v4649_v28 = vsel %vm4313_vm2, %v925_v42, %v1054_v37  ;;  %v899_v59 = vpack.c.b16 %v883_v56, %v883_v56 }
  0x57   : > { %5885 = vst [vmem:[#allocation23_spill] sm:$0xff] %v4649_v28  ;;  %1712 = vmatmul.bf16.gmra.mxu0 %v4649_v28  ;;  %1860 = vmatmul.bf16.vlgmr.msrb.gmra.mxu2 %v4614_v44  ;;  %v4657_v34 = vpack.c.b16 %v4645_v10, %v883_v56  ;;  %v705_v11 = vunpack.c.l.bf16 %v669_v52  ;;  %v3869_v48 = vunpack.c.h.bf16 %v4004_v26  ;;  %v737_v37 = vadd.f32 %v4215_v17, %v704_v39 }
  0x58   : > { %v887_v23 = vunpack.c.l.b16 %v843_v1  ;;  %v4652_v43 = vunpack.c.l.b16 %v844_v4  ;;  %v1178_v1 = vrot.slane %v5887_v19, 1  ;;  %v916_v55 = vshrl.u32 %v899_v59, 16 }
  0x59   : > { %v5793_v42 = vshrl.u32 %v4657_v34, 16  ;;  %v738_v4 = vadd.f32 %v4215_v17, %v705_v11  ;;  %v1247_v26 = vshll.u32 %v1224_v2, 16  ;;  %v833_v52 = vmax.f32 %v737_v37, 0.0 }
  0x5a   : > { %1953 = vmatpush.bf16.msra.mxu3 %v4444_v35  ;;  %v4660_v46 = vpack.c.b16 %v4652_v43, %v887_v23  ;;  %v616_v35 = vmul.f32 %v3868_v51, %v4212_v14  ;;  %v617_v44 = vmul.f32 %v3869_v48, %v4212_v14  ;;  %v903_v33 = vpack.c.b16 %v887_v23, %v887_v23 }
  0x5b   : > { %v1030_v51 = vrot.slane %v5793_v42, 7  ;;  %v834_v39 = vmax.f32 %v738_v4, 0.0  ;;  %v865_v11 = vpack.c.bf16 %v833_v52, %v833_v52  ;;  %v5888_v62 = vshll.u32 %v4657_v34, 16 }
  0x5c   : > { %5886 = vst [vmem:[#allocation24_spill] sm:$0xff] %v4660_v46  ;;  %v5797_v56 = vshrl.u32 %v4660_v46, 16  ;;  %v648_v40 = vpack.c.bf16 %v616_v35, %v616_v35  ;;  %v5799_v59 = vshll.u32 %v4660_v46, 16  ;;  %v649_v5 = vpack.c.bf16 %v617_v44, %v617_v44 }
  0x5d   : > { %v1033_v2 = vor.u32 %v5888_v62, %v1030_v51  ;;  %v866_v37 = vpack.c.bf16 %v834_v39, %v834_v39  ;;  %v5889_v42 = vshrl.u32 %v4448_v6, 16  ;;  %v1249_v0 = vrot.slane %v1247_v26, 4 }
  0x5e   : > { %1954 = vmatpush.bf16.msra.mxu3 %v4467_v29  ;;  %v1058_v19 = vrot.slane %v5797_v56, 7  ;;  %v684_v29 = vunpack.c.l.bf16 %v648_v40  ;;  %v898_v48 = vunpack.c.l.b16 %v865_v11  ;;  %v685_v52 = vunpack.c.l.bf16 %v649_v5 }
  0x5f   : > { %v1179_v4 = vor.u32 %v1178_v1, %v5889_v42  ;;  %v4685_v23 = vsel %vm4313_vm2, %v916_v55, %v1033_v2  ;;  %v4687_v35 = vunpack.c.l.b16 %v866_v37  ;;  %v928_v44 = vshrl.u32 %v903_v33, 16  ;;  %v4696_v42 = vld [vmem:[%s5752_s3 + $0xb0] sm:$0xff] }
  0x60   : > { %v717_v62 = vadd.f32 %v4215_v17, %v684_v29  ;;  %1939 = vmatmul.bf16.vlgmr.msrb.gmra.mxu3 %v4685_v23  ;;  %v1061_v40 = vor.u32 %v5799_v59, %v1058_v19  ;;  %5890 = vst [vmem:[#allocation25_spill] sm:$0xff] %v4696_v42  ;;  %v3872_v1 = vunpack.c.l.bf16 %v4005_v60  ;;  %v718_v55 = vadd.f32 %v4215_v17, %v685_v52 }
  0x61   : > { %v4704_v5 = vpack.c.b16 %v4687_v35, %v898_v48  ;;  %v3873_v26 = vunpack.c.h.bf16 %v4005_v60  ;;  %2291 = vmatpush.bf16.msra.mxu1 %v4696_v42  ;;  %v4712_v39 = vsel %vm4604_vm5, %v1179_v4, %v1249_v0 }
  0x62   : > { %1955 = vmatpush.bf16.msra.mxu3 %v4495_v8  ;;  %v4701_v8 = vld [vmem:[%s5752_s3 + $0x58] sm:$0xff]  ;;  %v813_v33 = vmax.f32 %v717_v62, 0.0  ;;  %v618_v51 = vmul.f32 %v3872_v1, %v4212_v14  ;;  %5892 = vst [vmem:[#allocation27_spill] sm:$0xff] %v4712_v39  ;;  %v814_v11 = vmax.f32 %v718_v55, 0.0  ;;  %v4718_v60 = vsel %vm4313_vm2, %v928_v44, %v1061_v40 }
  0x63   : > { %5891 = vst [vmem:[#allocation26_spill] sm:$0xff] %v4704_v5  ;;  %v5796_v19 = vshrl.u32 %v4704_v5, 16  ;;  %2215 = vmatpush.bf16.msrb.mxu0 %v4701_v8  ;;  %v619_v37 = vmul.f32 %v3873_v26, %v4212_v14  ;;  %v5798_v4 = vshll.u32 %v4704_v5, 16  ;;  %v1225_v44 = vpack.c.b16 %v4600_v41, %v4600_v41 }
  0x64   : > { %v845_v2 = vpack.c.bf16 %v813_v33, %v813_v33  ;;  %5893 = vst [vmem:[#allocation28_spill] sm:$0xff] %v4718_v60  ;;  %1786 = vmatmul.bf16.gmra.mxu1 %v4448_v6  ;;  %v650_v29 = vpack.c.bf16 %v618_v51, %v618_v51  ;;  %v846_v52 = vpack.c.bf16 %v814_v11, %v814_v11  ;;  %v4006_v33 = vld [vmem:[%s4203_s22 + $0x38] sm:$0xff]  }
  0x65   : > { %v1135_v0 = vrot.slane %v5796_v19, 7  ;;  %v651_v1 = vpack.c.bf16 %v619_v37, %v619_v37  ;;  %v3876_v51 = vunpack.c.l.bf16 %v4006_v33  ;;  %v5895_v37 = vshll.u32 %v4609_v61, 16 }
  0x66   : > { %1956 = vmatpush.bf16.msra.mxu3 %v4532_v58  ;;  %v914_v58 = vpack.c.b16 %v898_v48, %v898_v48  ;;  %v888_v62 = vunpack.c.l.b16 %v845_v2  ;;  %v686_v55 = vunpack.c.l.bf16 %v650_v29  ;;  %v4729_v48 = vunpack.c.l.b16 %v846_v52 }
  0x67   : > { %1717 = vmatmul.bf16.gmra.mxu0 %v4718_v60  ;;  %1865 = vmatmul.bf16.gmra.mxu2 %v4712_v39  ;;  %v687_v40 = vunpack.c.l.bf16 %v651_v1  ;;  %v1180_v29 = vrot.slane %v5895_v37, 1  ;;  %v3877_v41 = vunpack.c.h.bf16 %v4006_v33  ;;  %v1251_v1 = vshll.u32 %v1225_v44, 16 }
  0x68   : > { %v719_v26 = vadd.f32 %v4215_v17, %v686_v55  ;;  %v961_v11 = vshrl.u32 %v914_v58, 16  ;;  %v4738_v2 = vpack.c.b16 %v4729_v48, %v888_v62  ;;  %v904_v56 = vpack.c.b16 %v888_v62, %v888_v62 }
  0x69   : > { %v720_v52 = vadd.f32 %v4215_v17, %v687_v40  ;;  %v620_v55 = vmul.f32 %v3876_v51, %v4212_v14  ;;  %v621_v59 = vmul.f32 %v3877_v41, %v4212_v14  ;;  %v5897_v51 = vshrl.u32 %v4609_v61, 16 }
  0x6a   : > { %1957 = vmatpush.bf16.msra.mxu3 %v4569_v36  ;;  %v1138_v36 = vor.u32 %v5798_v4, %v1135_v0  ;;  %5894 = vst [vmem:[#allocation29_spill] sm:$0xff] %v4738_v2  ;;  %v815_v19 = vmax.f32 %v719_v26, 0.0  ;;  %v931_v26 = vshrl.u32 %v904_v56, 16  ;;  %v1253_v39 = vrot.slane %v1251_v1, 4  ;;  %v4769_v56 = vld [vmem:[%s5752_s3 + $0x28] sm:$0xff] }
  0x6b   : > { %v816_v0 = vmax.f32 %v720_v52, 0.0  ;;  %v652_v33 = vpack.c.bf16 %v620_v55, %v620_v55  ;;  %v653_v44 = vpack.c.bf16 %v621_v59, %v621_v59  ;;  %v1181_v58 = vor.u32 %v1180_v29, %v5897_v51  ;;  %2371 = vmatpush.bf16.msra.mxu2 %v4769_v56 }
  0x6c   : > { %v847_v4 = vpack.c.bf16 %v815_v19, %v815_v19  ;;  %v4750_v37 = vsel %vm4313_vm2, %v961_v11, %v1138_v36  ;;  %v5898_v19 = vshll.u32 %v4738_v2, 16  ;;  %v4764_v36 = vld [vmem:[%s5752_s3 + $0x50] sm:$0xff] }
  0x6d   : > { %5896 = vst [vmem:[#allocation30_spill] sm:$0xff] %v4750_v37  ;;  %v848_v40 = vpack.c.bf16 %v816_v0, %v816_v0  ;;  %v689_v59 = vunpack.c.l.bf16 %v653_v44  ;;  %2216 = vmatpush.bf16.msrb.mxu0 %v4764_v36  ;;  %v4782_v1 = vsel %vm4604_vm5, %v1181_v58, %v1253_v39  ;;  %v1226_v0 = vpack.c.b16 %v4652_v43, %v4652_v43 }
  0x6e   : > { %1969 = vmatpush.bf16.msrb.mxu3 %v4324_v54  ;;  %v5802_v54 = vshrl.u32 %v4738_v2, 16  ;;  %v889_v41 = vunpack.c.l.b16 %v847_v4  ;;  %5900 = vst [vmem:[#allocation32_spill] sm:$0xff] %v4782_v1 }
  0x6f   : > { %v4759_v11 = vunpack.c.l.b16 %v848_v40  ;;  %v5902_v40 = vshll.u32 %v4657_v34, 16  ;;  %v1255_v43 = vshll.u32 %v1226_v0, 16 }
  0x70   : > { %v1065_v62 = vrot.slane %v5802_v54, 7  ;;  %1944 = vmatmul.bf16.gmra.mxu3 %v4750_v37  ;;  %v905_v54 = vpack.c.b16 %v889_v41, %v889_v41 }
  0x71   : > { %v4785_v55 = vpack.c.b16 %v4759_v11, %v889_v41  ;;  %v1174_v39 = vrot.slane %v5902_v40, 1 }
  0x72   : > { %1970 = vmatpush.bf16.msrb.mxu3 %v4375_v12  ;;  %v688_v12 = vunpack.c.l.bf16 %v652_v33  ;;  %v1068_v52 = vor.u32 %v5898_v19, %v1065_v62  ;;  %v4007_v62 = vld [vmem:[%s4203_s22 + $0x40] sm:$0xff]   ;;  %v5904_v19 = vshrl.u32 %v4657_v34, 16 }
  0x73   : > { %5901 = vst [vmem:[#allocation33_spill] sm:$0xff] %v4785_v55  ;;  %v3880_v51 = vunpack.c.l.bf16 %v4007_v62  ;;  %v1073_v40 = vshll.u32 %v4785_v55, 16 }
  0x74   : > { %v721_v4 = vadd.f32 %v4215_v17, %v688_v12  ;;  %v4777_v29 = vsel %vm4313_vm2, %v931_v26, %v1068_v52  ;;  %1791 = vmatmul.bf16.gmra.mxu1 %v4609_v61  ;;  %v1222_v26 = vpack.c.b16 %v4645_v10, %v4645_v10  ;;  %v1175_v52 = vor.u32 %v1174_v39, %v5904_v19 }
  0x75   : > { %5899 = vst [vmem:[#allocation31_spill] sm:$0xff] %v4777_v29  ;;  %v5905_v10 = vshrl.u32 %v4785_v55, 16 }
  0x76   : > { %1971 = vmatpush.bf16.msrb.mxu3 %v4409_v47  ;;  %v722_v47 = vadd.f32 %v4215_v17, %v689_v59  ;;  %v817_v33 = vmax.f32 %v721_v4, 0.0  ;;  %v1239_v59 = vshll.u32 %v1222_v26, 16  ;;  %v3881_v4 = vunpack.c.h.bf16 %v4007_v62 }
  0x77   : > { %1722 = vmatmul.bf16.gmra.mxu0 %v4777_v29  ;;  %1870 = vmatmul.bf16.gmra.mxu2 %v4782_v1  ;;  %v1072_v37 = vrot.slane %v5905_v10, 7  ;;  %v934_v62 = vshrl.u32 %v905_v54, 16  ;;  %v1257_v26 = vrot.slane %v1255_v43, 4 }
  0x78   : > { %v818_v44 = vmax.f32 %v722_v47, 0.0  ;;  %v849_v58 = vpack.c.bf16 %v817_v33, %v817_v33  ;;  %v622_v47 = vmul.f32 %v3880_v51, %v4212_v14  ;;  %v1241_v42 = vrot.slane %v1239_v59, 4 }
  0x79   : > { %v5906_v33 = vshrl.u32 %v4660_v46, 16  ;;  %v1227_v59 = vpack.c.b16 %v4729_v48, %v4729_v48  ;;  %v5910_v48 = vshll.u32 %v4738_v2, 16 }
  0x7a   : > { %1972 = vmatpush.bf16.msrb.mxu3 %v4433_v18  ;;  %v5903_v18 = vshll.u32 %v4660_v46, 16  ;;  %v850_v1 = vpack.c.bf16 %v818_v44, %v818_v44  ;;  %v4812_v0 = vsel %vm4604_vm5, %v1175_v52, %v1241_v42  ;;  %v890_v51 = vunpack.c.l.b16 %v849_v58  ;;  %v4829_v42 = vld [vmem:[%s5752_s3 + $0x48] sm:$0xff] }
  0x7b   : > { %v1075_v44 = vor.u32 %v1073_v40, %v1072_v37  ;;  %v3778_v37 = vld [vmem:[%s5752_s3 + $0x20] sm:$0xff]  ;;  %2217 = vmatpush.bf16.msrb.mxu0 %v4829_v42 }
  0x7c   : > { %v1182_v12 = vrot.slane %v5903_v18, 1  ;;  %v623_v18 = vmul.f32 %v3881_v4, %v4212_v14  ;;  %v4819_v19 = vunpack.c.l.b16 %v850_v1  ;;  %2372 = vmatpush.bf16.msra.mxu2 %v3778_v37  ;;  %v5908_v4 = vshll.u32 %v4704_v5, 16 }
  0x7d   : > { %v4843_v58 = vsel %vm4313_vm2, %v934_v62, %v1075_v44  ;;  %v1259_v44 = vshll.u32 %v1227_v59, 16  ;;  %v3777_v59 = vld [vmem:[%s5752_s3 + $0x18] sm:$0xff] }
  0x7e   : > { %1973 = vmatpush.bf16.msrb.mxu3 %v4454_v63  ;;  %v654_v63 = vpack.c.bf16 %v622_v47, %v622_v47  ;;  %v655_v41 = vpack.c.bf16 %v623_v18, %v623_v18  ;;  %v1183_v39 = vor.u32 %v1182_v12, %v5906_v33  ;;  %v1204_v47 = vrot.slane %v5908_v4, 1 }
  0x7f   : > { %v906_v33 = vpack.c.b16 %v890_v51, %v890_v51 }
  0x80   : > { %1958 = vmatmul.bf16.vlgmr.msra.gmra.mxu3 %v4657_v34  ;;  %v690_v54 = vunpack.c.l.bf16 %v654_v63  ;;  %v691_v12 = vunpack.c.l.bf16 %v655_v41  ;;  %v4839_v1 = vsel %vm4604_vm5, %v1183_v39, %v1257_v26  ;;  %v1237_v41 = vpack.c.b16 %v4687_v35, %v4687_v35  ;;  %2373 = vmatpush.bf16.msra.mxu2 %v3777_v59 }
  0x81   : > { %v1184_v26 = vrot.slane %v5910_v48, 1  ;;  %v937_v35 = vshrl.u32 %v906_v33, 16  ;;  %v3775_v48 = vld [vmem:[%s5752_s3 + $0x8] sm:$0xff] }
  0x82   : > { %1974 = vmatpush.bf16.msrb.mxu3 %v4481_v53  ;;  %v4824_v53 = vld [vmem:[%s5752_s3 + $0xa8] sm:$0xff]  ;;  %v723_v43 = vadd.f32 %v4215_v17, %v690_v54  ;;  %v724_v52 = vadd.f32 %v4215_v17, %v691_v12  ;;  %v1299_v62 = vshll.u32 %v1237_v41, 16  ;;  %v4888_v41 = vld [vmem:[%s5752_s3 + $0x40] sm:$0xff] }
  0x83   : > { %2292 = vmatpush.bf16.msra.mxu1 %v4824_v53  ;;  %2218 = vmatpush.bf16.msrb.mxu0 %v4888_v41 }
  0x84   : > { %1796 = vmatmul.bf16.gmra.mxu1 %v4660_v46  ;;  %v819_v18 = vmax.f32 %v723_v43, 0.0  ;;  %v820_v63 = vmax.f32 %v724_v52, 0.0  ;;  %v1301_v52 = vrot.slane %v1299_v62, 4 }
  0x86   : > { %1975 = vmatpush.bf16.msrb.mxu3 %v4511_v57  ;;  %v4847_v57 = vpack.c.b16 %v4819_v19, %v890_v51  ;;  %v851_v12 = vpack.c.bf16 %v819_v18, %v819_v18  ;;  %v852_v43 = vpack.c.bf16 %v820_v63, %v820_v63  ;;  %v5912_v51 = vshrl.u32 %v4738_v2, 16 }
  0x87   : > { %1727 = vmatmul.bf16.gmra.mxu0 %v4843_v58  ;;  %1875 = vmatmul.bf16.gmra.mxu2 %v4839_v1  ;;  %v1261_v18 = vrot.slane %v1259_v44, 4  ;;  %v1228_v44 = vpack.c.b16 %v4759_v11, %v4759_v11 }
  0x88   : > { %5907 = vst [vmem:[#allocation34_spill] sm:$0xff] %v4847_v57  ;;  %v1077_v10 = vshrl.u32 %v4847_v57, 16  ;;  %v1080_v39 = vshll.u32 %v4847_v57, 16  ;;  %v1185_v4 = vor.u32 %v1184_v26, %v5912_v51  ;;  %v891_v63 = vunpack.c.l.b16 %v851_v12  ;;  %v3774_v12 = vld [vmem:[%s5752_s3] sm:$0xff] }
  0x89   : > { %v1263_v51 = vshll.u32 %v1228_v44, 16 }
  0x8a   : > { %1976 = vmatpush.bf16.msrb.mxu3 %v4551_v15  ;;  %v5909_v15 = vshrl.u32 %v4704_v5, 16  ;;  %v1079_v54 = vrot.slane %v1077_v10, 7  ;;  %v4907_v33 = vsel %vm4604_vm5, %v1185_v4, %v1261_v18  ;;  %v4933_v18 = vld [vmem:[%s5752_s3 + $0x1f8] sm:$0xff]  ;;  %v1188_v44 = vrot.slane %v1080_v39, 1 }
  0x8b   : > { %5913 = vst [vmem:[#allocation36_spill] sm:$0xff] %v4907_v33 }
  0x8e   : > { %2132 = vmatpush.bf16.msra.mxu3 %v4587_v24  ;;  %v1205_v24 = vor.u32 %v1204_v47, %v5909_v15  ;;  %v1082_v47 = vor.u32 %v1080_v39, %v1079_v54  ;;  %v4893_v15 = vld [vmem:[%s5752_s3 + $0xa0] sm:$0xff]  ;;  %v1186_v54 = vrot.slane %v1073_v40, 1 }
  0x8f   : > { %2293 = vmatpush.bf16.msra.mxu1 %v4893_v15 }
  0x90   : > { %1963 = vmatmul.bf16.gmra.mxu3 %v4704_v5  ;;  %v4902_v62 = vsel %vm4313_vm2, %v937_v35, %v1082_v47  ;;  %v1265_v47 = vrot.slane %v1263_v51, 4 }
  0x92   : > { %2133 = vmatpush.bf16.msra.mxu3 %v4630_v9  ;;  %v4873_v9 = vsel %vm4604_vm5, %v1205_v24, %v1301_v52  ;;  %v3776_v24 = vld [vmem:[%s5752_s3 + $0x10] sm:$0xff] }
  0x93   : > { %5911 = vst [vmem:[#allocation35_spill] sm:$0xff] %v4873_v9  ;;  %2374 = vmatpush.bf16.msra.mxu2 %v3776_v24 }
  0x94   : > { %1801 = vmatmul.bf16.gmra.mxu1 %v4738_v2 }
  0x96   : > { %2134 = vmatpush.bf16.msra.mxu3 %v4769_v56  ;;  %v4883_v56 = vunpack.c.l.b16 %v852_v43  ;;  %v907_v43 = vpack.c.b16 %v891_v63, %v891_v63 }
  0x97   : > { %1732 = vmatmul.bf16.gmra.mxu0 %v4902_v62  ;;  %1880 = vmatmul.bf16.gmra.mxu2 %v4907_v33 }
  0x98   : > { %2375 = vmatpush.bf16.msra.mxu2 %v3775_v48  ;;  %v940_v11 = vshrl.u32 %v907_v43, 16  ;;  %v1189_v43 = vor.u32 %v1188_v44, %v1077_v10  ;;  %v1230_v51 = vpack.c.b16 %v4883_v56, %v4883_v56  ;;  %v5921_v44 = vshll.u32 %v4288_v30, 16 }
  0x9a   : > { %2135 = vmatpush.bf16.msra.mxu3 %v3778_v37  ;;  %v4910_v37 = vpack.c.b16 %v4883_v56, %v891_v63  ;;  %v3845_v63 = vld [vmem:[%s5752_s3 + $0x238] sm:$0xff] }
  0x9b   : > { %2777 = vmatpush.bf16.msra.mxu0 %v3845_v63 }
  0x9c   : > { %v1084_v26 = vshrl.u32 %v4910_v37, 16  ;;  %v1087_v35 = vshll.u32 %v4910_v37, 16  ;;  %2376 = vmatpush.bf16.msra.mxu2 %v3774_v12 }
  0x9e   : > { %2136 = vmatpush.bf16.msra.mxu3 %v3777_v59  ;;  %v1086_v52 = vrot.slane %v1084_v26, 7  ;;  %v5914_v59 = vshrl.u32 %v4785_v55, 16 }
  0xa0   : > { %2388 = vmatpush.bf16.msrb.mxu2 %v4360_v7  ;;  %1977 = vmatmul.bf16.vlgmr.msrb.gmra.mxu3 %v4812_v0  ;;  %v1089_v4 = vor.u32 %v1087_v35, %v1086_v52  ;;  %v1187_v40 = vor.u32 %v1186_v54, %v5914_v59 }
  0xa2   : > { %2137 = vmatpush.bf16.msra.mxu3 %v3776_v24  ;;  %v4942_v7 = vsel %vm4313_vm2, %v940_v11, %v1089_v4  ;;  %v4947_v24 = vsel %vm4604_vm5, %v1187_v40, %v1265_v47  ;;  %v1190_v11 = vrot.slane %v1087_v35, 1  ;;  %v1271_v4 = vshll.u32 %v1230_v51, 16 }
  0xa3   : > { %5915 = vst [vmem:[#allocation37_spill] sm:$0xff] %v4947_v24  ;;  %v5923_v51 = vshrl.u32 %v4288_v30, 16 }
  0xa4   : > { %2389 = vmatpush.bf16.msrb.mxu2 %v4402_v45  ;;  %1806 = vmatmul.bf16.gmra.mxu1 %v4785_v55  ;;  %v1191_v40 = vor.u32 %v1190_v11, %v1084_v26  ;;  %v1273_v47 = vrot.slane %v1271_v4, 4 }
  0xa6   : > { %2138 = vmatpush.bf16.msra.mxu3 %v3775_v48  ;;  %v1229_v48 = vpack.c.b16 %v4819_v19, %v4819_v19  ;;  %v4965_v19 = vld [vmem:[%s5752_s3 + $0x98] sm:$0xff]  ;;  %v5004_v56 = vsel %vm4604_vm5, %v1191_v40, %v1273_v47 }
  0xa7   : > { %1737 = vmatmul.bf16.gmra.mxu0 %v4942_v7  ;;  %1885 = vmatmul.bf16.gmra.mxu2 %v4947_v24  ;;  %5918 = vst [vmem:[#allocation40_spill] sm:$0xff] %v5004_v56 }
  0xa8   : > { %2390 = vmatpush.bf16.msrb.mxu2 %v4517_v38  ;;  %v1267_v54 = vshll.u32 %v1229_v48, 16  ;;  %2294 = vmatpush.bf16.msra.mxu1 %v4965_v19 }
  0xa9   : > { %v1703_v45 = vpop.f32.mrf.mxu0 }
  0xaa   : > { %2139 = vmatpush.bf16.msra.mxu3 %v3774_v12  ;;  %v4957_v12 = vpop.f32.mrf.mxu1  ;;  %v1269_v52 = vrot.slane %v1267_v54, 4  ;;  %v1192_v54 = vrot.slane %v5921_v44, 1 }
  0xac   : > { %2391 = vmatpush.bf16.msrb.mxu2 %v4625_v16  ;;  %v4972_v38 = vsel %vm4604_vm5, %v1189_v43, %v1269_v52  ;;  %v1193_v11 = vor.u32 %v1192_v54, %v5923_v51 }
  0xad   : > { %5916 = vst [vmem:[#allocation38_spill] sm:$0xff] %v4972_v38 }
  0xae   : > { %2698 = vmatpush.bf16.msrb.mxu3 %v4933_v18 }
  0xb0   : > { %1982 = vmatmul.bf16.gmra.mxu3 %v4873_v9  ;;  %2392 = vmatpush.bf16.msrb.mxu2 %v4701_v8  ;;  %v4975_v16 = vpop.f32.mrf.mxu2  ;;  %v4984_v8 = vld [vmem:[%s5752_s3 + $0x1f0] sm:$0xff] }
  0xb1   : > { %v1705_v10 = vpop.f32.mrf.mxu0 }
  0xb2   : > { %v4979_v39 = vpop.f32.mrf.mxu1  ;;  %2699 = vmatpush.bf16.msrb.mxu3 %v4984_v8 }
  0xb4   : > { %1811 = vmatmul.bf16.gmra.mxu1 %v4847_v57  ;;  %2393 = vmatpush.bf16.msrb.mxu2 %v4764_v36 }
  0xb6   : > { %v4990_v36 = vpop.f32.mrf.mxu3 }
  0xb7   : > { %1890 = vmatmul.bf16.gmra.mxu2 %v4972_v38  ;;  %2219 = vmatmul.bf16.vlgmr.msrb.gmra.mxu0 %v4657_v34  ;;  %5917 = vst [vmem:[#allocation39_spill] sm:$0xff] %v4990_v36 }
  0xb8   : > { %2394 = vmatpush.bf16.msrb.mxu2 %v4829_v42  ;;  %v4994_v34 = vpop.f32.mrf.mxu2  ;;  %v3844_v42 = vld [vmem:[%s5752_s3 + $0x230] sm:$0xff] }
  0xb9   : > { %2778 = vmatpush.bf16.msra.mxu0 %v3844_v42  ;;  %v5028_v42 = vld [vmem:[%s5752_s3 + $0x90] sm:$0xff] }
  0xba   : > { %2295 = vmatpush.bf16.msra.mxu1 %v5028_v42 }
  0xbc   : > { %2395 = vmatpush.bf16.msrb.mxu2 %v4888_v41 }
  0xbe   : > { %v1708_v59 = vpop.f32.mrf.mxu0  ;;  %v5006_v41 = vpop.f32.mrf.mxu3 }
  0xbf   : > { %5919 = vst [vmem:[#allocation41_spill] sm:$0xff] %v5006_v41 }
  0xc0   : > { %2140 = vmatmul.bf16.vlgmr.msra.gmra.mxu3 %v4685_v23  ;;  %v1231_v23 = vpack.c.b16 %v4278_v20, %v4278_v20 }
  0xc1   : > { %v4996_v63 = vpop.f32.mrf.mxu1 }
  0xc2   : > { %v1275_v43 = vshll.u32 %v1231_v23, 16  ;;  %v5033_v23 = vld [vmem:[%s5752_s3 + $0x1e8] sm:$0xff] }
  0xc3   : > { %5925 = vst [vmem:[#allocation45_spill] sm:$0xff] %v5033_v23  ;;  %2700 = vmatpush.bf16.msrb.mxu3 %v5033_v23 }
  0xc4   : > { %1816 = vmatmul.bf16.gmra.mxu1 %v4910_v37  ;;  %v1277_v4 = vrot.slane %v1275_v43, 4 }
  0xc6   : > { %v1710_v48 = vpop.f32.mrf.mxu0  ;;  %v5038_v54 = vsel %vm4604_vm5, %v1193_v11, %v1277_v4  ;;  %v5928_v4 = vshll.u32 %v4472_v31, 16 }
  0xc7   : > { %1895 = vmatmul.bf16.gmra.mxu2 %v5004_v56  ;;  %2224 = vmatmul.bf16.gmra.mxu0 %v4285_v27  ;;  %5926 = vst [vmem:[#allocation46_spill] sm:$0xff] %v5038_v54 }
  0xc8   : > { %v1194_v27 = vrot.slane %v5928_v4, 1  ;;  %v5931_v4 = vshll.u32 %v4291_v32, 16 }
  0xc9   : > { %v5012_v26 = vpop.f32.mrf.mxu1 }
  0xca   : > { %v5014_v35 = vpop.f32.mrf.mxu2 }
  0xcb   : > { %5920 = vst [vmem:[#allocation42_spill] sm:$0xff] %v5014_v35 }
  0xce   : > { %v5018_v52 = vpop.f32.mrf.mxu3 }
  0xcf   : > { %5922 = vst [vmem:[#allocation43_spill] sm:$0xff] %v5018_v52 }
  0xd0   : > { %2145 = vmatmul.bf16.gmra.mxu3 %v4352_v3 }
  0xd1   : > { %v1782_v40 = vpop.f32.mrf.mxu1 }
  0xd2   : > { %v5023_v47 = vpop.f32.mrf.mxu2  ;;  %v1783_v20 = vadd.f32 %v1782_v40, %v1703_v45  ;;  %v1232_v45 = vpack.c.b16 %v4460_v13, %v4460_v13  ;;  %v3843_v13 = vld [vmem:[%s5752_s3 + $0x228] sm:$0xff] }
  0xd3   : > { %5924 = vst [vmem:[#allocation44_spill] sm:$0xff] %v5023_v47  ;;  %2779 = vmatpush.bf16.msra.mxu0 %v3843_v13  ;;  %v1196_v13 = vrot.slane %v5931_v4, 1 }
  0xd4   : > { %v1713_v44 = vpop.f32.mrf.mxu0  ;;  %1821 = vmatmul.bf16.gmra.mxu1 %v4288_v30  ;;  %v1279_v3 = vshll.u32 %v1232_v45, 16 }
  0xd6   : > { %v5046_v43 = vpop.f32.mrf.mxu3  ;;  %v1281_v52 = vrot.slane %v1279_v3, 4 }
  0xd7   : > { %1900 = vmatmul.bf16.gmra.mxu2 %v5038_v54  ;;  %2229 = vmatmul.bf16.gmra.mxu0 %v4448_v6  ;;  %5927 = vst [vmem:[#allocation47_spill] sm:$0xff] %v5046_v43  ;;  %v5929_v54 = vshrl.u32 %v4472_v31, 16 }
  0xd9   : > { %v1784_v51 = vpop.f32.mrf.mxu1  ;;  %v1195_v56 = vor.u32 %v1194_v27, %v5929_v54  ;;  %v1233_v27 = vpack.c.b16 %v4280_v22, %v4280_v22  ;;  %v5079_v22 = vld [vmem:[%s5752_s3 + $0x88] sm:$0xff] }
  0xda   : > { %v1861_v40 = vpop.f32.mrf.mxu2  ;;  %v1785_v5 = vadd.f32 %v1784_v51, %v1705_v10  ;;  %2296 = vmatpush.bf16.msra.mxu1 %v5079_v22 }
  0xdb   : > { %v5048_v9 = vadd.f32 %v1861_v40, %v1783_v20  ;;  %v5063_v45 = vsel %vm4604_vm5, %v1195_v56, %v1281_v52  ;;  %v1283_v41 = vshll.u32 %v1233_v27, 16  ;;  %v5932_v56 = vshrl.u32 %v4291_v32, 16 }
  0xdc   : > { %v1715_v11 = vpop.f32.mrf.mxu0  ;;  %5930 = vst [vmem:[#allocation48_spill] sm:$0xff] %v5063_v45 }
  0xdd   : > { %v1197_v52 = vor.u32 %v1196_v13, %v5932_v56  ;;  %v5094_v13 = vld [vmem:[%s5752_s3 + $0x1e0] sm:$0xff] }
  0xde   : > { %5934 = vst [vmem:[#allocation50_spill] sm:$0xff] %v5094_v13  ;;  %2701 = vmatpush.bf16.msrb.mxu3 %v5094_v13 }
  0xe0   : > { %2150 = vmatmul.bf16.gmra.mxu3 %v4499_v21 }
  0xe1   : > { %v1787_v43 = vpop.f32.mrf.mxu1 }
  0xe2   : > { %v1863_v38 = vpop.f32.mrf.mxu2  ;;  %v1788_v10 = vadd.f32 %v1787_v43, %v1708_v59 }
  0xe3   : > { %v1940_v20 = vpop.f32.mrf.mxu3  ;;  %v5058_v51 = vadd.f32 %v1863_v38, %v1785_v5 }
  0xe4   : > { %v1718_v40 = vpop.f32.mrf.mxu0  ;;  %1826 = vmatmul.bf16.gmra.mxu1 %v4472_v31 }
  0xe7   : > { %1905 = vmatmul.bf16.gmra.mxu2 %v5063_v45  ;;  %2234 = vmatmul.bf16.gmra.mxu0 %v4609_v61  ;;  %v1285_v45 = vrot.slane %v1283_v41, 4  ;;  %v5935_v61 = vld [vmem:[#allocation13_spill] sm:$0xff] }
  0xe9   : > { %v1789_v3 = vpop.f32.mrf.mxu1  ;;  %v5089_v41 = vsel %vm4604_vm5, %v1197_v52, %v1285_v45 }
  0xea   : > { %v1866_v59 = vpop.f32.mrf.mxu2  ;;  %v1790_v54 = vadd.f32 %v1789_v3, %v1710_v48  ;;  %5933 = vst [vmem:[#allocation49_spill] sm:$0xff] %v5089_v41 }
  0xeb   : > { %v1942_v43 = vpop.f32.mrf.mxu3  ;;  %v5069_v5 = vadd.f32 %v1866_v59, %v1788_v10 }
  0xec   : > { %v1720_v38 = vpop.f32.mrf.mxu0 }
  0xf0   : > { %2155 = vmatmul.bf16.gmra.mxu3 %v4649_v28  ;;  %v5936_v28 = vshll.u32 %v5935_v61, 16 }
  0xf1   : > { %v1792_v48 = vpop.f32.mrf.mxu1 }
  0xf2   : > { %v1868_v3 = vpop.f32.mrf.mxu2  ;;  %v1793_v10 = vadd.f32 %v1792_v48, %v1713_v44  ;;  %v1234_v44 = vpack.c.b16 %v4475_v49, %v4475_v49  ;;  %v1198_v6 = vrot.slane %v5936_v28, 1  ;;  %v5938_v49 = vshrl.u32 %v5935_v61, 16 }
  0xf3   : > { %v5082_v59 = vpop.f32.mrf.mxu3  ;;  %v5084_v4 = vadd.f32 %v1868_v3, %v1790_v54 }
  0xf4   : > { %v1723_v27 = vpop.f32.mrf.mxu0  ;;  %1831 = vmatmul.bf16.gmra.mxu1 %v4291_v32  ;;  %v1287_v36 = vshll.u32 %v1234_v44, 16 }
  0xf7   : > { %1910 = vmatmul.bf16.gmra.mxu2 %v5089_v41  ;;  %2239 = vmatmul.bf16.gmra.mxu0 %v4660_v46  ;;  %v5112_v41 = vld [vmem:[%s5752_s3 + $0x220] sm:$0xff] }
  0xf8   : > { %5937 = vst [vmem:[#allocation51_spill] sm:$0xff] %v5112_v41  ;;  %2780 = vmatpush.bf16.msra.mxu0 %v5112_v41 }
  0xf9   : > { %v1794_v54 = vpop.f32.mrf.mxu1 }
  0xfa   : > { %v1871_v56 = vpop.f32.mrf.mxu2  ;;  %v1795_v48 = vadd.f32 %v1794_v54, %v1715_v11  ;;  %v1199_v11 = vor.u32 %v1198_v6, %v5938_v49  ;;  %v5940_v49 = vld [vmem:[#allocation6_spill] sm:$0xff] }
  0xfb   : > { %v5101_v45 = vpop.f32.mrf.mxu3  ;;  %v5103_v52 = vadd.f32 %v1871_v56, %v1793_v10  ;;  %v1289_v10 = vrot.slane %v1287_v36, 4  ;;  %v3911_v36 = vld [vmem:[%s483_s13] sm:$0xff]   ;;  %s528_s13 = scalar_lea.vmem %s5756_s7, %s6024_s27 }
  0xfc   : > { %v5105_v3 = vpop.f32.mrf.mxu0 }
  0xfd   : > { %v5131_v6 = vsel %vm4604_vm5, %v1199_v11, %v1289_v10  ;;  %v5941_v10 = vld [vmem:[#allocation8_spill] sm:$0xff] }
  0xfe   : > { %5939 = vst [vmem:[#allocation52_spill] sm:$0xff] %v5131_v6  ;;  %v5942_v13 = vshll.u32 %v5941_v10, 16 }
 0x100   : > { %2160 = vmatmul.bf16.gmra.mxu3 %v4718_v60 }
 0x101   : > { %v1797_v54 = vpop.f32.mrf.mxu1 }
 0x102   : > { %v1873_v56 = vpop.f32.mrf.mxu2  ;;  %v1798_v46 = vadd.f32 %v1797_v54, %v1718_v40  ;;  %v3912_v40 = vunpack.c.l.bf16 %v3911_v36  ;;  %v1235_v54 = vpack.c.b16 %v5940_v49, %v5940_v49  ;;  %v5150_v49 = vld [vmem:[%s5752_s3 + $0x80] sm:$0xff] }
 0x103   : > { %v1959_v21 = vpop.f32.mrf.mxu3  ;;  %v5119_v28 = vadd.f32 %v1873_v56, %v1795_v48  ;;  %v3913_v48 = vunpack.c.h.bf16 %v3911_v36  ;;  %2297 = vmatpush.bf16.msra.mxu1 %v5150_v49 }
 0x104   : > { %v5124_v44 = vadd.f32 %v1959_v21, %v1940_v20  ;;  %v5126_v41 = vpop.f32.mrf.mxu0  ;;  %1836 = vmatmul.bf16.gmra.mxu1 %v5935_v61  ;;  %v1357_v20 = vmul.f32 %v3912_v40, %v4212_v14  ;;  %v1291_v36 = vshll.u32 %v1235_v54, 16 }
 0x105   : > { %v1358_v56 = vmul.f32 %v3913_v48, %v4212_v14 }
 0x106   : > { %v1359_v40 = vpack.c.bf16 %v1357_v20, %v1357_v20 }
 0x107   : > { %1915 = vmatmul.bf16.gmra.mxu2 %v5131_v6  ;;  %2244 = vmatmul.bf16.gmra.mxu0 %v4738_v2  ;;  %v1200_v6 = vrot.slane %v5942_v13, 1  ;;  %v1360_v48 = vpack.c.bf16 %v1358_v56, %v1358_v56 }
 0x109   : > { %v1799_v21 = vpop.f32.mrf.mxu1  ;;  %v1362_v13 = vunpack.c.l.bf16 %v1360_v48 }
 0x10a   : > { %v1876_v60 = vpop.f32.mrf.mxu2  ;;  %v1800_v24 = vadd.f32 %v1799_v21, %v1720_v38  ;;  %v1293_v38 = vrot.slane %v1291_v36, 4 }
 0x10b   : > { %v1961_v47 = vpop.f32.mrf.mxu3  ;;  %v5139_v11 = vadd.f32 %v1876_v60, %v1798_v46  ;;  %v5943_v46 = vshrl.u32 %v5941_v10, 16 }
 0x10c   : > { %v5143_v35 = vadd.f32 %v1961_v47, %v1942_v43  ;;  %v5145_v2 = vpop.f32.mrf.mxu0  ;;  %v5159_v47 = vld [vmem:[%s5752_s3 + $0x1d8] sm:$0xff]  ;;  %v1361_v43 = vunpack.c.l.bf16 %v1359_v40 }
 0x10d   : > { %v1201_v60 = vor.u32 %v1200_v6, %v5943_v46  ;;  %5944 = vst [vmem:[#allocation6_spill] sm:$0xff] %v5159_v47  ;;  %2702 = vmatpush.bf16.msrb.mxu3 %v5159_v47  ;;  %v5175_v40 = vld [vmem:[%s5752_s3 + $0x218] sm:$0xff] }
 0x10e   : > { %5946 = vst [vmem:[#allocation54_spill] sm:$0xff] %v5175_v40  ;;  %2781 = vmatpush.bf16.msra.mxu0 %v5175_v40 }
 0x10f   : > { %v5170_v36 = vsel %vm4604_vm5, %v1201_v60, %v1293_v38 }
 0x110   : > { %2165 = vmatmul.bf16.gmra.mxu3 %v4777_v29  ;;  %5945 = vst [vmem:[#allocation53_spill] sm:$0xff] %v5170_v36 }
 0x111   : > { %v1802_v54 = vpop.f32.mrf.mxu1 }
 0x112   : > { %v1878_v21 = vpop.f32.mrf.mxu2  ;;  %v1803_v14 = vadd.f32 %v1802_v54, %v1723_v27  ;;  %v1363_v27 = vadd.f32 %v1361_v43, %v4215_v17  ;;  %v5949_v43 = vld [vmem:[#allocation17_spill] sm:$0xff] }
 0x113   : > { %v1964_v20 = vpop.f32.mrf.mxu3  ;;  %v5162_v56 = vadd.f32 %v1878_v21, %v1800_v24  ;;  %v1364_v24 = vadd.f32 %v1362_v13, %v4215_v17  ;;  %v5950_v13 = vshll.u32 %v5949_v43, 16 }
 0x114   : > { %v5165_v29 = vadd.f32 %v1964_v20, %v5082_v59  ;;  %v1733_v6 = vpop.f32.mrf.mxu0  ;;  %1841 = vmatmul.bf16.gmra.mxu1 %v5941_v10  ;;  %v5947_v59 = vld [vmem:[#allocation15_spill] sm:$0xff]  ;;  %v1369_v46 = vmax.f32 %v1363_v27, 0.0  ;;  %v5951_v27 = vshrl.u32 %v5949_v43, 16 }
 0x115   : > { %v1236_v48 = vpack.c.b16 %v5947_v59, %v5947_v59  ;;  %v1370_v60 = vmax.f32 %v1364_v24, 0.0  ;;  %v1202_v17 = vrot.slane %v5950_v13, 1 }
 0x117   : > { %1920 = vmatmul.bf16.gmra.mxu2 %v5170_v36  ;;  %2249 = vmatmul.bf16.gmra.mxu0 %v4785_v55  ;;  %v1295_v10 = vshll.u32 %v1236_v48, 16  ;;  %v1371_v55 = vpack.c.bf16 %v1369_v46, %v1369_v46  ;;  %v1372_v23 = vpack.c.bf16 %v1370_v60, %v1370_v60  ;;  %v1203_v24 = vor.u32 %v1202_v17, %v5951_v27 }
 0x119   : > { %v1804_v38 = vpop.f32.mrf.mxu1  ;;  %v1297_v59 = vrot.slane %v1295_v10, 4  ;;  %v1374_v33 = vunpack.c.l.b16 %v1371_v55 }
 0x11a   : > { %v1881_v54 = vpop.f32.mrf.mxu2  ;;  %v1805_v21 = vadd.f32 %v1804_v38, %v5105_v3  ;;  %v5193_v3 = vunpack.c.l.b16 %v1372_v23  ;;  %v5212_v23 = vld [vmem:[%s5752_s3 + $0x1b8] sm:$0xff] }
 0x11b   : > { %v1966_v20 = vpop.f32.mrf.mxu3  ;;  %v5185_v47 = vadd.f32 %v1881_v54, %v1803_v14  ;;  %v5204_v17 = vsel %vm4604_vm5, %v1203_v24, %v1297_v59  ;;  %2856 = vmatpush.bf16.msrb.mxu1 %v5212_v23  ;;  %v1375_v24 = vpack.c.b16 %v1374_v33, %v1374_v33 }
 0x11c   : > { %v1967_v40 = vadd.f32 %v1966_v20, %v5101_v45  ;;  %v1735_v36 = vpop.f32.mrf.mxu0  ;;  %5952 = vst [vmem:[#allocation55_spill] sm:$0xff] %v5204_v17  ;;  %v5207_v55 = vpack.c.b16 %v5193_v3, %v1374_v33 }
 0x11d   : > { %5948 = vst [vmem:[#allocation15_spill] sm:$0xff] %v5185_v47 }
 0x120   : > { %2170 = vmatmul.bf16.gmra.mxu3 %v4843_v58 }
 0x121   : > { %v1807_v14 = vpop.f32.mrf.mxu1 }
 0x122   : > { %v1883_v38 = vpop.f32.mrf.mxu2  ;;  %v1808_v54 = vadd.f32 %v1807_v14, %v5126_v41  ;;  %v5848_v41 = vshrl.u32 %v5207_v55, 16  ;;  %v5850_v14 = vshll.u32 %v5207_v55, 16 }
 0x123   : > { %v1978_v13 = vpop.f32.mrf.mxu3  ;;  %v5196_v47 = vadd.f32 %v1883_v38, %v1805_v21  ;;  %v5230_v38 = vld [vmem:[%s5752_s3 + $0x1d0] sm:$0xff] }
 0x124   : > { %v5199_v45 = vadd.f32 %v1978_v13, %v5124_v44  ;;  %v1738_v48 = vpop.f32.mrf.mxu0  ;;  %1846 = vmatmul.bf16.gmra.mxu1 %v5949_v43  ;;  %v1386_v59 = vrot.slane %v5848_v41, 7  ;;  %2703 = vmatpush.bf16.msrb.mxu3 %v5230_v38 }
 0x127   : > { %1925 = vmatmul.bf16.gmra.mxu2 %v5204_v17  ;;  %2254 = vmatmul.bf16.gmra.mxu0 %v4847_v57 }
 0x129   : > { %v1809_v44 = vpop.f32.mrf.mxu1 }
 0x12a   : > { %v1886_v10 = vpop.f32.mrf.mxu2  ;;  %v1810_v46 = vadd.f32 %v1809_v44, %v5145_v2  ;;  %v1377_v2 = vshrl.u32 %v1375_v24, 16  ;;  %v5247_v24 = vld [vmem:[%s5752_s3 + $0x210] sm:$0xff] }
 0x12b   : > { %v1980_v60 = vpop.f32.mrf.mxu3  ;;  %v5219_v21 = vadd.f32 %v1886_v10, %v1808_v54  ;;  %5953 = vst [vmem:[#allocation56_spill] sm:$0xff] %v5247_v24  ;;  %2782 = vmatpush.bf16.msra.mxu0 %v5247_v24 }
 0x12c   : > { %v5222_v20 = vadd.f32 %v1980_v60, %v5143_v35  ;;  %v1740_v27 = vpop.f32.mrf.mxu0  ;;  %v1389_v35 = vor.u32 %v5850_v14, %v1386_v59 }
 0x12e   : > { %v1391_v57 = vsel %vm4313_vm2, %v1377_v2, %v1389_v35 }
 0x130   : > { %2175 = vmatmul.bf16.gmra.mxu3 %v4902_v62 }
 0x131   : > { %v1812_v54 = vpop.f32.mrf.mxu1 }
 0x132   : > { %v1888_v33 = vpop.f32.mrf.mxu2  ;;  %v1813_v13 = vadd.f32 %v1812_v54, %v1733_v6 }
 0x133   : > { %v1983_v44 = vpop.f32.mrf.mxu3  ;;  %v5236_v10 = vadd.f32 %v1888_v33, %v1810_v46  ;;  %v5954_v33 = vld [vmem:[#allocation25_spill] sm:$0xff] }
 0x134   : > { %v5239_v60 = vadd.f32 %v1983_v44, %v5165_v29  ;;  %v2220_v41 = vpop.f32.mrf.mxu0  ;;  %2298 = vmatmul.bf16.vlgmr.msra.gmra.mxu1 %v4812_v0  ;;  %v4078_v29 = vld [vmem:[%s5752_s3 + $0xb8] sm:$0xff] }
 0x137   : > { %2259 = vmatmul.bf16.gmra.mxu0 %v4910_v37  ;;  %2377 = vmatmul.bf16.vlgmr.msra.gmra.mxu2 %v1391_v57 }
 0x138   : > { %2407 = vmatpush.bf16.msra.mxu2 %v4078_v29 }
 0x139   : > { %v1814_v6 = vpop.f32.mrf.mxu1 }
 0x13a   : > { %v1891_v0 = vpop.f32.mrf.mxu2  ;;  %v1815_v46 = vadd.f32 %v1814_v6, %v1735_v36 }
 0x13b   : > { %v1985_v59 = vpop.f32.mrf.mxu3  ;;  %v5254_v2 = vadd.f32 %v1891_v0, %v1813_v13  ;;  %v5955_v13 = vld [vmem:[#allocation22_spill] sm:$0xff]  ;;  %v5271_v0 = vld [vmem:[%s5752_s3 + $0x1c8] sm:$0xff] }
 0x13c   : > { %v5256_v35 = vadd.f32 %v1985_v59, %v1967_v40  ;;  %v2222_v54 = vpop.f32.mrf.mxu0  ;;  %2408 = vmatpush.bf16.msra.mxu2 %v5954_v33  ;;  %v3828_v40 = vld [vmem:[%s5752_s3 + $0x1b0] sm:$0xff]  ;;  %2704 = vmatpush.bf16.msrb.mxu3 %v5271_v0 }
 0x13d   : > { %2857 = vmatpush.bf16.msrb.mxu1 %v3828_v40 }
 0x140   : > { %2180 = vmatmul.bf16.gmra.mxu3 %v4942_v7  ;;  %2409 = vmatpush.bf16.msra.mxu2 %v4824_v53 }
 0x141   : > { %v1817_v57 = vpop.f32.mrf.mxu1 }
 0x142   : > { %v1893_v44 = vpop.f32.mrf.mxu2  ;;  %v1818_v14 = vadd.f32 %v1817_v57, %v1738_v48 }
 0x143   : > { %v2141_v24 = vpop.f32.mrf.mxu3  ;;  %v5261_v29 = vadd.f32 %v1893_v44, %v1815_v46 }
 0x144   : > { %v2142_v36 = vadd.f32 %v2141_v24, %v5048_v9  ;;  %v2225_v6 = vpop.f32.mrf.mxu0  ;;  %2303 = vmatmul.bf16.gmra.mxu1 %v5955_v13  ;;  %2410 = vmatpush.bf16.msra.mxu2 %v4893_v15  ;;  %v5956_v9 = vld [vmem:[#allocation19_spill] sm:$0xff] }
 0x146   : > { %v5275_v53 = vadd.f32 %v2220_v41, %v2142_v36  ;;  %v5957_v41 = vld [vmem:[#allocation9_spill] sm:$0xff]  ;;  %v5290_v36 = vld [vmem:[%s5752_s3 + $0x208] sm:$0xff] }
 0x147   : > { %2264 = vmatmul.bf16.gmra.mxu0 %v4288_v30  ;;  %2382 = vmatmul.bf16.gmra.mxu2 %v5956_v9  ;;  %5958 = vst [vmem:[#allocation25_spill] sm:$0xff] %v5290_v36  ;;  %v5962_v9 = vshll.u32 %v5207_v55, 16 }
 0x148   : > { %2411 = vmatpush.bf16.msra.mxu2 %v4965_v19  ;;  %2783 = vmatpush.bf16.msra.mxu0 %v5290_v36 }
 0x149   : > { %v1819_v48 = vpop.f32.mrf.mxu1 }
 0x14a   : > { %v1896_v24 = vpop.f32.mrf.mxu2  ;;  %v1820_v46 = vadd.f32 %v1819_v48, %v1740_v27  ;;  %v5959_v48 = vld [vmem:[#allocation27_spill] sm:$0xff] }
 0x14b   : > { %v2143_v59 = vpop.f32.mrf.mxu3  ;;  %v5280_v33 = vadd.f32 %v1896_v24, %v1818_v14 }
 0x14c   : > { %v2144_v57 = vadd.f32 %v2143_v59, %v5058_v51  ;;  %v2227_v15 = vpop.f32.mrf.mxu0  ;;  %2412 = vmatpush.bf16.msra.mxu2 %v5028_v42 }
 0x14e   : > { %v5284_v44 = vadd.f32 %v2222_v54, %v2144_v57 }
 0x150   : > { %2185 = vmatmul.bf16.gmra.mxu3 %v5957_v41  ;;  %2413 = vmatpush.bf16.msra.mxu2 %v5079_v22 }
 0x151   : > { %v1822_v19 = vpop.f32.mrf.mxu1 }
 0x152   : > { %v1898_v27 = vpop.f32.mrf.mxu2  ;;  %v1823_v22 = vadd.f32 %v1822_v19, %v4957_v12 }
 0x153   : > { %v2146_v14 = vpop.f32.mrf.mxu3  ;;  %v5294_v51 = vadd.f32 %v1898_v27, %v1820_v46 }
 0x154   : > { %v2147_v42 = vadd.f32 %v2146_v14, %v5069_v5  ;;  %v2230_v54 = vpop.f32.mrf.mxu0  ;;  %2308 = vmatmul.bf16.gmra.mxu1 %v5959_v48  ;;  %2414 = vmatpush.bf16.msra.mxu2 %v5150_v49 }
 0x156   : > { %v5299_v24 = vadd.f32 %v2225_v6, %v2147_v42  ;;  %v5960_v6 = vld [vmem:[#allocation16_spill] sm:$0xff]  ;;  %v3827_v42 = vld [vmem:[%s5752_s3 + $0x1a8] sm:$0xff] }
 0x157   : > { %2269 = vmatmul.bf16.gmra.mxu0 %v4472_v31  ;;  %2396 = vmatmul.bf16.vlgmr.msrb.gmra.mxu2 %v5207_v55 }
 0x158   : > { %2619 = vmatpush.bf16.msrb.mxu2 %v5212_v23  ;;  %2858 = vmatpush.bf16.msrb.mxu1 %v3827_v42 }
 0x159   : > { %v1824_v59 = vpop.f32.mrf.mxu1 }
 0x15a   : > { %v1901_v46 = vpop.f32.mrf.mxu2  ;;  %v1825_v23 = vadd.f32 %v1824_v59, %v4979_v39  ;;  %v1395_v59 = vpack.c.b16 %v5193_v3, %v5193_v3 }
 0x15b   : > { %v2148_v57 = vpop.f32.mrf.mxu3  ;;  %v5305_v27 = vadd.f32 %v1901_v46, %v1823_v22 }
 0x15c   : > { %v2149_v5 = vadd.f32 %v2148_v57, %v5084_v4  ;;  %v2232_v14 = vpop.f32.mrf.mxu0  ;;  %2620 = vmatpush.bf16.msrb.mxu2 %v3828_v40  ;;  %v5322_v57 = vld [vmem:[%s5752_s3 + $0x1c0] sm:$0xff]  ;;  %v1397_v13 = vshll.u32 %v1395_v59, 16 }
 0x15d   : > { %2705 = vmatpush.bf16.msrb.mxu3 %v5322_v57 }
 0x15e   : > { %v5308_v49 = vadd.f32 %v2227_v15, %v2149_v5  ;;  %v5961_v15 = vld [vmem:[#allocation32_spill] sm:$0xff] }
 0x160   : > { %2190 = vmatmul.bf16.gmra.mxu3 %v5960_v6  ;;  %2621 = vmatpush.bf16.msrb.mxu2 %v3827_v42 }
 0x161   : > { %v1827_v12 = vpop.f32.mrf.mxu1 }
 0x162   : > { %v1903_v19 = vpop.f32.mrf.mxu2 }
 0x163   : > { %v2151_v22 = vpop.f32.mrf.mxu3  ;;  %v5315_v46 = vadd.f32 %v1903_v19, %v1825_v23 }
 0x164   : > { %v2152_v4 = vadd.f32 %v2151_v22, %v5103_v52  ;;  %v2235_v40 = vpop.f32.mrf.mxu0  ;;  %2313 = vmatmul.bf16.gmra.mxu1 %v5961_v15  ;;  %v1828_v52 = vadd.f32 %v1827_v12, %v4996_v63  ;;  %v3826_v22 = vld [vmem:[%s5752_s3 + $0x1a0] sm:$0xff] }
 0x165   : > { %v5343_v63 = vld [vmem:[%s5752_s3 + $0x200] sm:$0xff]  ;;  %2622 = vmatpush.bf16.msrb.mxu2 %v3826_v22  ;;  %2859 = vmatpush.bf16.msrb.mxu1 %v3826_v22 }
 0x166   : > { %v5325_v39 = vadd.f32 %v2230_v54, %v2152_v4  ;;  %5963 = vst [vmem:[#allocation9_spill] sm:$0xff] %v5343_v63  ;;  %2784 = vmatpush.bf16.msra.mxu0 %v5343_v63  ;;  %v5964_v12 = vld [vmem:[#allocation10_spill] sm:$0xff] }
 0x167   : > { %2274 = vmatmul.bf16.gmra.mxu0 %v4291_v32  ;;  %2401 = vmatmul.bf16.gmra.mxu2 %v5949_v43  ;;  %v1392_v43 = vrot.slane %v5962_v9, 1  ;;  %v5965_v9 = vshrl.u32 %v5207_v55, 16 }
 0x169   : > { %v1829_v5 = vpop.f32.mrf.mxu1  ;;  %v1393_v59 = vor.u32 %v1392_v43, %v5965_v9  ;;  %v3822_v9 = vld [vmem:[%s5752_s3 + $0x180] sm:$0xff] }
 0x16a   : > { %v1906_v42 = vpop.f32.mrf.mxu2 }
 0x16b   : > { %v2153_v23 = vpop.f32.mrf.mxu3  ;;  %v5332_v19 = vadd.f32 %v1906_v42, %v1828_v52  ;;  %v1399_v52 = vrot.slane %v1397_v13, 4  ;;  %v1830_v42 = vadd.f32 %v1829_v5, %v5012_v26  ;;  %v3823_v26 = vld [vmem:[%s5752_s3 + $0x188] sm:$0xff] }
 0x16c   : > { %v2154_v54 = vadd.f32 %v2153_v23, %v5119_v28  ;;  %v2237_v4 = vpop.f32.mrf.mxu0  ;;  %v3825_v28 = vld [vmem:[%s5752_s3 + $0x198] sm:$0xff] }
 0x16d   : > { %2623 = vmatpush.bf16.msrb.mxu2 %v3825_v28  ;;  %2860 = vmatpush.bf16.msrb.mxu1 %v3825_v28  ;;  %v1401_v43 = vsel %vm4604_vm5, %v1393_v59, %v1399_v52 }
 0x16e   : > { %v5346_v3 = vadd.f32 %v2232_v14, %v2154_v54  ;;  %v3824_v14 = vld [vmem:[%s5752_s3 + $0x190] sm:$0xff] }
 0x170   : > { %2195 = vmatmul.bf16.gmra.mxu3 %v5964_v12 }
 0x171   : > { %v1832_v23 = vpop.f32.mrf.mxu1  ;;  %2624 = vmatpush.bf16.msrb.mxu2 %v3824_v14  ;;  %2861 = vmatpush.bf16.msrb.mxu1 %v3824_v14 }
 0x172   : > { %v1908_v22 = vpop.f32.mrf.mxu2  ;;  %v1833_v13 = vadd.f32 %v1832_v23, %v4975_v16  ;;  %v5966_v16 = vld [vmem:[#allocation18_spill] sm:$0xff] }
 0x173   : > { %v2156_v32 = vpop.f32.mrf.mxu3  ;;  %v5355_v63 = vadd.f32 %v1908_v22, %v1830_v42 }
 0x174   : > { %v2157_v54 = vadd.f32 %v2156_v32, %v5139_v11  ;;  %v2240_v36 = vpop.f32.mrf.mxu0  ;;  %2318 = vmatmul.bf16.gmra.mxu1 %v4839_v1 }
 0x175   : > { %2625 = vmatpush.bf16.msrb.mxu2 %v3823_v26  ;;  %2862 = vmatpush.bf16.msrb.mxu1 %v3823_v26 }
 0x176   : > { %v5367_v55 = vadd.f32 %v2235_v40, %v2157_v54 }
 0x177   : > { %2279 = vmatmul.bf16.gmra.mxu0 %v5935_v61  ;;  %2415 = vmatmul.bf16.vlgmr.msra.gmra.mxu2 %v1401_v43  ;;  %v5967_v43 = vld [vmem:[#allocation15_spill] sm:$0xff]  ;;  %v5986_v61 = vld [vmem:[#allocation40_spill] sm:$0xff] }
 0x179   : > { %v1834_v32 = vpop.f32.mrf.mxu1  ;;  %2626 = vmatpush.bf16.msrb.mxu2 %v3822_v9  ;;  %2863 = vmatpush.bf16.msrb.mxu1 %v3822_v9  ;;  %v5972_v9 = vld [vmem:[#allocation50_spill] sm:$0xff] }
 0x17a   : > { %v1911_v11 = vpop.f32.mrf.mxu2  ;;  %v1835_v42 = vadd.f32 %v1834_v32, %v4994_v34  ;;  %v5971_v34 = vld [vmem:[#allocation42_spill] sm:$0xff] }
 0x17b   : > { %v2158_v5 = vpop.f32.mrf.mxu3  ;;  %v5371_v28 = vadd.f32 %v1911_v11, %v1833_v13  ;;  %v5968_v13 = vld [vmem:[#allocation36_spill] sm:$0xff]  ;;  %v5969_v11 = vld [vmem:[#allocation45_spill] sm:$0xff] }
 0x17c   : > { %v2159_v59 = vadd.f32 %v2158_v5, %v5162_v56  ;;  %v2242_v40 = vpop.f32.mrf.mxu0 }
 0x17d   : > { %2875 = vmatpush.bf16.msra.mxu1 %v4933_v18  ;;  %v5970_v18 = vld [vmem:[#allocation8_spill] sm:$0xff] }
 0x17e   : > { %v5377_v52 = vadd.f32 %v2237_v4, %v2159_v59 }
 0x180   : > { %2200 = vmatmul.bf16.gmra.mxu3 %v5966_v16 }
 0x181   : > { %v1837_v23 = vpop.f32.mrf.mxu1  ;;  %2876 = vmatpush.bf16.msra.mxu1 %v4984_v8 }
 0x182   : > { %v1913_v22 = vpop.f32.mrf.mxu2  ;;  %v1838_v32 = vadd.f32 %v1837_v23, %v5971_v34 }
 0x183   : > { %v2161_v14 = vpop.f32.mrf.mxu3  ;;  %v5383_v54 = vadd.f32 %v1913_v22, %v1835_v42 }
 0x184   : > { %v2162_v56 = vadd.f32 %v2161_v14, %v5967_v43  ;;  %v2245_v26 = vpop.f32.mrf.mxu0  ;;  %2323 = vmatmul.bf16.gmra.mxu1 %v5968_v13  ;;  %v5973_v43 = vld [vmem:[#allocation6_spill] sm:$0xff] }
 0x185   : > { %2877 = vmatpush.bf16.msra.mxu1 %v5969_v11  ;;  %v5975_v11 = vld [vmem:[#allocation44_spill] sm:$0xff] }
 0x186   : > { %v5387_v4 = vadd.f32 %v2240_v36, %v2162_v56  ;;  %v5974_v56 = vld [vmem:[#allocation11_spill] sm:$0xff] }
 0x187   : > { %2284 = vmatmul.bf16.gmra.mxu0 %v5970_v18  ;;  %2420 = vmatmul.bf16.gmra.mxu2 %v5204_v17 }
 0x189   : > { %v1839_v5 = vpop.f32.mrf.mxu1  ;;  %2878 = vmatpush.bf16.msra.mxu1 %v5972_v9 }
 0x18a   : > { %v1916_v8 = vpop.f32.mrf.mxu2  ;;  %v1840_v25 = vadd.f32 %v1839_v5, %v5975_v11  ;;  %v5978_v5 = vld [vmem:[#allocation39_spill] sm:$0xff] }
 0x18b   : > { %v2163_v59 = vpop.f32.mrf.mxu3  ;;  %v5394_v42 = vadd.f32 %v1916_v8, %v1838_v32 }
 0x18c   : > { %v2164_v22 = vadd.f32 %v2163_v59, %v5196_v47  ;;  %v2247_v14 = vpop.f32.mrf.mxu0  ;;  %v5976_v47 = vld [vmem:[#allocation37_spill] sm:$0xff]  ;;  %v5977_v59 = vld [vmem:[#allocation14_spill] sm:$0xff] }
 0x18d   : > { %2879 = vmatpush.bf16.msra.mxu1 %v5973_v43 }
 0x18e   : > { %v5397_v36 = vadd.f32 %v2242_v40, %v2164_v22 }
 0x190   : > { %2205 = vmatmul.bf16.gmra.mxu3 %v5974_v56  ;;  %v5981_v56 = vld [vmem:[#allocation38_spill] sm:$0xff] }
 0x191   : > { %v1842_v17 = vpop.f32.mrf.mxu1  ;;  %2880 = vmatpush.bf16.msra.mxu1 %v5230_v38 }
 0x192   : > { %v1918_v23 = vpop.f32.mrf.mxu2  ;;  %v1843_v22 = vadd.f32 %v1842_v17, %v5978_v5 }
 0x193   : > { %v2166_v34 = vpop.f32.mrf.mxu3  ;;  %v5403_v9 = vadd.f32 %v1918_v23, %v1840_v25 }
 0x194   : > { %v2167_v32 = vadd.f32 %v2166_v34, %v5219_v21  ;;  %v2250_v8 = vpop.f32.mrf.mxu0  ;;  %2328 = vmatmul.bf16.gmra.mxu1 %v5976_v47  ;;  %v5979_v34 = vld [vmem:[#allocation12_spill] sm:$0xff] }
 0x195   : > { %2881 = vmatpush.bf16.msra.mxu1 %v5271_v0  ;;  %v5980_v0 = vld [vmem:[#allocation41_spill] sm:$0xff] }
 0x196   : > { %v5407_v40 = vadd.f32 %v2245_v26, %v2167_v32 }
 0x197   : > { %2627 = vmatmul.bf16.vlgmr.msrb.gmra.mxu2 %v5977_v59  ;;  %2785 = vmatmul.bf16.vlgmr.msra.gmra.mxu0 %v5959_v48 }
 0x199   : > { %v1844_v43 = vpop.f32.mrf.mxu1  ;;  %2882 = vmatpush.bf16.msra.mxu1 %v5322_v57 }
 0x19a   : > { %v1921_v38 = vpop.f32.mrf.mxu2  ;;  %v1845_v32 = vadd.f32 %v1844_v43, %v5980_v0 }
 0x19b   : > { %v2168_v25 = vpop.f32.mrf.mxu3  ;;  %v5414_v11 = vadd.f32 %v1921_v38, %v1843_v22 }
 0x19c   : > { %v2169_v21 = vadd.f32 %v2168_v25, %v5236_v10  ;;  %v2252_v23 = vpop.f32.mrf.mxu0  ;;  %v5982_v10 = vld [vmem:[#allocation23_spill] sm:$0xff] }
 0x19e   : > { %v5417_v26 = vadd.f32 %v2247_v14, %v2169_v21  ;;  %v5983_v14 = vld [vmem:[#allocation43_spill] sm:$0xff] }
 0x1a0   : > { %2706 = vmatmul.bf16.vlgmr.msrb.gmra.mxu3 %v5979_v34 }
 0x1a1   : > { %v1847_v59 = vpop.f32.mrf.mxu1 }
 0x1a2   : > { %v1923_v48 = vpop.f32.mrf.mxu2  ;;  %v1848_v38 = vadd.f32 %v1847_v59, %v5983_v14 }
 0x1a3   : > { %v2171_v18 = vpop.f32.mrf.mxu3  ;;  %v5421_v17 = vadd.f32 %v1923_v48, %v1845_v32 }
 0x1a4   : > { %v2172_v5 = vadd.f32 %v2171_v18, %v5254_v2  ;;  %v2255_v57 = vpop.f32.mrf.mxu0  ;;  %2333 = vmatmul.bf16.gmra.mxu1 %v5981_v56  ;;  %v5984_v18 = vld [vmem:[#allocation21_spill] sm:$0xff] }
 0x1a6   : > { %v5425_v22 = vadd.f32 %v2250_v8, %v2172_v5  ;;  %v5985_v8 = vld [vmem:[#allocation47_spill] sm:$0xff] }
 0x1a7   : > { %2632 = vmatmul.bf16.gmra.mxu2 %v5982_v10  ;;  %2790 = vmatmul.bf16.gmra.mxu0 %v5961_v15 }
 0x1a9   : > { %v1849_v25 = vpop.f32.mrf.mxu1 }
 0x1aa   : > { %v1926_v43 = vpop.f32.mrf.mxu2  ;;  %v1850_v48 = vadd.f32 %v1849_v25, %v5985_v8 }
 0x1ab   : > { %v2173_v21 = vpop.f32.mrf.mxu3  ;;  %v5430_v34 = vadd.f32 %v1926_v43, %v1848_v38 }
 0x1ac   : > { %v2174_v0 = vadd.f32 %v2173_v21, %v5261_v29  ;;  %v2257_v32 = vpop.f32.mrf.mxu0 }
 0x1ae   : > { %v5433_v2 = vadd.f32 %v2252_v23, %v2174_v0  ;;  %v5987_v23 = vld [vmem:[#allocation28_spill] sm:$0xff] }
 0x1b0   : > { %2711 = vmatmul.bf16.gmra.mxu3 %v5984_v18 }
 0x1b1   : > { %v2299_v5 = vpop.f32.mrf.mxu1 }
 0x1b2   : > { %v1928_v10 = vpop.f32.mrf.mxu2  ;;  %v5438_v15 = vadd.f32 %v2299_v5, %v5275_v53  ;;  %v5988_v5 = vld [vmem:[#allocation24_spill] sm:$0xff] }
 0x1b3   : > { %v2176_v59 = vpop.f32.mrf.mxu3  ;;  %v5440_v14 = vadd.f32 %v1928_v10, %v1850_v48 }
 0x1b4   : > { %v2177_v38 = vadd.f32 %v2176_v59, %v5280_v33  ;;  %v2260_v43 = vpop.f32.mrf.mxu0  ;;  %2338 = vmatmul.bf16.gmra.mxu1 %v5986_v61 }
 0x1b6   : > { %v5444_v29 = vadd.f32 %v2255_v57, %v2177_v38 }
 0x1b7   : > { %2637 = vmatmul.bf16.gmra.mxu2 %v5987_v23  ;;  %2795 = vmatmul.bf16.gmra.mxu0 %v4839_v1 }
 0x1b9   : > { %v2301_v25 = vpop.f32.mrf.mxu1 }
 0x1ba   : > { %v2378_v21 = vpop.f32.mrf.mxu2  ;;  %v5449_v0 = vadd.f32 %v2301_v25, %v5284_v44  ;;  %v5989_v25 = vld [vmem:[#allocation46_spill] sm:$0xff] }
 0x1bb   : > { %v2178_v53 = vpop.f32.mrf.mxu3  ;;  %v2379_v18 = vadd.f32 %v2378_v21, %v5199_v45 }
 0x1bc   : > { %v2179_v8 = vadd.f32 %v2178_v53, %v5294_v51  ;;  %v2262_v33 = vpop.f32.mrf.mxu0  ;;  %v5990_v51 = vld [vmem:[#allocation31_spill] sm:$0xff] }
 0x1be   : > { %v5453_v48 = vadd.f32 %v2257_v32, %v2179_v8 }
 0x1c0   : > { %2716 = vmatmul.bf16.gmra.mxu3 %v5988_v5 }
 0x1c1   : > { %v2304_v57 = vpop.f32.mrf.mxu1 }
 0x1c2   : > { %v2380_v10 = vpop.f32.mrf.mxu2  ;;  %v5457_v59 = vadd.f32 %v2304_v57, %v5299_v24  ;;  %v5991_v57 = vld [vmem:[#allocation29_spill] sm:$0xff] }
 0x1c3   : > { %v2181_v1 = vpop.f32.mrf.mxu3  ;;  %v2381_v38 = vadd.f32 %v2380_v10, %v5222_v20 }
 0x1c4   : > { %v2182_v44 = vadd.f32 %v2181_v1, %v5305_v27  ;;  %v2265_v23 = vpop.f32.mrf.mxu0  ;;  %2343 = vmatmul.bf16.gmra.mxu1 %v5989_v25 }
 0x1c6   : > { %v5462_v45 = vadd.f32 %v2260_v43, %v2182_v44 }
 0x1c7   : > { %2642 = vmatmul.bf16.gmra.mxu2 %v5990_v51  ;;  %2800 = vmatmul.bf16.gmra.mxu0 %v5968_v13 }
 0x1c9   : > { %v2306_v32 = vpop.f32.mrf.mxu1 }
 0x1ca   : > { %v2383_v21 = vpop.f32.mrf.mxu2  ;;  %v5467_v53 = vadd.f32 %v2306_v32, %v5308_v49  ;;  %v5992_v32 = vld [vmem:[#allocation48_spill] sm:$0xff] }
 0x1cb   : > { %v2183_v24 = vpop.f32.mrf.mxu3  ;;  %v2384_v8 = vadd.f32 %v2383_v21, %v5239_v60 }
 0x1cc   : > { %v2184_v20 = vadd.f32 %v2183_v24, %v5315_v46  ;;  %v2267_v27 = vpop.f32.mrf.mxu0 }
 0x1ce   : > { %v5471_v5 = vadd.f32 %v2262_v33, %v2184_v20 }
 0x1d0   : > { %2721 = vmatmul.bf16.gmra.mxu3 %v5991_v57  ;;  %v5993_v57 = vld [vmem:[#allocation33_spill] sm:$0xff] }
 0x1d1   : > { %v2309_v43 = vpop.f32.mrf.mxu1 }
 0x1d2   : > { %v2385_v10 = vpop.f32.mrf.mxu2  ;;  %v5475_v1 = vadd.f32 %v2309_v43, %v5325_v39 }
 0x1d3   : > { %v2186_v13 = vpop.f32.mrf.mxu3  ;;  %v2386_v44 = vadd.f32 %v2385_v10, %v5256_v35 }
 0x1d4   : > { %v2187_v49 = vadd.f32 %v2186_v13, %v5332_v19  ;;  %v2270_v51 = vpop.f32.mrf.mxu0  ;;  %2348 = vmatmul.bf16.gmra.mxu1 %v5992_v32 }
 0x1d6   : > { %v5480_v60 = vadd.f32 %v2265_v23, %v2187_v49  ;;  %v5994_v49 = vld [vmem:[#allocation49_spill] sm:$0xff] }
 0x1d7   : > { %2647 = vmatmul.bf16.gmra.mxu2 %v4843_v58  ;;  %2805 = vmatmul.bf16.gmra.mxu0 %v5976_v47 }
 0x1d9   : > { %v2311_v46 = vpop.f32.mrf.mxu1 }
 0x1da   : > { %v2397_v33 = vpop.f32.mrf.mxu2  ;;  %v5485_v21 = vadd.f32 %v2311_v46, %v5346_v3 }
 0x1db   : > { %v2188_v39 = vpop.f32.mrf.mxu3  ;;  %v2398_v24 = vadd.f32 %v2397_v33, %v2379_v18 }
 0x1dc   : > { %v2189_v35 = vadd.f32 %v2188_v39, %v5355_v63  ;;  %v2272_v20 = vpop.f32.mrf.mxu0 }
 0x1de   : > { %v5488_v19 = vadd.f32 %v2267_v27, %v2189_v35  ;;  %v5995_v35 = vld [vmem:[#allocation34_spill] sm:$0xff] }
 0x1e0   : > { %2726 = vmatmul.bf16.gmra.mxu3 %v5993_v57 }
 0x1e1   : > { %v2314_v23 = vpop.f32.mrf.mxu1 }
 0x1e2   : > { %v2399_v43 = vpop.f32.mrf.mxu2  ;;  %v5492_v58 = vadd.f32 %v2314_v23, %v5367_v55 }
 0x1e3   : > { %v2191_v47 = vpop.f32.mrf.mxu3  ;;  %v2400_v10 = vadd.f32 %v2399_v43, %v2381_v38 }
 0x1e4   : > { %v2192_v3 = vadd.f32 %v2191_v47, %v5371_v28  ;;  %v2275_v13 = vpop.f32.mrf.mxu0  ;;  %2353 = vmatmul.bf16.gmra.mxu1 %v5994_v49 }
 0x1e6   : > { %v5496_v18 = vadd.f32 %v2270_v51, %v2192_v3 }
 0x1e7   : > { %2652 = vmatmul.bf16.gmra.mxu2 %v4902_v62  ;;  %2810 = vmatmul.bf16.gmra.mxu0 %v5981_v56 }
 0x1e9   : > { %v2316_v63 = vpop.f32.mrf.mxu1 }
 0x1ea   : > { %v2402_v27 = vpop.f32.mrf.mxu2  ;;  %v5501_v46 = vadd.f32 %v2316_v63, %v5377_v52 }
 0x1eb   : > { %v2193_v55 = vpop.f32.mrf.mxu3  ;;  %v2403_v33 = vadd.f32 %v2402_v27, %v2384_v8  ;;  %v5996_v8 = vld [vmem:[#allocation52_spill] sm:$0xff] }
 0x1ec   : > { %v2194_v38 = vadd.f32 %v2193_v55, %v5383_v54  ;;  %v2277_v39 = vpop.f32.mrf.mxu0 }
 0x1ee   : > { %v5504_v28 = vadd.f32 %v2272_v20, %v2194_v38  ;;  %v3915_v20 = vld [vmem:[%s504_s20] sm:$0xff]  }
 0x1ef   : > { %v3917_v47 = vunpack.c.h.bf16 %v3915_v20 }
 0x1f0   : > { %2731 = vmatmul.bf16.gmra.mxu3 %v5995_v35 }
 0x1f1   : > { %v2319_v51 = vpop.f32.mrf.mxu1 }
 0x1f2   : > { %v2404_v57 = vpop.f32.mrf.mxu2  ;;  %v5509_v62 = vadd.f32 %v2319_v51, %v5387_v4  ;;  %v3916_v4 = vunpack.c.l.bf16 %v3915_v20 }
 0x1f3   : > { %v2196_v56 = vpop.f32.mrf.mxu3  ;;  %v2405_v23 = vadd.f32 %v2404_v57, %v2386_v44  ;;  %v5997_v44 = vld [vmem:[#allocation2_spill] sm:$0xff] }
 0x1f4   : > { %v2197_v52 = vadd.f32 %v2196_v56, %v5394_v42  ;;  %v2280_v54 = vpop.f32.mrf.mxu0  ;;  %2358 = vmatmul.bf16.gmra.mxu1 %v5996_v8  ;;  %v1407_v63 = vmul.f32 %v3916_v4, %v5997_v44  ;;  %v1408_v27 = vmul.f32 %v3917_v47, %v5997_v44  ;;  %v5998_v4 = vld [vmem:[#allocation3_spill] sm:$0xff] }
 0x1f6   : > { %v5516_v43 = vadd.f32 %v2275_v13, %v2197_v52  ;;  %v1409_v13 = vpack.c.bf16 %v1407_v63, %v1407_v63  ;;  %v1410_v51 = vpack.c.bf16 %v1408_v27, %v1408_v27 }
 0x1f7   : > { %2657 = vmatmul.bf16.gmra.mxu2 %v4942_v7  ;;  %2815 = vmatmul.bf16.gmra.mxu0 %v5986_v61 }
 0x1f8   : > { %v1411_v61 = vunpack.c.l.bf16 %v1409_v13  ;;  %v1412_v56 = vunpack.c.l.bf16 %v1410_v51 }
 0x1f9   : > { %v2321_v3 = vpop.f32.mrf.mxu1 }
 0x1fa   : > { %v2416_v55 = vpop.f32.mrf.mxu2  ;;  %v5523_v42 = vadd.f32 %v2321_v3, %v5397_v36  ;;  %v1413_v47 = vadd.f32 %v1411_v61, %v5998_v4  ;;  %v1414_v36 = vadd.f32 %v1412_v56, %v5998_v4 }
 0x1fb   : > { %v2198_v38 = vpop.f32.mrf.mxu3  ;;  %v5525_v35 = vadd.f32 %v2416_v55, %v2398_v24  ;;  %v5999_v55 = vld [vmem:[#allocation53_spill] sm:$0xff] }
 0x1fc   : > { %v2199_v7 = vadd.f32 %v2198_v38, %v5403_v9  ;;  %v2282_v57 = vpop.f32.mrf.mxu0  ;;  %v1420_v38 = vmax.f32 %v1414_v36, 0.0 }
 0x1fe   : > { %v5528_v52 = vadd.f32 %v2277_v39, %v2199_v7  ;;  %v1419_v39 = vmax.f32 %v1413_v47, 0.0 }
 0x200   : > { %2736 = vmatmul.bf16.gmra.mxu3 %v4910_v37  ;;  %v1421_v51 = vpack.c.bf16 %v1419_v39, %v1419_v39 }
 0x201   : > { %v2324_v20 = vpop.f32.mrf.mxu1 }
 0x202   : > { %v2418_v3 = vpop.f32.mrf.mxu2  ;;  %v5534_v24 = vadd.f32 %v2324_v20, %v5407_v40  ;;  %v1422_v40 = vpack.c.bf16 %v1420_v38, %v1420_v38  ;;  %v1424_v4 = vunpack.c.l.b16 %v1421_v51 }
 0x203   : > { %v2201_v44 = vpop.f32.mrf.mxu3  ;;  %v5536_v63 = vadd.f32 %v2418_v3, %v2400_v10 }
 0x204   : > { %v2202_v9 = vadd.f32 %v2201_v44, %v5414_v11  ;;  %v2285_v27 = vpop.f32.mrf.mxu0  ;;  %2363 = vmatmul.bf16.gmra.mxu1 %v5999_v55 }
 0x206   : > { %v5540_v37 = vadd.f32 %v2280_v54, %v2202_v9  ;;  %v5550_v54 = vunpack.c.l.b16 %v1422_v40  ;;  %v6000_v9 = vld [vmem:[#allocation7_spill] sm:$0xff] }
 0x207   : > { %2662 = vmatmul.bf16.gmra.mxu2 %v5957_v41  ;;  %2820 = vmatmul.bf16.gmra.mxu0 %v5989_v25 }
 0x208   : > { %v5556_v25 = vpack.c.b16 %v5550_v54, %v1424_v4 }
 0x209   : > { %v2326_v13 = vpop.f32.mrf.mxu1 }
 0x20a   : > { %v2421_v7 = vpop.f32.mrf.mxu2  ;;  %v5545_v10 = vadd.f32 %v2326_v13, %v5417_v26  ;;  %v1437_v38 = vshll.u32 %v5556_v25, 16  ;;  %v4080_v13 = vld [vmem:[%s5752_s3 + $0x230] sm:$0xff] }
 0x20b   : > { %v2203_v61 = vpop.f32.mrf.mxu3  ;;  %v5547_v11 = vadd.f32 %v2421_v7, %v2403_v33 }
 0x20c   : > { %v2204_v56 = vadd.f32 %v2203_v61, %v5421_v17  ;;  %v2287_v20 = vpop.f32.mrf.mxu0 }
 0x20e   : > { %v5552_v47 = vadd.f32 %v2282_v57, %v2204_v56  ;;  %v1434_v57 = vshrl.u32 %v5556_v25, 16  ;;  %v4081_v56 = vld [vmem:[%s5752_s3 + $0x228] sm:$0xff] }
 0x210   : > { %2741 = vmatmul.bf16.gmra.mxu3 %v4288_v30  ;;  %v4079_v30 = vld [vmem:[%s5752_s3 + $0x238] sm:$0xff] }
 0x211   : > { %v2329_v41 = vpop.f32.mrf.mxu1 }
 0x212   : > { %v2423_v36 = vpop.f32.mrf.mxu2  ;;  %v5559_v26 = vadd.f32 %v2329_v41, %v5425_v22 }
 0x213   : > { %v2206_v33 = vpop.f32.mrf.mxu3  ;;  %v5561_v3 = vadd.f32 %v2423_v36, %v2405_v23  ;;  %v1425_v23 = vpack.c.b16 %v1424_v4, %v1424_v4  ;;  %v6001_v36 = vld [vmem:[#allocation51_spill] sm:$0xff] }
 0x214   : > { %v2207_v17 = vadd.f32 %v2206_v33, %v5430_v34  ;;  %v2786_v44 = vpop.f32.mrf.mxu0  ;;  %2864 = vmatmul.bf16.vlgmr.msrb.gmra.mxu1 %v6000_v9  ;;  %v1436_v34 = vrot.slane %v1434_v57, 7 }
 0x215   : > { %2894 = vmatpush.bf16.msrb.mxu1 %v4079_v30  ;;  %v1427_v7 = vshrl.u32 %v1425_v23, 16 }
 0x216   : > { %v5569_v39 = vadd.f32 %v2285_v27, %v2207_v17  ;;  %v1439_v61 = vor.u32 %v1437_v38, %v1436_v34 }
 0x217   : > { %2667 = vmatmul.bf16.gmra.mxu2 %v5960_v6  ;;  %2825 = vmatmul.bf16.gmra.mxu0 %v5992_v32 }
 0x219   : > { %v2331_v22 = vpop.f32.mrf.mxu1  ;;  %2895 = vmatpush.bf16.msrb.mxu1 %v4080_v13 }
 0x21a   : > { %v2628_v51 = vpop.f32.mrf.mxu2  ;;  %v5580_v27 = vadd.f32 %v2331_v22, %v5433_v2  ;;  %v1441_v2 = vsel %vm4313_vm2, %v1427_v7, %v1439_v61  ;;  %v6002_v22 = vld [vmem:[#allocation54_spill] sm:$0xff]  ;;  %v6005_v61 = vld [vmem:[#allocation5_spill] sm:$0xff] }
 0x21b   : > { %v2208_v40 = vpop.f32.mrf.mxu3 }
 0x21c   : > { %v2209_v6 = vadd.f32 %v2208_v40, %v5440_v14  ;;  %v2788_v32 = vpop.f32.mrf.mxu0 }
 0x21d   : > { %2896 = vmatpush.bf16.msrb.mxu1 %v4081_v56 }
 0x21e   : > { %v5588_v4 = vadd.f32 %v2287_v20, %v2209_v6  ;;  %v6003_v20 = vld [vmem:[#allocation56_spill] sm:$0xff]  ;;  %v6004_v6 = vld [vmem:[#allocation25_spill] sm:$0xff] }
 0x220   : > { %2746 = vmatmul.bf16.gmra.mxu3 %v4472_v31 }
 0x221   : > { %v2334_v41 = vpop.f32.mrf.mxu1  ;;  %2897 = vmatpush.bf16.msrb.mxu1 %v6001_v36 }
 0x222   : > { %v2630_v14 = vpop.f32.mrf.mxu2  ;;  %v5595_v33 = vadd.f32 %v2334_v41, %v5444_v29 }
 0x223   : > { %v2707_v17 = vpop.f32.mrf.mxu3 }
 0x224   : > { %v2791_v9 = vpop.f32.mrf.mxu0  ;;  %2869 = vmatmul.bf16.gmra.mxu1 %v1441_v2  ;;  %v2708_v30 = vadd.f32 %v2707_v17, %v2628_v51 }
 0x225   : > { %2898 = vmatpush.bf16.msrb.mxu1 %v6002_v22 }
 0x226   : > { %v2787_v31 = vadd.f32 %v2786_v44, %v2708_v30  ;;  %v6006_v44 = vld [vmem:[#allocation9_spill] sm:$0xff]  ;;  %v6007_v30 = vld [vmem:[#allocation4_spill] sm:$0xff] }
 0x227   : > { %2672 = vmatmul.bf16.gmra.mxu2 %v5964_v12  ;;  %2830 = vmatmul.bf16.gmra.mxu0 %v5994_v49 }
 0x228   : > { %v2913_v51 = vadd.f32 %v2787_v31, %v5438_v15 }
 0x229   : > { %v2336_v50 = vpop.f32.mrf.mxu1  ;;  %2899 = vmatpush.bf16.msrb.mxu1 %v6003_v20 }
 0x22a   : > { %v2633_v23 = vpop.f32.mrf.mxu2  ;;  %v5602_v34 = vadd.f32 %v2336_v50, %v5453_v48  ;;  %v3054_v49 = vmul.f32 %v2913_v51, %v2913_v51 }
 0x22b   : > { %v2709_v29 = vpop.f32.mrf.mxu3 }
 0x22c   : > { %v2710_v13 = vadd.f32 %v2709_v29, %v2630_v14  ;;  %v2793_v40 = vpop.f32.mrf.mxu0 }
 0x22d   : > { %2900 = vmatpush.bf16.msrb.mxu1 %v6004_v6 }
 0x22e   : > { %v2789_v7 = vadd.f32 %v2788_v32, %v2710_v13 }
 0x230   : > { %v2914_v12 = vadd.f32 %v2789_v7, %v5449_v0  ;;  %2751 = vmatmul.bf16.gmra.mxu3 %v6005_v61 }
 0x231   : > { %v2339_v48 = vpop.f32.mrf.mxu1  ;;  %2901 = vmatpush.bf16.msrb.mxu1 %v6006_v44 }
 0x232   : > { %v3921_v56 = vpack.c.bf16 %v2914_v12, %v2913_v51  ;;  %v3011_v41 = vadd.f32 %v2914_v12, %v2913_v51  ;;  %v3055_v15 = vmul.f32 %v2914_v12, %v2914_v12  ;;  %v2635_v2 = vpop.f32.mrf.mxu2  ;;  %v5616_v32 = vadd.f32 %v2339_v48, %v5462_v45 }
 0x233   : > { %v2712_v0 = vpop.f32.mrf.mxu3 }
 0x234   : > { %4015 = vst [vmem:[%s5612_s11 + $0x8] sm:$0xff] %v3921_v56   ;;  %v3082_v36 = vadd.f32 %v3055_v15, %v3054_v49  ;;  %v2713_v14 = vadd.f32 %v2712_v0, %v2633_v23  ;;  %v2796_v17 = vpop.f32.mrf.mxu0  ;;  %2883 = vmatmul.bf16.vlgmr.msra.gmra.mxu1 %v6007_v30 }
 0x236   : > { %v2792_v22 = vadd.f32 %v2791_v9, %v2713_v14 }
 0x237   : > { %2677 = vmatmul.bf16.gmra.mxu2 %v5966_v16  ;;  %2835 = vmatmul.bf16.gmra.mxu0 %v5996_v8  ;;  %v6008_v16 = vld [vmem:[#allocation13_spill] sm:$0xff] }
 0x238   : > { %v2915_v31 = vadd.f32 %v2792_v22, %v5457_v59 }
 0x239   : > { %v2341_v50 = vpop.f32.mrf.mxu1 }
 0x23a   : > { %v3012_v20 = vadd.f32 %v3011_v41, %v2915_v31  ;;  %v3056_v29 = vmul.f32 %v2915_v31, %v2915_v31  ;;  %v2638_v13 = vpop.f32.mrf.mxu2  ;;  %v5624_v45 = vadd.f32 %v2341_v50, %v5471_v5 }
 0x23b   : > { %v2714_v51 = vpop.f32.mrf.mxu3 }
 0x23c   : > { %v3083_v23 = vadd.f32 %v3082_v36, %v3056_v29  ;;  %v2715_v6 = vadd.f32 %v2714_v51, %v2635_v2  ;;  %v2798_v7 = vpop.f32.mrf.mxu0  ;;  %v6009_v2 = vld [vmem:[#allocation11_spill] sm:$0xff] }
 0x23e   : > { %v2794_v12 = vadd.f32 %v2793_v40, %v2715_v6 }
 0x240   : > { %v2916_v9 = vadd.f32 %v2794_v12, %v5467_v53  ;;  %2756 = vmatmul.bf16.gmra.mxu3 %v6008_v16 }
 0x241   : > { %v2344_v8 = vpop.f32.mrf.mxu1 }
 0x242   : > { %v3926_v61 = vpack.c.bf16 %v2916_v9, %v2915_v31  ;;  %v3013_v59 = vadd.f32 %v3012_v20, %v2916_v9  ;;  %v3057_v49 = vmul.f32 %v2916_v9, %v2916_v9  ;;  %v2640_v48 = vpop.f32.mrf.mxu2  ;;  %v5629_v44 = vadd.f32 %v2344_v8, %v5480_v60 }
 0x243   : > { %v2717_v56 = vpop.f32.mrf.mxu3 }
 0x244   : > { %4016 = vst [vmem:[%s5612_s11 + $0x10] sm:$0xff] %v3926_v61   ;;  %v3084_v5 = vadd.f32 %v3083_v23, %v3057_v49  ;;  %v2718_v41 = vadd.f32 %v2717_v56, %v2638_v13  ;;  %v2801_v15 = vpop.f32.mrf.mxu0  ;;  %2888 = vmatmul.bf16.gmra.mxu1 %v5556_v25  ;;  %v6010_v13 = vld [vmem:[#allocation8_spill] sm:$0xff]  ;;  %v6011_v61 = vld [vmem:[#allocation22_spill] sm:$0xff]  ;;  %v6013_v49 = vld [vmem:[#allocation55_spill] sm:$0xff] }
 0x246   : > { %v2797_v40 = vadd.f32 %v2796_v17, %v2718_v41 }
 0x247   : > { %2682 = vmatmul.bf16.gmra.mxu2 %v6009_v2  ;;  %2840 = vmatmul.bf16.gmra.mxu0 %v5999_v55 }
 0x248   : > { %v2917_v53 = vadd.f32 %v2797_v40, %v5475_v1 }
 0x249   : > { %v2346_v0 = vpop.f32.mrf.mxu1 }
 0x24a   : > { %v3014_v36 = vadd.f32 %v3013_v59, %v2917_v53  ;;  %v3058_v14 = vmul.f32 %v2917_v53, %v2917_v53  ;;  %v2643_v30 = vpop.f32.mrf.mxu2  ;;  %v5637_v60 = vadd.f32 %v2346_v0, %v5488_v19  ;;  %v6012_v59 = vld [vmem:[#allocation19_spill] sm:$0xff] }
 0x24b   : > { %v2719_v22 = vpop.f32.mrf.mxu3 }
 0x24c   : > { %v3085_v31 = vadd.f32 %v3084_v5, %v3058_v14  ;;  %v2720_v50 = vadd.f32 %v2719_v22, %v2640_v48  ;;  %v2803_v20 = vpop.f32.mrf.mxu0 }
 0x24e   : > { %v2799_v29 = vadd.f32 %v2798_v7, %v2720_v50 }
 0x250   : > { %v2918_v17 = vadd.f32 %v2799_v29, %v5485_v21  ;;  %2761 = vmatmul.bf16.gmra.mxu3 %v6010_v13  ;;  %v1445_v21 = vpack.c.b16 %v5550_v54, %v5550_v54 }
 0x251   : > { %v2349_v55 = vpop.f32.mrf.mxu1 }
 0x252   : > { %v3931_v51 = vpack.c.bf16 %v2918_v17, %v2917_v53  ;;  %v3015_v1 = vadd.f32 %v3014_v36, %v2918_v17  ;;  %v3059_v23 = vmul.f32 %v2918_v17, %v2918_v17  ;;  %v2645_v6 = vpop.f32.mrf.mxu2  ;;  %v5642_v12 = vadd.f32 %v2349_v55, %v5496_v18 }
 0x253   : > { %v2722_v9 = vpop.f32.mrf.mxu3  ;;  %v1442_v18 = vrot.slane %v1437_v38, 1  ;;  %v1447_v5 = vshll.u32 %v1445_v21, 16  ;;  %v6014_v38 = vld [vmem:[#allocation17_spill] sm:$0xff] }
 0x254   : > { %4017 = vst [vmem:[%s5612_s11 + $0x18] sm:$0xff] %v3931_v51   ;;  %v3086_v19 = vadd.f32 %v3085_v31, %v3059_v23  ;;  %v2723_v16 = vadd.f32 %v2722_v9, %v2643_v30  ;;  %v2806_v8 = vpop.f32.mrf.mxu0  ;;  %2902 = vmatmul.bf16.vlgmr.msrb.gmra.mxu1 %v6011_v61  ;;  %v6016_v23 = vld [vmem:[#allocation30_spill] sm:$0xff] }
 0x255   : > { %v1443_v14 = vor.u32 %v1442_v18, %v1434_v57  ;;  %v6018_v18 = vld [vmem:[#allocation26_spill] sm:$0xff] }
 0x256   : > { %v2802_v7 = vadd.f32 %v2801_v15, %v2723_v16 }
 0x257   : > { %2687 = vmatmul.bf16.gmra.mxu2 %v6012_v59  ;;  %2845 = vmatmul.bf16.gmra.mxu0 %v6013_v49 }
 0x258   : > { %v2919_v48 = vadd.f32 %v2802_v7, %v5492_v58  ;;  %v1449_v58 = vrot.slane %v1447_v5, 4 }
 0x259   : > { %v2351_v56 = vpop.f32.mrf.mxu1 }
 0x25a   : > { %v3016_v41 = vadd.f32 %v3015_v1, %v2919_v48  ;;  %v3060_v40 = vmul.f32 %v2919_v48, %v2919_v48  ;;  %v2648_v2 = vpop.f32.mrf.mxu2  ;;  %v5654_v53 = vadd.f32 %v2351_v56, %v5504_v28  ;;  %v1451_v29 = vsel %vm4604_vm5, %v1443_v14, %v1449_v58 }
 0x25b   : > { %v2724_v0 = vpop.f32.mrf.mxu3 }
 0x25c   : > { %v3087_v54 = vadd.f32 %v3086_v19, %v3060_v40  ;;  %v2725_v15 = vadd.f32 %v2724_v0, %v2645_v6  ;;  %v2808_v36 = vpop.f32.mrf.mxu0  ;;  %v6017_v6 = vld [vmem:[#allocation35_spill] sm:$0xff] }
 0x25e   : > { %v2804_v30 = vadd.f32 %v2803_v20, %v2725_v15 }
 0x260   : > { %v2920_v22 = vadd.f32 %v2804_v30, %v5501_v46  ;;  %2766 = vmatmul.bf16.gmra.mxu3 %v6014_v38 }
 0x261   : > { %v2354_v31 = vpop.f32.mrf.mxu1 }
 0x262   : > { %v3936_v28 = vpack.c.bf16 %v2920_v22, %v2919_v48  ;;  %v3017_v17 = vadd.f32 %v3016_v41, %v2920_v22  ;;  %v3061_v13 = vmul.f32 %v2920_v22, %v2920_v22  ;;  %v2650_v55 = vpop.f32.mrf.mxu2  ;;  %v5663_v51 = vadd.f32 %v2354_v31, %v5516_v43 }
 0x263   : > { %v2727_v1 = vpop.f32.mrf.mxu3 }
 0x264   : > { %4018 = vst [vmem:[%s5612_s11 + $0x20] sm:$0xff] %v3936_v28   ;;  %v3088_v25 = vadd.f32 %v3087_v54, %v3061_v13  ;;  %v2728_v57 = vadd.f32 %v2727_v1, %v2648_v2  ;;  %v2811_v20 = vpop.f32.mrf.mxu0  ;;  %2907 = vmatmul.bf16.gmra.mxu1 %v1451_v29 }
 0x266   : > { %v2807_v46 = vadd.f32 %v2806_v8, %v2728_v57 }
 0x267   : > { %2692 = vmatmul.bf16.gmra.mxu2 %v6016_v23  ;;  %2850 = vmatmul.bf16.gmra.mxu0 %v6017_v6 }
 0x268   : > { %v2921_v9 = vadd.f32 %v2807_v46, %v5509_v62 }
 0x269   : > { %v2356_v19 = vpop.f32.mrf.mxu1 }
 0x26a   : > { %v3018_v16 = vadd.f32 %v3017_v17, %v2921_v9  ;;  %v3062_v61 = vmul.f32 %v2921_v9, %v2921_v9  ;;  %v2653_v21 = vpop.f32.mrf.mxu2  ;;  %v5670_v43 = vadd.f32 %v2356_v19, %v5528_v52 }
 0x26b   : > { %v2729_v7 = vpop.f32.mrf.mxu3 }
 0x26c   : > { %v3089_v59 = vadd.f32 %v3088_v25, %v3062_v61  ;;  %v2730_v49 = vadd.f32 %v2729_v7, %v2650_v55  ;;  %v2813_v48 = vpop.f32.mrf.mxu0 }
 0x26e   : > { %v2809_v56 = vadd.f32 %v2808_v36, %v2730_v49 }
 0x270   : > { %v2922_v8 = vadd.f32 %v2809_v56, %v5523_v42  ;;  %2771 = vmatmul.bf16.gmra.mxu3 %v6018_v18 }
 0x271   : > { %v2359_v5 = vpop.f32.mrf.mxu1 }
 0x272   : > { %v3941_v41 = vpack.c.bf16 %v2922_v8, %v2921_v9  ;;  %v3019_v62 = vadd.f32 %v3018_v16, %v2922_v8  ;;  %v3063_v40 = vmul.f32 %v2922_v8, %v2922_v8  ;;  %v2655_v2 = vpop.f32.mrf.mxu2  ;;  %v5675_v0 = vadd.f32 %v2359_v5, %v5540_v37 }
 0x273   : > { %v2732_v54 = vpop.f32.mrf.mxu3 }
 0x274   : > { %4019 = vst [vmem:[%s5612_s11 + $0x28] sm:$0xff] %v3941_v41   ;;  %v3090_v52 = vadd.f32 %v3089_v59, %v3063_v40  ;;  %v2733_v15 = vadd.f32 %v2732_v54, %v2653_v21  ;;  %v2816_v14 = vpop.f32.mrf.mxu0 }
 0x276   : > { %v2812_v58 = vadd.f32 %v2811_v20, %v2733_v15 }
 0x278   : > { %v2923_v36 = vadd.f32 %v2812_v58, %v5534_v24 }
 0x279   : > { %v2361_v30 = vpop.f32.mrf.mxu1 }
 0x27a   : > { %v3020_v42 = vadd.f32 %v3019_v62, %v2923_v36  ;;  %v3064_v22 = vmul.f32 %v2923_v36, %v2923_v36  ;;  %v2658_v38 = vpop.f32.mrf.mxu2  ;;  %v5680_v31 = vadd.f32 %v2361_v30, %v5552_v47 }
 0x27b   : > { %v2734_v50 = vpop.f32.mrf.mxu3 }
 0x27c   : > { %v3091_v29 = vadd.f32 %v3090_v52, %v3064_v22  ;;  %v2735_v37 = vadd.f32 %v2734_v50, %v2655_v2  ;;  %v2818_v28 = vpop.f32.mrf.mxu0 }
 0x27e   : > { %v2814_v17 = vadd.f32 %v2813_v48, %v2735_v37 }
 0x280   : > { %v2924_v13 = vadd.f32 %v2814_v17, %v5545_v10 }
 0x281   : > { %v2364_v55 = vpop.f32.mrf.mxu1 }
 0x282   : > { %v3946_v1 = vpack.c.bf16 %v2924_v13, %v2923_v36  ;;  %v3021_v25 = vadd.f32 %v3020_v42, %v2924_v13  ;;  %v3065_v57 = vmul.f32 %v2924_v13, %v2924_v13  ;;  %v2660_v24 = vpop.f32.mrf.mxu2  ;;  %v5684_v20 = vadd.f32 %v2364_v55, %v5569_v39 }
 0x283   : > { %v2737_v46 = vpop.f32.mrf.mxu3 }
 0x284   : > { %4020 = vst [vmem:[%s5612_s11 + $0x30] sm:$0xff] %v3946_v1   ;;  %v3092_v23 = vadd.f32 %v3091_v29, %v3065_v57  ;;  %v2738_v47 = vadd.f32 %v2737_v46, %v2658_v38  ;;  %v2821_v6 = vpop.f32.mrf.mxu0 }
 0x286   : > { %v2817_v9 = vadd.f32 %v2816_v14, %v2738_v47 }
 0x288   : > { %v2925_v19 = vadd.f32 %v2817_v9, %v5559_v26 }
 0x289   : > { %v2366_v16 = vpop.f32.mrf.mxu1 }
 0x28a   : > { %v3022_v61 = vadd.f32 %v3021_v25, %v2925_v19  ;;  %v3066_v10 = vmul.f32 %v2925_v19, %v2925_v19  ;;  %v2663_v21 = vpop.f32.mrf.mxu2  ;;  %v5689_v7 = vadd.f32 %v2366_v16, %v5588_v4 }
 0x28b   : > { %v2739_v59 = vpop.f32.mrf.mxu3 }
 0x28c   : > { %v3093_v49 = vadd.f32 %v3092_v23, %v3066_v10  ;;  %v2740_v39 = vadd.f32 %v2739_v59, %v2660_v24  ;;  %v2823_v48 = vpop.f32.mrf.mxu0 }
 0x28e   : > { %v2819_v56 = vadd.f32 %v2818_v28, %v2740_v39 }
 0x290   : > { %v2926_v8 = vadd.f32 %v2819_v56, %v5580_v27 }
 0x291   : > { %v5692_v18 = vpop.f32.mrf.mxu1 }
 0x292   : > { %v3951_v5 = vpack.c.bf16 %v2926_v8, %v2925_v19  ;;  %v3023_v41 = vadd.f32 %v3022_v61, %v2926_v8  ;;  %v3067_v26 = vmul.f32 %v2926_v8, %v2926_v8  ;;  %v2665_v62 = vpop.f32.mrf.mxu2 }
 0x293   : > { %v2742_v40 = vpop.f32.mrf.mxu3 }
 0x294   : > { %4021 = vst [vmem:[%s5612_s11 + $0x38] sm:$0xff] %v3951_v5   ;;  %v3094_v2 = vadd.f32 %v3093_v49, %v3067_v26  ;;  %v2743_v54 = vadd.f32 %v2742_v40, %v2663_v21  ;;  %v2826_v52 = vpop.f32.mrf.mxu0 }
 0x296   : > { %v2822_v4 = vadd.f32 %v2821_v6, %v2743_v54 }
 0x298   : > { %v2927_v15 = vadd.f32 %v2822_v4, %v5595_v33 }
 0x299   : > { %v5696_v14 = vpop.f32.mrf.mxu1 }
 0x29a   : > { %v3024_v58 = vadd.f32 %v3023_v41, %v2927_v15  ;;  %v3068_v36 = vmul.f32 %v2927_v15, %v2927_v15  ;;  %v2668_v27 = vpop.f32.mrf.mxu2 }
 0x29b   : > { %v2744_v30 = vpop.f32.mrf.mxu3 }
 0x29c   : > { %v3095_v42 = vadd.f32 %v3094_v2, %v3068_v36  ;;  %v2745_v22 = vadd.f32 %v2744_v30, %v2665_v62  ;;  %v2828_v38 = vpop.f32.mrf.mxu0 }
 0x29e   : > { %v2824_v50 = vadd.f32 %v2823_v48, %v2745_v22 }
 0x2a0   : > { %v2928_v29 = vadd.f32 %v2824_v50, %v5602_v34 }
 0x2a1   : > { %v5699_v37 = vpop.f32.mrf.mxu1 }
 0x2a2   : > { %v3956_v28 = vpack.c.bf16 %v2928_v29, %v2927_v15  ;;  %v3025_v17 = vadd.f32 %v3024_v58, %v2928_v29  ;;  %v3069_v13 = vmul.f32 %v2928_v29, %v2928_v29  ;;  %v2670_v55 = vpop.f32.mrf.mxu2 }
 0x2a3   : > { %v2747_v33 = vpop.f32.mrf.mxu3 }
 0x2a4   : > { %4022 = vst [vmem:[%s5612_s11 + $0x40] sm:$0xff] %v3956_v28   ;;  %v3096_v1 = vadd.f32 %v3095_v42, %v3069_v13  ;;  %v2748_v25 = vadd.f32 %v2747_v33, %v2668_v27  ;;  %v2831_v57 = vpop.f32.mrf.mxu0 }
 0x2a6   : > { %v2827_v24 = vadd.f32 %v2826_v52, %v2748_v25 }
 0x2a8   : > { %v2929_v46 = vadd.f32 %v2827_v24, %v5616_v32 }
 0x2a9   : > { %v5703_v23 = vpop.f32.mrf.mxu1 }
 0x2aa   : > { %v3026_v47 = vadd.f32 %v3025_v17, %v2929_v46  ;;  %v3070_v6 = vmul.f32 %v2929_v46, %v2929_v46  ;;  %v2673_v34 = vpop.f32.mrf.mxu2 }
 0x2ab   : > { %v2749_v9 = vpop.f32.mrf.mxu3 }
 0x2ac   : > { %v3097_v19 = vadd.f32 %v3096_v1, %v3070_v6  ;;  %v2750_v16 = vadd.f32 %v2749_v9, %v2670_v55  ;;  %v2833_v61 = vpop.f32.mrf.mxu0 }
 0x2ae   : > { %v2829_v10 = vadd.f32 %v2828_v38, %v2750_v16 }
 0x2b0   : > { %v2930_v21 = vadd.f32 %v2829_v10, %v5624_v45 }
 0x2b1   : > { %v2884_v59 = vpop.f32.mrf.mxu1 }
 0x2b2   : > { %v3961_v49 = vpack.c.bf16 %v2930_v21, %v2929_v46  ;;  %v3027_v39 = vadd.f32 %v3026_v47, %v2930_v21  ;;  %v3071_v48 = vmul.f32 %v2930_v21, %v2930_v21  ;;  %v2675_v56 = vpop.f32.mrf.mxu2  ;;  %v2885_v6 = vadd.f32 %v2884_v59, %v5692_v18 }
 0x2b3   : > { %v2752_v8 = vpop.f32.mrf.mxu3 }
 0x2b4   : > { %4023 = vst [vmem:[%s5612_s11 + $0x48] sm:$0xff] %v3961_v49   ;;  %v3098_v32 = vadd.f32 %v3097_v19, %v3071_v48  ;;  %v2753_v5 = vadd.f32 %v2752_v8, %v2673_v34  ;;  %v2836_v26 = vpop.f32.mrf.mxu0 }
 0x2b6   : > { %v2832_v41 = vadd.f32 %v2831_v57, %v2753_v5 }
 0x2b8   : > { %v2931_v62 = vadd.f32 %v2832_v41, %v5629_v44 }
 0x2b9   : > { %v2886_v40 = vpop.f32.mrf.mxu1 }
 0x2ba   : > { %v3028_v2 = vadd.f32 %v3027_v39, %v2931_v62  ;;  %v3072_v54 = vmul.f32 %v2931_v62, %v2931_v62  ;;  %v2678_v52 = vpop.f32.mrf.mxu2 }
 0x2bb   : > { %v2754_v4 = vpop.f32.mrf.mxu3 }
 0x2bc   : > { %v3099_v45 = vadd.f32 %v3098_v32, %v3072_v54  ;;  %v2755_v15 = vadd.f32 %v2754_v4, %v2675_v56  ;;  %v2838_v27 = vpop.f32.mrf.mxu0  ;;  %v2887_v32 = vadd.f32 %v2886_v40, %v5696_v14 }
 0x2be   : > { %v2834_v58 = vadd.f32 %v2833_v61, %v2755_v15 }
 0x2c0   : > { %v2932_v36 = vadd.f32 %v2834_v58, %v5637_v60 }
 0x2c1   : > { %v2889_v30 = vpop.f32.mrf.mxu1 }
 0x2c2   : > { %v3966_v42 = vpack.c.bf16 %v2932_v36, %v2931_v62  ;;  %v3029_v22 = vadd.f32 %v3028_v2, %v2932_v36  ;;  %v3073_v38 = vmul.f32 %v2932_v36, %v2932_v36  ;;  %v2680_v50 = vpop.f32.mrf.mxu2 }
 0x2c3   : > { %v2757_v29 = vpop.f32.mrf.mxu3 }
 0x2c4   : > { %4024 = vst [vmem:[%s5612_s11 + $0x50] sm:$0xff] %v3966_v42   ;;  %v3100_v44 = vadd.f32 %v3099_v45, %v3073_v38  ;;  %v2758_v28 = vadd.f32 %v2757_v29, %v2678_v52  ;;  %v2841_v60 = vpop.f32.mrf.mxu0 }
 0x2c6   : > { %v2837_v17 = vadd.f32 %v2836_v26, %v2758_v28 }
 0x2c8   : > { %v2933_v13 = vadd.f32 %v2837_v17, %v5642_v12 }
 0x2c9   : > { %v2891_v55 = vpop.f32.mrf.mxu1 }
 0x2ca   : > { %v3030_v33 = vadd.f32 %v3029_v22, %v2933_v13  ;;  %v3074_v1 = vmul.f32 %v2933_v13, %v2933_v13  ;;  %v2683_v25 = vpop.f32.mrf.mxu2 }
 0x2cb   : > { %v2759_v57 = vpop.f32.mrf.mxu3 }
 0x2cc   : > { %v3101_v24 = vadd.f32 %v3100_v44, %v3074_v1  ;;  %v2760_v46 = vadd.f32 %v2759_v57, %v2680_v50  ;;  %v2843_v56 = vpop.f32.mrf.mxu0 }
 0x2ce   : > { %v2839_v47 = vadd.f32 %v2838_v27, %v2760_v46 }
 0x2d0   : > { %v2934_v34 = vadd.f32 %v2839_v47, %v5654_v53 }
 0x2d1   : > { %v2903_v9 = vpop.f32.mrf.mxu1 }
 0x2d2   : > { %v3971_v19 = vpack.c.bf16 %v2934_v34, %v2933_v13  ;;  %v3031_v16 = vadd.f32 %v3030_v33, %v2934_v34  ;;  %v3075_v61 = vmul.f32 %v2934_v34, %v2934_v34  ;;  %v2685_v10 = vpop.f32.mrf.mxu2  ;;  %v2904_v12 = vadd.f32 %v2903_v9, %v2885_v6 }
 0x2d3   : > { %v2762_v21 = vpop.f32.mrf.mxu3 }
 0x2d4   : > { %4025 = vst [vmem:[%s5612_s11 + $0x58] sm:$0xff] %v3971_v19   ;;  %v3102_v49 = vadd.f32 %v3101_v24, %v3075_v61  ;;  %v2763_v39 = vadd.f32 %v2762_v21, %v2683_v25  ;;  %v2941_v48 = vadd.f32 %v2904_v12, %v5525_v35  ;;  %v2846_v14 = vpop.f32.mrf.mxu0 }
 0x2d6   : > { %v2842_v8 = vadd.f32 %v2841_v60, %v2763_v39  ;;  %v3115_v4 = vmul.f32 %v2941_v48, %v2941_v48 }
 0x2d8   : > { %v2935_v18 = vadd.f32 %v2842_v8, %v5663_v51  ;;  %v2890_v51 = vadd.f32 %v2889_v30, %v5699_v37  ;;  %v2892_v37 = vadd.f32 %v2891_v55, %v5703_v23 }
 0x2d9   : > { %v2905_v59 = vpop.f32.mrf.mxu1 }
 0x2da   : > { %v3032_v53 = vadd.f32 %v3031_v16, %v2935_v18  ;;  %v3076_v5 = vmul.f32 %v2935_v18, %v2935_v18  ;;  %v2906_v41 = vadd.f32 %v2905_v59, %v2887_v32  ;;  %v2688_v62 = vpop.f32.mrf.mxu2 }
 0x2db   : > { %v2764_v26 = vpop.f32.mrf.mxu3 }
 0x2dc   : > { %v3103_v2 = vadd.f32 %v3102_v49, %v3076_v5  ;;  %v2765_v54 = vadd.f32 %v2764_v26, %v2685_v10  ;;  %v2942_v52 = vadd.f32 %v2906_v41, %v5536_v63  ;;  %v2848_v25 = vpop.f32.mrf.mxu0 }
 0x2de   : > { %v2844_v35 = vadd.f32 %v2843_v56, %v2765_v54  ;;  %v3991_v45 = vpack.c.bf16 %v2942_v52, %v2941_v48  ;;  %v3044_v15 = vadd.f32 %v2942_v52, %v2941_v48  ;;  %v3116_v58 = vmul.f32 %v2942_v52, %v2942_v52 }
 0x2e0   : > { %v2936_v40 = vadd.f32 %v2844_v35, %v5670_v43  ;;  %3992 = vst [vmem:[%s5612_s11] sm:$0xff] %v3991_v45   ;;  %v3119_v36 = vadd.f32 %v3116_v58, %v3115_v4 }
 0x2e1   : > { %v2908_v27 = vpop.f32.mrf.mxu1 }
 0x2e2   : > { %v3976_v42 = vpack.c.bf16 %v2936_v40, %v2935_v18  ;;  %v3033_v22 = vadd.f32 %v3032_v53, %v2936_v40  ;;  %v3077_v38 = vmul.f32 %v2936_v40, %v2936_v40  ;;  %v2909_v50 = vadd.f32 %v2908_v27, %v2890_v51  ;;  %v2690_v17 = vpop.f32.mrf.mxu2 }
 0x2e3   : > { %v2767_v29 = vpop.f32.mrf.mxu3 }
 0x2e4   : > { %4026 = vst [vmem:[%s5612_s11 + $0x60] sm:$0xff] %v3976_v42   ;;  %v3104_v63 = vadd.f32 %v3103_v2, %v3077_v38  ;;  %v2768_v44 = vadd.f32 %v2767_v29, %v2688_v62  ;;  %v2943_v28 = vadd.f32 %v2909_v50, %v5547_v11  ;;  %v2851_v49 = vpop.f32.mrf.mxu0 }
 0x2e6   : > { %v2847_v13 = vadd.f32 %v2846_v14, %v2768_v44  ;;  %v3045_v33 = vadd.f32 %v3044_v15, %v2943_v28  ;;  %v3117_v1 = vmul.f32 %v2943_v28, %v2943_v28 }
 0x2e8   : > { %v2937_v43 = vadd.f32 %v2847_v13, %v5675_v0  ;;  %v3120_v30 = vadd.f32 %v3119_v36, %v3117_v1 }
 0x2e9   : > { %v2910_v57 = vpop.f32.mrf.mxu1 }
 0x2ea   : > { %v3034_v60 = vadd.f32 %v3033_v22, %v2937_v43  ;;  %v3078_v24 = vmul.f32 %v2937_v43, %v2937_v43  ;;  %v2911_v46 = vadd.f32 %v2910_v57, %v2892_v37  ;;  %v2693_v23 = vpop.f32.mrf.mxu2 }
 0x2eb   : > { %v2769_v47 = vpop.f32.mrf.mxu3 }
 0x2ec   : > { %v3105_v6 = vadd.f32 %v3104_v63, %v3078_v24  ;;  %v2770_v34 = vadd.f32 %v2769_v47, %v2690_v17  ;;  %v2944_v11 = vadd.f32 %v2911_v46, %v5561_v3  ;;  %v2853_v62 = vpop.f32.mrf.mxu0 }
 0x2ee   : > { %v2849_v9 = vadd.f32 %v2848_v25, %v2770_v34  ;;  %v3996_v19 = vpack.c.bf16 %v2944_v11, %v2943_v28  ;;  %v3046_v16 = vadd.f32 %v3045_v33, %v2944_v11  ;;  %v3118_v61 = vmul.f32 %v2944_v11, %v2944_v11 }
 0x2f0   : > { %v2938_v0 = vadd.f32 %v2849_v9, %v5680_v31  ;;  %4029 = vst [vmem:[%s5612_s11 + $0x78] sm:$0xff] %v3996_v19   ;;  %v3121_v55 = vadd.f32 %v3120_v30, %v3118_v61  ;;  %v3047_v53 = vrot.slane %v3046_v16, 4 }
 0x2f2   : > { %v3981_v10 = vpack.c.bf16 %v2938_v0, %v2937_v43  ;;  %v3035_v12 = vadd.f32 %v3034_v60, %v2938_v0  ;;  %v3079_v21 = vmul.f32 %v2938_v0, %v2938_v0  ;;  %v2695_v32 = vpop.f32.mrf.mxu2  ;;  %v3122_v41 = vrot.slane %v3121_v55, 4 }
 0x2f3   : > { %v2772_v39 = vpop.f32.mrf.mxu3  ;;  %v3048_v2 = vadd.f32 %v3047_v53, %v3046_v16 }
 0x2f4   : > { %4027 = vst [vmem:[%s5612_s11 + $0x68] sm:$0xff] %v3981_v10   ;;  %v3106_v48 = vadd.f32 %v3105_v6, %v3079_v21  ;;  %v2773_v56 = vadd.f32 %v2772_v39, %v2693_v23  ;;  %v3123_v52 = vadd.f32 %v3122_v41, %v3121_v55 }
 0x2f5   : > { %v3049_v35 = vrot.slane %v3048_v2, 2 }
 0x2f6   : > { %v2852_v8 = vadd.f32 %v2851_v49, %v2773_v56 }
 0x2f7   : > { %v3050_v40 = vadd.f32 %v3049_v35, %v3048_v2 }
 0x2f8   : > { %v2939_v3 = vadd.f32 %v2852_v8, %v5684_v20  ;;  %v3124_v20 = vrot.slane %v3123_v52, 2 }
 0x2f9   : > { %v3051_v50 = vrot.slane %v3050_v40, 1 }
 0x2fa   : > { %v3036_v18 = vadd.f32 %v3035_v12, %v2939_v3  ;;  %v3080_v59 = vmul.f32 %v2939_v3, %v2939_v3  ;;  %v3125_v42 = vadd.f32 %v3124_v20, %v3123_v52 }
 0x2fb   : > { %v2774_v5 = vpop.f32.mrf.mxu3  ;;  %v3052_v17 = vadd.f32 %v3051_v50, %v3050_v40 }
 0x2fc   : > { %v3107_v31 = vadd.f32 %v3106_v48, %v3080_v59  ;;  %v2775_v26 = vadd.f32 %v2774_v5, %v2695_v32 }
 0x2fe   : > { %v2854_v54 = vadd.f32 %v2853_v62, %v2775_v26 }
 0x300   : > { %v2940_v4 = vadd.f32 %v2854_v54, %v5689_v7  ;;  %v3126_v7 = vrot.slane %v3125_v42, 1 }
 0x302   : > { %v3986_v45 = vpack.c.bf16 %v2940_v4, %v2939_v3  ;;  %v3037_v15 = vadd.f32 %v3036_v18, %v2940_v4  ;;  %v3081_v58 = vmul.f32 %v2940_v4, %v2940_v4  ;;  %v3127_v1 = vadd.f32 %v3126_v7, %v3125_v42 }
 0x304   : > { %4028 = vst [vmem:[%s5612_s11 + $0x70] sm:$0xff] %v3986_v45   ;;  %v3038_v14 = vrot.slane %v3037_v15, 4  ;;  %v3108_v51 = vadd.f32 %v3107_v31, %v3081_v58 }
 0x306   : > { %v3039_v36 = vadd.f32 %v3038_v14, %v3037_v15  ;;  %v3109_v27 = vrot.slane %v3108_v51, 4 }
 0x308   : > { %v3040_v22 = vrot.slane %v3039_v36, 2  ;;  %v3110_v38 = vadd.f32 %v3109_v27, %v3108_v51 }
 0x30a   : > { %v3041_v29 = vadd.f32 %v3040_v22, %v3039_v36  ;;  %v3111_v63 = vrot.slane %v3110_v38, 2 }
 0x30c   : > { %v3042_v44 = vrot.slane %v3041_v29, 1  ;;  %v3112_v28 = vadd.f32 %v3111_v63, %v3110_v38 }
 0x30e   : > { %v3043_v13 = vadd.f32 %v3042_v44, %v3041_v29  ;;  %v3113_v33 = vrot.slane %v3112_v28, 1 }
 0x310   : > { %v3053_v37 = vadd.f32 %v3052_v17, %v3043_v13  ;;  %v3114_v43 = vadd.f32 %v3113_v33, %v3112_v28 }
 0x312   : > { %v3128_v30 = vadd.f32 %v3127_v1, %v3114_v43  ;;  %3129 = vst [vmem:[%s528_s13] sm:$0x1] %v3053_v37 }
 0x314   : > { %3130 = vst [vmem:[%s534_s16] sm:$0x1] %v3128_v30 }
 0x315 PF: > { %s19_s29 = sadd.s32 1, %s4104_s29   ;;  %s6019_s27 = smov %s4100_s28 }
 0x316   : > { %p16_p5 = scmp.ge.s32.totalorder %s19_s29, 4   ;;  %s6020_s28 = smov %s6022_s30 }
 0x318   :  { %18 = sbr.rel (!%p16_p5) target bundleno = 2 (0x2), region = 108 }

</bundles_post_ra>
